<compile_context>
chip_gen: v6e
topology: v6e:2x2x1
jax: 0.10.0
libtpu: 0.0.40
codegen_flags: <defaults>
</compile_context>

<pallas_src>
import functools

import numpy as np
import jax
import jax.numpy as jnp
from jax.experimental import pallas as pl
from jax.experimental.pallas import tpu as pltpu


_LANE = 128


def _round_up(x, m):
    return (x + m - 1) // m * m


def _pad_last(x, target):
    pad = target - x.shape[-1]
    if pad == 0:
        return x
    return jnp.pad(x, [(0, 0)] * (x.ndim - 1) + [(0, pad)])


@functools.lru_cache(maxsize=None)
def _vmem_limit_bytes():
    # v5e / v6e have 128 MiB physical VMEM; v7x has 64 MiB per TensorCore.
    try:
        phys = int(pltpu.get_tpu_info().vmem_capacity_bytes)
    except Exception:
        phys = 0
    if phys >= 96 * 1024 * 1024:
        return 64 * 1024 * 1024
    return 40 * 1024 * 1024


def _pick_row_tile(h, w, acc_cols, *, acc_budget_bytes, need_even):
    """Largest row tile TH dividing h with TH*w*acc_cols*4 <= acc budget,
    keeping >= 2 row tiles when possible so v7x megacore keeps a parallel
    axis of size >= 2 even at N=1."""
    target_m = max(8, acc_budget_bytes // (4 * max(acc_cols, 1)))
    cap = max(1, target_m // max(w, 1))
    if h >= 4:
        cap = min(cap, h // 2)
    cands = [d for d in range(1, h + 1)
             if h % d == 0 and (not need_even or d % 2 == 0)]
    fitting = [d for d in cands if d <= cap]
    return max(fitting) if fitting else min(cands)


# ---------------------------------------------------------------------------
# Kernel 1: 2x2 / stride-2 transposed conv with fused bias + pixel shuffle
# ---------------------------------------------------------------------------
def _upconv2x2_kernel(x_ref, w_ref, b_ref, o_ref, *, th, w_in):
    two_cp = o_ref.shape[-1]                      # = 2 * cout_p
    cin = x_ref.shape[-1]
    x = x_ref[0].reshape(th * w_in, cin)          # (M, cin_p)
    acc = jnp.dot(x, w_ref[...], preferred_element_type=jnp.float32)
    acc = (acc + b_ref[...]).astype(o_ref.dtype)  # (M, 4*cout_p), cols (dy,dx,c)
    acc = acc.reshape(th, w_in, 2 * two_cp)
    # dy = 0 / 1 halves are lane-aligned column slices (cout_p is a 128-mult),
    # so both stores are unmasked, lane-dense vst.
    o_ref[0, :, 0, :, :] = acc[:, :, :two_cp]
    o_ref[0, :, 1, :, :] = acc[:, :, two_cp:]


def conv_transpose_2x2_s2(x_nhwc, w, b, *, cout_p):
    """ConvTranspose2d(k=2, s=2, p=0).  w: (Cin, Cout, 2, 2) torch layout.
    Returns bf16 NHWC (N, 2H, 2W, cout_p); channels [Cout:] are zero."""
    N, H, W, Cin = x_nhwc.shape
    Cout = w.shape[1]
    cin_p = _round_up(Cin, _LANE)

    xb = _pad_last(x_nhwc, cin_p).astype(jnp.bfloat16)
    wt = jnp.transpose(w, (0, 2, 3, 1))                       # (Cin, dy, dx, Cout)
    wt = _pad_last(wt, cout_p)
    wt = jnp.pad(wt, ((0, cin_p - Cin), (0, 0), (0, 0), (0, 0)))
    wt = wt.reshape(cin_p, 4 * cout_p).astype(jnp.bfloat16)
    bt = jnp.tile(_pad_last(b, cout_p), 4).astype(jnp.float32)
    bt = bt.reshape(1, 4 * cout_p)                            # per-tap bias

    th = _pick_row_tile(H, W, 4 * cout_p,
                        acc_budget_bytes=256 * 1024, need_even=False)
    grid = (N, H // th)

    cost = pl.CostEstimate(
        flops=2 * N * H * W * cin_p * 4 * cout_p,
        transcendentals=0,
        bytes_accessed=(xb.size * xb.dtype.itemsize
                        + wt.size * wt.dtype.itemsize
                        + 4 * cout_p * 4
                        + N * H * W * 4 * cout_p * 2))

    out = pl.pallas_call(
        functools.partial(_upconv2x2_kernel, th=th, w_in=W),
        out_shape=jax.ShapeDtypeStruct((N, H, 2, W, 2 * cout_p), jnp.bfloat16),
        grid_spec=pltpu.PrefetchScalarGridSpec(
            num_scalar_prefetch=0,
            grid=grid,
            in_specs=[
                pl.BlockSpec((1, th, W, cin_p), lambda n, t: (n, t, 0, 0)),
                pl.BlockSpec((cin_p, 4 * cout_p), lambda n, t: (0, 0)),
                pl.BlockSpec((1, 4 * cout_p), lambda n, t: (0, 0)),
            ],
            out_specs=pl.BlockSpec((1, th, 2, W, 2 * cout_p),
                                   lambda n, t: (n, t, 0, 0, 0)),
        ),
        compiler_params=pltpu.CompilerParams(
            dimension_semantics=("parallel", "parallel"),
            vmem_limit_bytes=_vmem_limit_bytes()),
        cost_estimate=cost,
    )(xb, wt, bt)
    # (N, H, 2, W, 2*cout_p) -> (N, 2H, 2W, cout_p) is a contiguous (free) reshape.
    return out.reshape(N, 2 * H, 2 * W, cout_p)


# ---------------------------------------------------------------------------
# Kernel 2: row-tiled fused 3x3 conv (+channel-concat, +bias, +ReLU)
# ---------------------------------------------------------------------------
def _conv3x3_kernel(*refs, n_seg, relu, th, w_out):
    # refs = [main_s, halo_s]*n_seg + [w_s]*n_seg + [bias, out] + [xw_s]*n_seg
    x_refs = refs[:2 * n_seg]
    w_refs = refs[2 * n_seg:3 * n_seg]
    b_ref = refs[3 * n_seg]
    o_ref = refs[3 * n_seg + 1]
    xw_refs = refs[3 * n_seg + 2:]
    cout = o_ref.shape[-1]

    acc = jnp.zeros((th * w_out, cout), jnp.float32)
    for s in range(n_seg):
        xw = xw_refs[s]                              # (TH+2, W+2, Cs) scratch
        xw[0:th] = x_refs[2 * s][0]                  # TH main rows
        xw[th:th + 2] = x_refs[2 * s + 1][0]         # 2 bottom-halo rows
        for ky in range(3):
            for kx in range(3):
                patch = xw[ky:ky + th, kx:kx + w_out, :]
                # TODO(synk): merge the kx taps into one K=3*Cs matmul for
                # better MXU depth fill on v6e/v7x.
                acc += jnp.dot(patch.reshape(th * w_out, patch.shape[-1]),
                               w_refs[s][ky, kx],
                               preferred_element_type=jnp.float32)
    acc = acc + b_ref[...]
    if relu:
        acc = jnp.maximum(acc, 0.0)
    o_ref[0] = acc.reshape(th, w_out, cout).astype(o_ref.dtype)


def conv3x3_bias_act(inputs, weights, bias, *, out_dtype, relu=True):
    """3x3 / stride-1 / pad-1 conv over the channel concatenation of `inputs`.

    inputs : list of NHWC bf16 arrays (channels padded to 128 multiples)
    weights: list of (3, 3, Ci_pad, Cout_pad) bf16 arrays, one per segment
    bias   : (Cout_pad,) f32
    """
    n_seg = len(inputs)
    N, H, W, _ = inputs[0].shape
    cout_p = weights[0].shape[-1]
    assert H % 2 == 0, "spatial height is 2*H_in here, i.e. even"

    # TODO(synk): the spatial halo is still materialised with an XLA pad; a
    # further step is writing conv1's output in a pre-padded layout so conv2
    # never re-pads.
    padded = [jnp.pad(x, ((0, 0), (1, 1), (1, 1), (0, 0))) for x in inputs]
    seg_cs = [p.shape[-1] for p in padded]
    out_bytes = jnp.dtype(out_dtype).itemsize
    vmem_cap = _vmem_limit_bytes()

    th = _pick_row_tile(H, W, cout_p, acc_budget_bytes=128 * 1024,
                        need_even=True)

    def footprint(t):
        b = 0
        for cs in seg_cs:
            b += 2 * (t + 2) * (W + 2) * cs * 2      # main+halo blocks, 2 buffers
            b += (t + 2) * (W + 2) * cs * 2          # window scratch
            b += 2 * 9 * cs * cout_p * 2             # weights (double buffered)
        b += 2 * cout_p * 4                          # bias
        b += 2 * t * W * cout_p * out_bytes          # output block, 2 buffers
        return b

    while footprint(th) > int(0.8 * vmem_cap) and th > 2:
        smaller = [d for d in range(2, th, 2) if H % d == 0]
        if not smaller:
            break
        th = max(smaller)

    in_specs, args = [], []
    for s in range(n_seg):
        cs = seg_cs[s]
        in_specs.append(pl.BlockSpec((1, th, W + 2, cs),
                                     lambda n, t: (n, t, 0, 0)))
        args.append(padded[s])
        # 2-row bottom halo: element offset (t+1)*th == block index (t+1)*th/2.
        in_specs.append(pl.BlockSpec((1, 2, W + 2, cs),
                                     lambda n, t, _h=th // 2: (n, (t + 1) * _h, 0, 0)))
        args.append(padded[s])
    for s in range(n_seg):
        cs = weights[s].shape[2]
        # TODO(synk): pl.Buffered(1) on these constant-index blocks would
        # reclaim one weight buffer of VMEM.
        in_specs.append(pl.BlockSpec((3, 3, cs, cout_p),
                                     lambda n, t: (0, 0, 0, 0)))
        args.append(weights[s])
    in_specs.append(pl.BlockSpec((1, cout_p), lambda n, t: (0, 0)))
    args.append(bias.reshape(1, cout_p))

    scratch = [pltpu.VMEM((th + 2, W + 2, cs), padded[s].dtype)
               for s, cs in enumerate(seg_cs)]

    flops = 2 * N * H * W * 9 * sum(seg_cs) * cout_p
    bytes_accessed = (sum(p.size * p.dtype.itemsize for p in padded)
                      + sum(w.size * w.dtype.itemsize for w in weights)
                      + N * H * W * cout_p * out_bytes)

    return pl.pallas_call(
        functools.partial(_conv3x3_kernel, n_seg=n_seg, relu=relu,
                          th=th, w_out=W),
        out_shape=jax.ShapeDtypeStruct((N, H, W, cout_p), out_dtype),
        grid_spec=pltpu.PrefetchScalarGridSpec(
            num_scalar_prefetch=0,
            grid=(N, H // th),
            in_specs=in_specs,
            out_specs=pl.BlockSpec((1, th, W, cout_p),
                                   lambda n, t: (n, t, 0, 0)),
            scratch_shapes=scratch,
        ),
        compiler_params=pltpu.CompilerParams(
            dimension_semantics=("parallel", "parallel"),
            vmem_limit_bytes=vmem_cap),
        cost_estimate=pl.CostEstimate(flops=flops, transcendentals=0,
                                      bytes_accessed=bytes_accessed),
    )(*args)


# ---------------------------------------------------------------------------
# unetUp forward built on the Pallas kernels
# ---------------------------------------------------------------------------
def unet_up_forward_nhwc(params, inputs0_nhwc, skip_nhwc, *,
                         out_dtype=jnp.bfloat16):
    """unetUp.forward (transpose_conv mode), NHWC in / NHWC out.
    Output has round_up(out_size, 128) channels; [..., :out_size] are real."""
    Cout = params["up_b"].shape[0]
    Ctot = params["conv1_w"].shape[1]
    Cskip = skip_nhwc.shape[-1]
    assert Cout + Cskip == Ctot
    cout_p = _round_up(Cout, _LANE)
    cskip_p = _round_up(Cskip, _LANE)
    ccat_p = _round_up(Ctot, _LANE)

    # 1) 2x2 / stride-2 transposed conv with fused bias + pixel shuffle.
    up = conv_transpose_2x2_s2(inputs0_nhwc, params["up_w"], params["up_b"],
                               cout_p=cout_p)

    # 2) conv1 + ReLU; torch.cat([up, skip], 1) is fused into the kernel.
    w1 = jnp.transpose(params["conv1_w"], (2, 3, 1, 0))        # (3,3,Ctot,Cout)
    b1 = _pad_last(params["conv1_b"], cout_p).astype(jnp.float32)
    if ccat_p < cout_p + cskip_p:
        # Pack the real up/skip channels into one lane-dense K segment
        # (halves conv1's K when both halves are small, e.g. 64 + 64).
        cat = jnp.concatenate(
            [up[..., :Cout], skip_nhwc.astype(jnp.bfloat16)], axis=-1)
        cat = _pad_last(cat, ccat_p)
        w1p = jnp.pad(w1, ((0, 0), (0, 0), (0, ccat_p - Ctot),
                           (0, cout_p - Cout))).astype(jnp.bfloat16)
        h = conv3x3_bias_act([cat], [w1p], b1,
                             out_dtype=jnp.bfloat16, relu=True)
    else:
        # Concat-free path: up and skip enter as two K segments accumulating
        # into one accumulator; the concatenated tensor never exists in HBM.
        skip_b = _pad_last(skip_nhwc.astype(jnp.bfloat16), cskip_p)
        w1_up = jnp.pad(w1[:, :, :Cout, :],
                        ((0, 0), (0, 0), (0, cout_p - Cout),
                         (0, cout_p - Cout))).astype(jnp.bfloat16)
        w1_sk = jnp.pad(w1[:, :, Cout:, :],
                        ((0, 0), (0, 0), (0, cskip_p - Cskip),
                         (0, cout_p - Cout))).astype(jnp.bfloat16)
        h = conv3x3_bias_act([up, skip_b], [w1_up, w1_sk], b1,
                             out_dtype=jnp.bfloat16, relu=True)

    # 3) conv2 + ReLU.
    w2 = jnp.pad(jnp.transpose(params["conv2_w"], (2, 3, 1, 0)),
                 ((0, 0), (0, 0), (0, cout_p - Cout),
                  (0, cout_p - Cout))).astype(jnp.bfloat16)
    b2 = _pad_last(params["conv2_b"], cout_p).astype(jnp.float32)
    return conv3x3_bias_act([h], [w2], b2, out_dtype=out_dtype, relu=True)


def unet_up_forward(params, inputs0_nchw, skip_nchw):
    """NCHW adapter matching torch semantics (f32 NCHW output).
    In a full decoder prefer unet_up_forward_nhwc and keep NHWC end to end."""
    x = jnp.transpose(inputs0_nchw, (0, 2, 3, 1))
    skip = jnp.transpose(skip_nchw, (0, 2, 3, 1))
    Cout = params["up_b"].shape[0]
    out = unet_up_forward_nhwc(params, x, skip, out_dtype=jnp.float32)
    return jnp.transpose(out[..., :Cout], (0, 3, 1, 2))


# ---------------------------------------------------------------------------
# Deterministic (kaiming-style) parameter init, matching the module's shapes
# ---------------------------------------------------------------------------
def init_params(key, in_size, out_size):
    ks = jax.random.split(key, 5)

    def kaiming(k, shape, fan_in):
        return (jnp.sqrt(2.0 / fan_in) * jax.random.normal(k, shape)).astype(jnp.float32)

    return {
        # nn.ConvTranspose2d(in_size, out_size, 2, 2): weight (Cin, Cout, 2, 2)
        "up_w": kaiming(ks[0], (in_size, out_size, 2, 2), in_size * 4),
        "up_b": jnp.zeros((out_size,), jnp.float32),
        # unetConv2(in_size, out_size, is_batchnorm=False)
        "conv1_w": kaiming(ks[1], (out_size, in_size, 3, 3), in_size * 9),
        "conv1_b": kaiming(ks[2], (out_size,), in_size * 9),
        "conv2_w": kaiming(ks[3], (out_size, out_size, 3, 3), out_size * 9),
        "conv2_b": kaiming(ks[4], (out_size,), out_size * 9),
    }


# ---------------------------------------------------------------------------
# Pure-JAX f32 reference (correctness check only)
# ---------------------------------------------------------------------------
def _ref_forward(params, inputs0_nchw, skip_nchw):
    x = jnp.transpose(inputs0_nchw, (0, 2, 3, 1))
    skip = jnp.transpose(skip_nchw, (0, 2, 3, 1))
    N, H, W, _ = x.shape
    wt = params["up_w"]
    Cout = wt.shape[1]
    t = jnp.einsum("nijc,coyx->niyjxo", x, wt)
    up = t.reshape(N, 2 * H, 2 * W, Cout) + params["up_b"]
    cat = jnp.concatenate([up, skip], axis=-1)

    def ref_conv(a, w, b):
        y = jax.lax.conv_general_dilated(
            a, w, window_strides=(1, 1), padding=((1, 1), (1, 1)),
            dimension_numbers=("NHWC", "OIHW", "NHWC"))
        return jnp.maximum(y + b, 0.0)

    h = ref_conv(cat, params["conv1_w"], params["conv1_b"])
    h = ref_conv(h, params["conv2_w"], params["conv2_b"])
    return jnp.transpose(h, (0, 3, 1, 2))


if __name__ == "__main__":
    def run_case(label, in_size, out_size, N, H, W, key):
        kp, k0, k1 = jax.random.split(key, 3)
        params = init_params(kp, in_size, out_size)
        inputs0 = jax.random.normal(k0, (N, in_size, H, W), jnp.float32)
        # skip has in_size - out_size channels so that cat -> in_size channels
        skip = jax.random.normal(k1, (N, in_size - out_size, 2 * H, 2 * W),
                                 jnp.float32)
        out = jax.jit(unet_up_forward)(params, inputs0, skip)
        out = jax.block_until_ready(out)
        assert out.shape == (N, out_size, 2 * H, 2 * W), (label, out.shape)
        # Kernels compute in bf16 (f32 MXU accumulation), reference is f32 ->
        # loose tolerances consistent with bf16 rounding.
        ref = _ref_forward(params, inputs0, skip)
        np.testing.assert_allclose(np.asarray(out), np.asarray(ref),
                                   rtol=5e-2, atol=7.5e-2, err_msg=label)

    key = jax.random.PRNGKey(0)
    k_a, k_b = jax.random.split(key)
    # packed-K conv1 path (both channel halves far below 128)
    run_case("packed", 8, 4, 2, 8, 8, k_a)
    # fused two-segment concat path (packing would save no padding)
    run_case("two_segment", 160, 96, 1, 8, 8, k_b)
    print("KERNEL_OK")
</pallas_src>

<mosaic_0001>
module attributes {stable_mosaic.version = 11 : i64} {
  func.func @_upconv2x2_kernel(%arg0: i32, %arg1: i32, %arg2: memref<1x4x8x128xbf16, #tpu.memory_space<vmem>>, %arg3: memref<128x512xbf16, #tpu.memory_space<vmem>>, %arg4: memref<1x512xf32, #tpu.memory_space<vmem>>, %arg5: memref<1x4x2x8x256xbf16, #tpu.memory_space<vmem>>) attributes {dimension_semantics = [#tpu.dimension_semantics<parallel>, #tpu.dimension_semantics<parallel>], iteration_bounds = array<i64: 2, 2>, scalar_prefetch = 0 : i64, scratch_operands = 0 : i64, tpu.core_type = #tpu.core_type<tc>, window_params = [{transform_indices = @transform_0, window_bounds = array<i64: 1, 4, 8, 128>}, {pipeline_mode = #tpu.pipeline_mode<synchronous>, transform_indices = @transform_1, window_bounds = array<i64: 128, 512>}, {pipeline_mode = #tpu.pipeline_mode<synchronous>, transform_indices = @transform_2, window_bounds = array<i64: 1, 512>}, {transform_indices = @transform_3, window_bounds = array<i64: 1, 4, 2, 8, 256>}]} {
    %c0 = arith.constant 0 : index
    %c0_0 = arith.constant 0 : index
    %c0_1 = arith.constant 0 : index
    %c0_2 = arith.constant 0 : index
    %0 = vector.load %arg2[%c0, %c0_0, %c0_1, %c0_2] : memref<1x4x8x128xbf16, #tpu.memory_space<vmem>>, vector<1x4x8x128xbf16>
    %1 = vector.shape_cast %0 : vector<1x4x8x128xbf16> to vector<4x8x128xbf16>
    %2 = vector.shape_cast %1 : vector<4x8x128xbf16> to vector<32x128xbf16>
    %c0_3 = arith.constant 0 : index
    %c0_4 = arith.constant 0 : index
    %3 = vector.load %arg3[%c0_3, %c0_4] : memref<128x512xbf16, #tpu.memory_space<vmem>>, vector<128x512xbf16>
    %cst = arith.constant dense<0.000000e+00> : vector<32x512xf32>
    %4 = tpu.matmul %2, %3, %cst {dimension_numbers = #tpu.dot_dimension_numbers<[1], [0], [0], [1], [0, 0, 1, 1], [], []>} : vector<32x128xbf16>, vector<128x512xbf16>, vector<32x512xf32> -> vector<32x512xf32>
    %c0_5 = arith.constant 0 : index
    %c0_6 = arith.constant 0 : index
    %5 = vector.load %arg4[%c0_5, %c0_6] : memref<1x512xf32, #tpu.memory_space<vmem>>, vector<1x512xf32>
    %6 = vector.broadcast %5 : vector<1x512xf32> to vector<32x512xf32>
    %7 = arith.addf %4, %6 : vector<32x512xf32>
    %8 = arith.truncf %7 : vector<32x512xf32> to vector<32x512xbf16>
    %9 = vector.shape_cast %8 : vector<32x512xbf16> to vector<4x8x512xbf16>
    %10 = vector.extract_strided_slice %9 {offsets = [0, 0, 0], sizes = [4, 8, 256], strides = [1, 1, 1]} : vector<4x8x512xbf16> to vector<4x8x256xbf16>
    %c0_7 = arith.constant 0 : index
    %c0_8 = arith.constant 0 : index
    %c0_9 = arith.constant 0 : index
    %c0_10 = arith.constant 0 : index
    %c0_11 = arith.constant 0 : index
    %11 = vector.load %arg5[%c0_7, %c0_8, %c0_9, %c0_10, %c0_11] : memref<1x4x2x8x256xbf16, #tpu.memory_space<vmem>>, vector<1x4x1x8x256xbf16>
    %12 = vector.shape_cast %11 : vector<1x4x1x8x256xbf16> to vector<4x8x256xbf16>
    %13 = vector.shape_cast %10 : vector<4x8x256xbf16> to vector<1x4x1x8x256xbf16>
    tpu.vector_store %arg5[%c0_7, %c0_8, %c0_9, %c0_10, %c0_11], %13 {strides = array<i32>} : memref<1x4x2x8x256xbf16, #tpu.memory_space<vmem>>, vector<1x4x1x8x256xbf16>,
    %14 = vector.extract_strided_slice %9 {offsets = [0, 0, 256], sizes = [4, 8, 256], strides = [1, 1, 1]} : vector<4x8x512xbf16> to vector<4x8x256xbf16>
    %c0_12 = arith.constant 0 : index
    %c0_13 = arith.constant 0 : index
    %c1 = arith.constant 1 : index
    %c0_14 = arith.constant 0 : index
    %c0_15 = arith.constant 0 : index
    %15 = vector.load %arg5[%c0_12, %c0_13, %c1, %c0_14, %c0_15] : memref<1x4x2x8x256xbf16, #tpu.memory_space<vmem>>, vector<1x4x1x8x256xbf16>
    %16 = vector.shape_cast %15 : vector<1x4x1x8x256xbf16> to vector<4x8x256xbf16>
    %17 = vector.shape_cast %14 : vector<4x8x256xbf16> to vector<1x4x1x8x256xbf16>
    tpu.vector_store %arg5[%c0_12, %c0_13, %c1, %c0_14, %c0_15], %17 {strides = array<i32>} : memref<1x4x2x8x256xbf16, #tpu.memory_space<vmem>>, vector<1x4x1x8x256xbf16>,
    return
  }
  func.func @transform_0(%arg0: i32, %arg1: i32) -> (i32, i32, i32, i32) {
    %c0_i32 = arith.constant 0 : i32
    %c0_i32_0 = arith.constant 0 : i32
    %c0_i32_1 = arith.constant 0 : i32
    return %arg0, %arg1, %c0_i32, %c0_i32_0 : i32, i32, i32, i32
  }
  func.func @transform_1(%arg0: i32, %arg1: i32) -> (i32, i32) {
    %c0_i32 = arith.constant 0 : i32
    %c0_i32_0 = arith.constant 0 : i32
    %c0_i32_1 = arith.constant 0 : i32
    return %c0_i32, %c0_i32_0 : i32, i32
  }
  func.func @transform_2(%arg0: i32, %arg1: i32) -> (i32, i32) {
    %c0_i32 = arith.constant 0 : i32
    %c0_i32_0 = arith.constant 0 : i32
    %c0_i32_1 = arith.constant 0 : i32
    return %c0_i32, %c0_i32_0 : i32, i32
  }
  func.func @transform_3(%arg0: i32, %arg1: i32) -> (i32, i32, i32, i32, i32) {
    %c0_i32 = arith.constant 0 : i32
    %c0_i32_0 = arith.constant 0 : i32
    %c0_i32_1 = arith.constant 0 : i32
    %c0_i32_2 = arith.constant 0 : i32
    return %arg0, %arg1, %c0_i32, %c0_i32_0, %c0_i32_1 : i32, i32, i32, i32, i32
  }
}

module attributes {stable_mosaic.version = 11 : i64} {
  func.func @_conv3x3_kernel(%arg0: i32, %arg1: i32, %arg2: memref<1x8x18x128xbf16, #tpu.memory_space<vmem>>, %arg3: memref<1x2x18x128xbf16, #tpu.memory_space<vmem>>, %arg4: memref<3x3x128x128xbf16, #tpu.memory_space<vmem>>, %arg5: memref<1x128xf32, #tpu.memory_space<vmem>>, %arg6: memref<1x8x16x128xbf16, #tpu.memory_space<vmem>>, %arg7: memref<10x18x128xbf16, #tpu.memory_space<vmem>>) attributes {dimension_semantics = [#tpu.dimension_semantics<parallel>, #tpu.dimension_semantics<parallel>], iteration_bounds = array<i64: 2, 2>, scalar_prefetch = 0 : i64, scratch_operands = 1 : i64, tpu.core_type = #tpu.core_type<tc>, window_params = [{transform_indices = @transform_0, window_bounds = array<i64: 1, 8, 18, 128>}, {transform_indices = @transform_1, window_bounds = array<i64: 1, 2, 18, 128>}, {pipeline_mode = #tpu.pipeline_mode<synchronous>, transform_indices = @transform_2, window_bounds = array<i64: 3, 3, 128, 128>}, {pipeline_mode = #tpu.pipeline_mode<synchronous>, transform_indices = @transform_3, window_bounds = array<i64: 1, 128>}, {transform_indices = @transform_4, window_bounds = array<i64: 1, 8, 16, 128>}]} {
    %cst = arith.constant 0.000000e+00 : f32
    %0 = vector.broadcast %cst : f32 to vector<128x128xf32>
    %c0 = arith.constant 0 : index
    %c0_0 = arith.constant 0 : index
    %c0_1 = arith.constant 0 : index
    %c0_2 = arith.constant 0 : index
    %1 = vector.load %arg2[%c0, %c0_0, %c0_1, %c0_2] : memref<1x8x18x128xbf16, #tpu.memory_space<vmem>>, vector<1x8x18x128xbf16>
    %2 = vector.shape_cast %1 : vector<1x8x18x128xbf16> to vector<8x18x128xbf16>
    %c0_3 = arith.constant 0 : index
    %c0_4 = arith.constant 0 : index
    %c0_5 = arith.constant 0 : index
    %3 = vector.load %arg7[%c0_3, %c0_4, %c0_5] : memref<10x18x128xbf16, #tpu.memory_space<vmem>>, vector<8x18x128xbf16>
    tpu.vector_store %arg7[%c0_3, %c0_4, %c0_5], %2 {strides = array<i32>} : memref<10x18x128xbf16, #tpu.memory_space<vmem>>, vector<8x18x128xbf16>,
    %c0_6 = arith.constant 0 : index
    %c0_7 = arith.constant 0 : index
    %c0_8 = arith.constant 0 : index
    %c0_9 = arith.constant 0 : index
    %4 = vector.load %arg3[%c0_6, %c0_7, %c0_8, %c0_9] : memref<1x2x18x128xbf16, #tpu.memory_space<vmem>>, vector<1x2x18x128xbf16>
    %5 = vector.shape_cast %4 : vector<1x2x18x128xbf16> to vector<2x18x128xbf16>
    %c8 = arith.constant 8 : index
    %c0_10 = arith.constant 0 : index
    %c0_11 = arith.constant 0 : index
    %6 = vector.load %arg7[%c8, %c0_10, %c0_11] : memref<10x18x128xbf16, #tpu.memory_space<vmem>>, vector<2x18x128xbf16>
    tpu.vector_store %arg7[%c8, %c0_10, %c0_11], %5 {strides = array<i32>} : memref<10x18x128xbf16, #tpu.memory_space<vmem>>, vector<2x18x128xbf16>,
    %c0_12 = arith.constant 0 : index
    %c0_13 = arith.constant 0 : index
    %c0_14 = arith.constant 0 : index
    %7 = vector.load %arg7[%c0_12, %c0_13, %c0_14] : memref<10x18x128xbf16, #tpu.memory_space<vmem>>, vector<8x16x128xbf16>
    %8 = vector.shape_cast %7 : vector<8x16x128xbf16> to vector<128x128xbf16>
    %c0_15 = arith.constant 0 : index
    %c0_16 = arith.constant 0 : index
    %c0_17 = arith.constant 0 : index
    %c0_18 = arith.constant 0 : index
    %9 = vector.load %arg4[%c0_15, %c0_16, %c0_17, %c0_18] : memref<3x3x128x128xbf16, #tpu.memory_space<vmem>>, vector<1x1x128x128xbf16>
    %10 = vector.shape_cast %9 : vector<1x1x128x128xbf16> to vector<128x128xbf16>
    %cst_19 = arith.constant dense<0.000000e+00> : vector<128x128xf32>
    %11 = tpu.matmul %8, %10, %cst_19 {dimension_numbers = #tpu.dot_dimension_numbers<[1], [0], [0], [1], [0, 0, 1, 1], [], []>} : vector<128x128xbf16>, vector<128x128xbf16>, vector<128x128xf32> -> vector<128x128xf32>
    %12 = arith.addf %0, %11 : vector<128x128xf32>
    %c0_20 = arith.constant 0 : index
    %c1 = arith.constant 1 : index
    %c0_21 = arith.constant 0 : index
    %13 = vector.load %arg7[%c0_20, %c1, %c0_21] : memref<10x18x128xbf16, #tpu.memory_space<vmem>>, vector<8x16x128xbf16>
    %14 = vector.shape_cast %13 : vector<8x16x128xbf16> to vector<128x128xbf16>
    %c0_22 = arith.constant 0 : index
    %c1_23 = arith.constant 1 : index
    %c0_24 = arith.constant 0 : index
    %c0_25 = arith.constant 0 : index
    %15 = vector.load %arg4[%c0_22, %c1_23, %c0_24, %c0_25] : memref<3x3x128x128xbf16, #tpu.memory_space<vmem>>, vector<1x1x128x128xbf16>
    %16 = vector.shape_cast %15 : vector<1x1x128x128xbf16> to vector<128x128xbf16>
    %cst_26 = arith.constant dense<0.000000e+00> : vector<128x128xf32>
    %17 = tpu.matmul %14, %16, %cst_26 {dimension_numbers = #tpu.dot_dimension_numbers<[1], [0], [0], [1], [0, 0, 1, 1], [], []>} : vector<128x128xbf16>, vector<128x128xbf16>, vector<128x128xf32> -> vector<128x128xf32>
    %18 = arith.addf %12, %17 : vector<128x128xf32>
    %c0_27 = arith.constant 0 : index
    %c2 = arith.constant 2 : index
    %c0_28 = arith.constant 0 : index
    %19 = vector.load %arg7[%c0_27, %c2, %c0_28] : memref<10x18x128xbf16, #tpu.memory_space<vmem>>, vector<8x16x128xbf16>
    %20 = vector.shape_cast %19 : vector<8x16x128xbf16> to vector<128x128xbf16>
    %c0_29 = arith.constant 0 : index
    %c2_30 = arith.constant 2 : index
    %c0_31 = arith.constant 0 : index
    %c0_32 = arith.constant 0 : index
    %21 = vector.load %arg4[%c0_29, %c2_30, %c0_31, %c0_32] : memref<3x3x128x128xbf16, #tpu.memory_space<vmem>>, vector<1x1x128x128xbf16>
    %22 = vector.shape_cast %21 : vector<1x1x128x128xbf16> to vector<128x128xbf16>
    %cst_33 = arith.constant dense<0.000000e+00> : vector<128x128xf32>
    %23 = tpu.matmul %20, %22, %cst_33 {dimension_numbers = #tpu.dot_dimension_numbers<[1], [0], [0], [1], [0, 0, 1, 1], [], []>} : vector<128x128xbf16>, vector<128x128xbf16>, vector<128x128xf32> -> vector<128x128xf32>
    %24 = arith.addf %18, %23 : vector<128x128xf32>
    %c1_34 = arith.constant 1 : index
    %c0_35 = arith.constant 0 : index
    %c0_36 = arith.constant 0 : index
    %25 = vector.load %arg7[%c1_34, %c0_35, %c0_36] : memref<10x18x128xbf16, #tpu.memory_space<vmem>>, vector<8x16x128xbf16>
    %26 = vector.shape_cast %25 : vector<8x16x128xbf16> to vector<128x128xbf16>
    %c1_37 = arith.constant 1 : index
    %c0_38 = arith.constant 0 : index
    %c0_39 = arith.constant 0 : index
    %c0_40 = arith.constant 0 : index
    %27 = vector.load %arg4[%c1_37, %c0_38, %c0_39, %c0_40] : memref<3x3x128x128xbf16, #tpu.memory_space<vmem>>, vector<1x1x128x128xbf16>
    %28 = vector.shape_cast %27 : vector<1x1x128x128xbf16> to vector<128x128xbf16>
    %cst_41 = arith.constant dense<0.000000e+00> : vector<128x128xf32>
    %29 = tpu.matmul %26, %28, %cst_41 {dimension_numbers = #tpu.dot_dimension_numbers<[1], [0], [0], [1], [0, 0, 1, 1], [], []>} : vector<128x128xbf16>, vector<128x128xbf16>, vector<128x128xf32> -> vector<128x128xf32>
    %30 = arith.addf %24, %29 : vector<128x128xf32>
    %c1_42 = arith.constant 1 : index
    %c1_43 = arith.constant 1 : index
    %c0_44 = arith.constant 0 : index
    %31 = vector.load %arg7[%c1_42, %c1_43, %c0_44] : memref<10x18x128xbf16, #tpu.memory_space<vmem>>, vector<8x16x128xbf16>
    %32 = vector.shape_cast %31 : vector<8x16x128xbf16> to vector<128x128xbf16>
    %c1_45 = arith.constant 1 : index
    %c1_46 = arith.constant 1 : index
    %c0_47 = arith.constant 0 : index
    %c0_48 = arith.constant 0 : index
    %33 = vector.load %arg4[%c1_45, %c1_46, %c0_47, %c0_48] : memref<3x3x128x128xbf16, #tpu.memory_space<vmem>>, vector<1x1x128x128xbf16>
    %34 = vector.shape_cast %33 : vector<1x1x128x128xbf16> to vector<128x128xbf16>
    %cst_49 = arith.constant dense<0.000000e+00> : vector<128x128xf32>
    %35 = tpu.matmul %32, %34, %cst_49 {dimension_numbers = #tpu.dot_dimension_numbers<[1], [0], [0], [1], [0, 0, 1, 1], [], []>} : vector<128x128xbf16>, vector<128x128xbf16>, vector<128x128xf32> -> vector<128x128xf32>
    %36 = arith.addf %30, %35 : vector<128x128xf32>
    %c1_50 = arith.constant 1 : index
    %c2_51 = arith.constant 2 : index
    %c0_52 = arith.constant 0 : index
    %37 = vector.load %arg7[%c1_50, %c2_51, %c0_52] : memref<10x18x128xbf16, #tpu.memory_space<vmem>>, vector<8x16x128xbf16>
    %38 = vector.shape_cast %37 : vector<8x16x128xbf16> to vector<128x128xbf16>
    %c1_53 = arith.constant 1 : index
    %c2_54 = arith.constant 2 : index
    %c0_55 = arith.constant 0 : index
    %c0_56 = arith.constant 0 : index
    %39 = vector.load %arg4[%c1_53, %c2_54, %c0_55, %c0_56] : memref<3x3x128x128xbf16, #tpu.memory_space<vmem>>, vector<1x1x128x128xbf16>
    %40 = vector.shape_cast %39 : vector<1x1x128x128xbf16> to vector<128x128xbf16>
    %cst_57 = arith.constant dense<0.000000e+00> : vector<128x128xf32>
    %41 = tpu.matmul %38, %40, %cst_57 {dimension_numbers = #tpu.dot_dimension_numbers<[1], [0], [0], [1], [0, 0, 1, 1], [], []>} : vector<128x128xbf16>, vector<128x128xbf16>, vector<128x128xf32> -> vector<128x128xf32>
    %42 = arith.addf %36, %41 : vector<128x128xf32>
    %c2_58 = arith.constant 2 : index
    %c0_59 = arith.constant 0 : index
    %c0_60 = arith.constant 0 : index
    %43 = vector.load %arg7[%c2_58, %c0_59, %c0_60] : memref<10x18x128xbf16, #tpu.memory_space<vmem>>, vector<8x16x128xbf16>
    %44 = vector.shape_cast %43 : vector<8x16x128xbf16> to vector<128x128xbf16>
    %c2_61 = arith.constant 2 : index
    %c0_62 = arith.constant 0 : index
    %c0_63 = arith.constant 0 : index
    %c0_64 = arith.constant 0 : index
    %45 = vector.load %arg4[%c2_61, %c0_62, %c0_63, %c0_64] : memref<3x3x128x128xbf16, #tpu.memory_space<vmem>>, vector<1x1x128x128xbf16>
    %46 = vector.shape_cast %45 : vector<1x1x128x128xbf16> to vector<128x128xbf16>
    %cst_65 = arith.constant dense<0.000000e+00> : vector<128x128xf32>
    %47 = tpu.matmul %44, %46, %cst_65 {dimension_numbers = #tpu.dot_dimension_numbers<[1], [0], [0], [1], [0, 0, 1, 1], [], []>} : vector<128x128xbf16>, vector<128x128xbf16>, vector<128x128xf32> -> vector<128x128xf32>
    %48 = arith.addf %42, %47 : vector<128x128xf32>
    %c2_66 = arith.constant 2 : index
    %c1_67 = arith.constant 1 : index
    %c0_68 = arith.constant 0 : index
    %49 = vector.load %arg7[%c2_66, %c1_67, %c0_68] : memref<10x18x128xbf16, #tpu.memory_space<vmem>>, vector<8x16x128xbf16>
    %50 = vector.shape_cast %49 : vector<8x16x128xbf16> to vector<128x128xbf16>
    %c2_69 = arith.constant 2 : index
    %c1_70 = arith.constant 1 : index
    %c0_71 = arith.constant 0 : index
    %c0_72 = arith.constant 0 : index
    %51 = vector.load %arg4[%c2_69, %c1_70, %c0_71, %c0_72] : memref<3x3x128x128xbf16, #tpu.memory_space<vmem>>, vector<1x1x128x128xbf16>
    %52 = vector.shape_cast %51 : vector<1x1x128x128xbf16> to vector<128x128xbf16>
    %cst_73 = arith.constant dense<0.000000e+00> : vector<128x128xf32>
    %53 = tpu.matmul %50, %52, %cst_73 {dimension_numbers = #tpu.dot_dimension_numbers<[1], [0], [0], [1], [0, 0, 1, 1], [], []>} : vector<128x128xbf16>, vector<128x128xbf16>, vector<128x128xf32> -> vector<128x128xf32>
    %54 = arith.addf %48, %53 : vector<128x128xf32>
    %c2_74 = arith.constant 2 : index
    %c2_75 = arith.constant 2 : index
    %c0_76 = arith.constant 0 : index
    %55 = vector.load %arg7[%c2_74, %c2_75, %c0_76] : memref<10x18x128xbf16, #tpu.memory_space<vmem>>, vector<8x16x128xbf16>
    %56 = vector.shape_cast %55 : vector<8x16x128xbf16> to vector<128x128xbf16>
    %c2_77 = arith.constant 2 : index
    %c2_78 = arith.constant 2 : index
    %c0_79 = arith.constant 0 : index
    %c0_80 = arith.constant 0 : index
    %57 = vector.load %arg4[%c2_77, %c2_78, %c0_79, %c0_80] : memref<3x3x128x128xbf16, #tpu.memory_space<vmem>>, vector<1x1x128x128xbf16>
    %58 = vector.shape_cast %57 : vector<1x1x128x128xbf16> to vector<128x128xbf16>
    %cst_81 = arith.constant dense<0.000000e+00> : vector<128x128xf32>
    %59 = tpu.matmul %56, %58, %cst_81 {dimension_numbers = #tpu.dot_dimension_numbers<[1], [0], [0], [1], [0, 0, 1, 1], [], []>} : vector<128x128xbf16>, vector<128x128xbf16>, vector<128x128xf32> -> vector<128x128xf32>
    %60 = arith.addf %54, %59 : vector<128x128xf32>
    %c0_82 = arith.constant 0 : index
    %c0_83 = arith.constant 0 : index
    %61 = vector.load %arg5[%c0_82, %c0_83] : memref<1x128xf32, #tpu.memory_space<vmem>>, vector<1x128xf32>
    %62 = vector.broadcast %61 : vector<1x128xf32> to vector<128x128xf32>
    %63 = arith.addf %60, %62 : vector<128x128xf32>
    %cst_84 = arith.constant 0.000000e+00 : f32
    %64 = vector.broadcast %cst_84 : f32 to vector<128x128xf32>
    %65 = arith.maximumf %63, %64 : vector<128x128xf32>
    %66 = vector.shape_cast %65 : vector<128x128xf32> to vector<8x16x128xf32>
    %67 = arith.truncf %66 : vector<8x16x128xf32> to vector<8x16x128xbf16>
    %c0_85 = arith.constant 0 : index
    %c0_86 = arith.constant 0 : index
    %c0_87 = arith.constant 0 : index
    %c0_88 = arith.constant 0 : index
    %68 = vector.load %arg6[%c0_85, %c0_86, %c0_87, %c0_88] : memref<1x8x16x128xbf16, #tpu.memory_space<vmem>>, vector<1x8x16x128xbf16>
    %69 = vector.shape_cast %68 : vector<1x8x16x128xbf16> to vector<8x16x128xbf16>
    %70 = vector.shape_cast %67 : vector<8x16x128xbf16> to vector<1x8x16x128xbf16>
    tpu.vector_store %arg6[%c0_85, %c0_86, %c0_87, %c0_88], %70 {strides = array<i32>} : memref<1x8x16x128xbf16, #tpu.memory_space<vmem>>, vector<1x8x16x128xbf16>,
    return
  }
  func.func @transform_0(%arg0: i32, %arg1: i32) -> (i32, i32, i32, i32) {
    %c0_i32 = arith.constant 0 : i32
    %c0_i32_0 = arith.constant 0 : i32
    %c0_i32_1 = arith.constant 0 : i32
    return %arg0, %arg1, %c0_i32, %c0_i32_0 : i32, i32, i32, i32
  }
  func.func @transform_1(%arg0: i32, %arg1: i32) -> (i32, i32, i32, i32) {
    %c1_i32 = arith.constant 1 : i32
    %0 = arith.addi %arg1, %c1_i32 : i32
    %c4_i32 = arith.constant 4 : i32
    %1 = arith.muli %0, %c4_i32 : i32
    %c0_i32 = arith.constant 0 : i32
    %c0_i32_0 = arith.constant 0 : i32
    %c0_i32_1 = arith.constant 0 : i32
    return %arg0, %1, %c0_i32, %c0_i32_0 : i32, i32, i32, i32
  }
  func.func @transform_2(%arg0: i32, %arg1: i32) -> (i32, i32, i32, i32) {
    %c0_i32 = arith.constant 0 : i32
    %c0_i32_0 = arith.constant 0 : i32
    %c0_i32_1 = arith.constant 0 : i32
    %c0_i32_2 = arith.constant 0 : i32
    %c0_i32_3 = arith.constant 0 : i32
    return %c0_i32, %c0_i32_0, %c0_i32_1, %c0_i32_2 : i32, i32, i32, i32
  }
  func.func @transform_3(%arg0: i32, %arg1: i32) -> (i32, i32) {
    %c0_i32 = arith.constant 0 : i32
    %c0_i32_0 = arith.constant 0 : i32
    %c0_i32_1 = arith.constant 0 : i32
    return %c0_i32, %c0_i32_0 : i32, i32
  }
  func.func @transform_4(%arg0: i32, %arg1: i32) -> (i32, i32, i32, i32) {
    %c0_i32 = arith.constant 0 : i32
    %c0_i32_0 = arith.constant 0 : i32
    %c0_i32_1 = arith.constant 0 : i32
    return %arg0, %arg1, %c0_i32, %c0_i32_0 : i32, i32, i32, i32
  }
}

module attributes {stable_mosaic.version = 11 : i64} {
  func.func @_conv3x3_kernel(%arg0: i32, %arg1: i32, %arg2: memref<1x8x18x128xbf16, #tpu.memory_space<vmem>>, %arg3: memref<1x2x18x128xbf16, #tpu.memory_space<vmem>>, %arg4: memref<3x3x128x128xbf16, #tpu.memory_space<vmem>>, %arg5: memref<1x128xf32, #tpu.memory_space<vmem>>, %arg6: memref<1x8x16x128xf32, #tpu.memory_space<vmem>>, %arg7: memref<10x18x128xbf16, #tpu.memory_space<vmem>>) attributes {dimension_semantics = [#tpu.dimension_semantics<parallel>, #tpu.dimension_semantics<parallel>], iteration_bounds = array<i64: 2, 2>, scalar_prefetch = 0 : i64, scratch_operands = 1 : i64, tpu.core_type = #tpu.core_type<tc>, window_params = [{transform_indices = @transform_0, window_bounds = array<i64: 1, 8, 18, 128>}, {transform_indices = @transform_1, window_bounds = array<i64: 1, 2, 18, 128>}, {pipeline_mode = #tpu.pipeline_mode<synchronous>, transform_indices = @transform_2, window_bounds = array<i64: 3, 3, 128, 128>}, {pipeline_mode = #tpu.pipeline_mode<synchronous>, transform_indices = @transform_3, window_bounds = array<i64: 1, 128>}, {transform_indices = @transform_4, window_bounds = array<i64: 1, 8, 16, 128>}]} {
    %cst = arith.constant 0.000000e+00 : f32
    %0 = vector.broadcast %cst : f32 to vector<128x128xf32>
    %c0 = arith.constant 0 : index
    %c0_0 = arith.constant 0 : index
    %c0_1 = arith.constant 0 : index
    %c0_2 = arith.constant 0 : index
    %1 = vector.load %arg2[%c0, %c0_0, %c0_1, %c0_2] : memref<1x8x18x128xbf16, #tpu.memory_space<vmem>>, vector<1x8x18x128xbf16>
    %2 = vector.shape_cast %1 : vector<1x8x18x128xbf16> to vector<8x18x128xbf16>
    %c0_3 = arith.constant 0 : index
    %c0_4 = arith.constant 0 : index
    %c0_5 = arith.constant 0 : index
    %3 = vector.load %arg7[%c0_3, %c0_4, %c0_5] : memref<10x18x128xbf16, #tpu.memory_space<vmem>>, vector<8x18x128xbf16>
    tpu.vector_store %arg7[%c0_3, %c0_4, %c0_5], %2 {strides = array<i32>} : memref<10x18x128xbf16, #tpu.memory_space<vmem>>, vector<8x18x128xbf16>,
    %c0_6 = arith.constant 0 : index
    %c0_7 = arith.constant 0 : index
    %c0_8 = arith.constant 0 : index
    %c0_9 = arith.constant 0 : index
    %4 = vector.load %arg3[%c0_6, %c0_7, %c0_8, %c0_9] : memref<1x2x18x128xbf16, #tpu.memory_space<vmem>>, vector<1x2x18x128xbf16>
    %5 = vector.shape_cast %4 : vector<1x2x18x128xbf16> to vector<2x18x128xbf16>
    %c8 = arith.constant 8 : index
    %c0_10 = arith.constant 0 : index
    %c0_11 = arith.constant 0 : index
    %6 = vector.load %arg7[%c8, %c0_10, %c0_11] : memref<10x18x128xbf16, #tpu.memory_space<vmem>>, vector<2x18x128xbf16>
    tpu.vector_store %arg7[%c8, %c0_10, %c0_11], %5 {strides = array<i32>} : memref<10x18x128xbf16, #tpu.memory_space<vmem>>, vector<2x18x128xbf16>,
    %c0_12 = arith.constant 0 : index
    %c0_13 = arith.constant 0 : index
    %c0_14 = arith.constant 0 : index
    %7 = vector.load %arg7[%c0_12, %c0_13, %c0_14] : memref<10x18x128xbf16, #tpu.memory_space<vmem>>, vector<8x16x128xbf16>
    %8 = vector.shape_cast %7 : vector<8x16x128xbf16> to vector<128x128xbf16>
    %c0_15 = arith.constant 0 : index
    %c0_16 = arith.constant 0 : index
    %c0_17 = arith.constant 0 : index
    %c0_18 = arith.constant 0 : index
    %9 = vector.load %arg4[%c0_15, %c0_16, %c0_17, %c0_18] : memref<3x3x128x128xbf16, #tpu.memory_space<vmem>>, vector<1x1x128x128xbf16>
    %10 = vector.shape_cast %9 : vector<1x1x128x128xbf16> to vector<128x128xbf16>
    %cst_19 = arith.constant dense<0.000000e+00> : vector<128x128xf32>
    %11 = tpu.matmul %8, %10, %cst_19 {dimension_numbers = #tpu.dot_dimension_numbers<[1], [0], [0], [1], [0, 0, 1, 1], [], []>} : vector<128x128xbf16>, vector<128x128xbf16>, vector<128x128xf32> -> vector<128x128xf32>
    %12 = arith.addf %0, %11 : vector<128x128xf32>
    %c0_20 = arith.constant 0 : index
    %c1 = arith.constant 1 : index
    %c0_21 = arith.constant 0 : index
    %13 = vector.load %arg7[%c0_20, %c1, %c0_21] : memref<10x18x128xbf16, #tpu.memory_space<vmem>>, vector<8x16x128xbf16>
    %14 = vector.shape_cast %13 : vector<8x16x128xbf16> to vector<128x128xbf16>
    %c0_22 = arith.constant 0 : index
    %c1_23 = arith.constant 1 : index
    %c0_24 = arith.constant 0 : index
    %c0_25 = arith.constant 0 : index
    %15 = vector.load %arg4[%c0_22, %c1_23, %c0_24, %c0_25] : memref<3x3x128x128xbf16, #tpu.memory_space<vmem>>, vector<1x1x128x128xbf16>
    %16 = vector.shape_cast %15 : vector<1x1x128x128xbf16> to vector<128x128xbf16>
    %cst_26 = arith.constant dense<0.000000e+00> : vector<128x128xf32>
    %17 = tpu.matmul %14, %16, %cst_26 {dimension_numbers = #tpu.dot_dimension_numbers<[1], [0], [0], [1], [0, 0, 1, 1], [], []>} : vector<128x128xbf16>, vector<128x128xbf16>, vector<128x128xf32> -> vector<128x128xf32>
    %18 = arith.addf %12, %17 : vector<128x128xf32>
    %c0_27 = arith.constant 0 : index
    %c2 = arith.constant 2 : index
    %c0_28 = arith.constant 0 : index
    %19 = vector.load %arg7[%c0_27, %c2, %c0_28] : memref<10x18x128xbf16, #tpu.memory_space<vmem>>, vector<8x16x128xbf16>
    %20 = vector.shape_cast %19 : vector<8x16x128xbf16> to vector<128x128xbf16>
    %c0_29 = arith.constant 0 : index
    %c2_30 = arith.constant 2 : index
    %c0_31 = arith.constant 0 : index
    %c0_32 = arith.constant 0 : index
    %21 = vector.load %arg4[%c0_29, %c2_30, %c0_31, %c0_32] : memref<3x3x128x128xbf16, #tpu.memory_space<vmem>>, vector<1x1x128x128xbf16>
    %22 = vector.shape_cast %21 : vector<1x1x128x128xbf16> to vector<128x128xbf16>
    %cst_33 = arith.constant dense<0.000000e+00> : vector<128x128xf32>
    %23 = tpu.matmul %20, %22, %cst_33 {dimension_numbers = #tpu.dot_dimension_numbers<[1], [0], [0], [1], [0, 0, 1, 1], [], []>} : vector<128x128xbf16>, vector<128x128xbf16>, vector<128x128xf32> -> vector<128x128xf32>
    %24 = arith.addf %18, %23 : vector<128x128xf32>
    %c1_34 = arith.constant 1 : index
    %c0_35 = arith.constant 0 : index
    %c0_36 = arith.constant 0 : index
    %25 = vector.load %arg7[%c1_34, %c0_35, %c0_36] : memref<10x18x128xbf16, #tpu.memory_space<vmem>>, vector<8x16x128xbf16>
    %26 = vector.shape_cast %25 : vector<8x16x128xbf16> to vector<128x128xbf16>
    %c1_37 = arith.constant 1 : index
    %c0_38 = arith.constant 0 : index
    %c0_39 = arith.constant 0 : index
    %c0_40 = arith.constant 0 : index
    %27 = vector.load %arg4[%c1_37, %c0_38, %c0_39, %c0_40] : memref<3x3x128x128xbf16, #tpu.memory_space<vmem>>, vector<1x1x128x128xbf16>
    %28 = vector.shape_cast %27 : vector<1x1x128x128xbf16> to vector<128x128xbf16>
    %cst_41 = arith.constant dense<0.000000e+00> : vector<128x128xf32>
    %29 = tpu.matmul %26, %28, %cst_41 {dimension_numbers = #tpu.dot_dimension_numbers<[1], [0], [0], [1], [0, 0, 1, 1], [], []>} : vector<128x128xbf16>, vector<128x128xbf16>, vector<128x128xf32> -> vector<128x128xf32>
    %30 = arith.addf %24, %29 : vector<128x128xf32>
    %c1_42 = arith.constant 1 : index
    %c1_43 = arith.constant 1 : index
    %c0_44 = arith.constant 0 : index
    %31 = vector.load %arg7[%c1_42, %c1_43, %c0_44] : memref<10x18x128xbf16, #tpu.memory_space<vmem>>, vector<8x16x128xbf16>
    %32 = vector.shape_cast %31 : vector<8x16x128xbf16> to vector<128x128xbf16>
    %c1_45 = arith.constant 1 : index
    %c1_46 = arith.constant 1 : index
    %c0_47 = arith.constant 0 : index
    %c0_48 = arith.constant 0 : index
    %33 = vector.load %arg4[%c1_45, %c1_46, %c0_47, %c0_48] : memref<3x3x128x128xbf16, #tpu.memory_space<vmem>>, vector<1x1x128x128xbf16>
    %34 = vector.shape_cast %33 : vector<1x1x128x128xbf16> to vector<128x128xbf16>
    %cst_49 = arith.constant dense<0.000000e+00> : vector<128x128xf32>
    %35 = tpu.matmul %32, %34, %cst_49 {dimension_numbers = #tpu.dot_dimension_numbers<[1], [0], [0], [1], [0, 0, 1, 1], [], []>} : vector<128x128xbf16>, vector<128x128xbf16>, vector<128x128xf32> -> vector<128x128xf32>
    %36 = arith.addf %30, %35 : vector<128x128xf32>
    %c1_50 = arith.constant 1 : index
    %c2_51 = arith.constant 2 : index
    %c0_52 = arith.constant 0 : index
    %37 = vector.load %arg7[%c1_50, %c2_51, %c0_52] : memref<10x18x128xbf16, #tpu.memory_space<vmem>>, vector<8x16x128xbf16>
    %38 = vector.shape_cast %37 : vector<8x16x128xbf16> to vector<128x128xbf16>
    %c1_53 = arith.constant 1 : index
    %c2_54 = arith.constant 2 : index
    %c0_55 = arith.constant 0 : index
    %c0_56 = arith.constant 0 : index
    %39 = vector.load %arg4[%c1_53, %c2_54, %c0_55, %c0_56] : memref<3x3x128x128xbf16, #tpu.memory_space<vmem>>, vector<1x1x128x128xbf16>
    %40 = vector.shape_cast %39 : vector<1x1x128x128xbf16> to vector<128x128xbf16>
    %cst_57 = arith.constant dense<0.000000e+00> : vector<128x128xf32>
    %41 = tpu.matmul %38, %40, %cst_57 {dimension_numbers = #tpu.dot_dimension_numbers<[1], [0], [0], [1], [0, 0, 1, 1], [], []>} : vector<128x128xbf16>, vector<128x128xbf16>, vector<128x128xf32> -> vector<128x128xf32>
    %42 = arith.addf %36, %41 : vector<128x128xf32>
    %c2_58 = arith.constant 2 : index
    %c0_59 = arith.constant 0 : index
    %c0_60 = arith.constant 0 : index
    %43 = vector.load %arg7[%c2_58, %c0_59, %c0_60] : memref<10x18x128xbf16, #tpu.memory_space<vmem>>, vector<8x16x128xbf16>
    %44 = vector.shape_cast %43 : vector<8x16x128xbf16> to vector<128x128xbf16>
    %c2_61 = arith.constant 2 : index
    %c0_62 = arith.constant 0 : index
    %c0_63 = arith.constant 0 : index
    %c0_64 = arith.constant 0 : index
    %45 = vector.load %arg4[%c2_61, %c0_62, %c0_63, %c0_64] : memref<3x3x128x128xbf16, #tpu.memory_space<vmem>>, vector<1x1x128x128xbf16>
    %46 = vector.shape_cast %45 : vector<1x1x128x128xbf16> to vector<128x128xbf16>
    %cst_65 = arith.constant dense<0.000000e+00> : vector<128x128xf32>
    %47 = tpu.matmul %44, %46, %cst_65 {dimension_numbers = #tpu.dot_dimension_numbers<[1], [0], [0], [1], [0, 0, 1, 1], [], []>} : vector<128x128xbf16>, vector<128x128xbf16>, vector<128x128xf32> -> vector<128x128xf32>
    %48 = arith.addf %42, %47 : vector<128x128xf32>
    %c2_66 = arith.constant 2 : index
    %c1_67 = arith.constant 1 : index
    %c0_68 = arith.constant 0 : index
    %49 = vector.load %arg7[%c2_66, %c1_67, %c0_68] : memref<10x18x128xbf16, #tpu.memory_space<vmem>>, vector<8x16x128xbf16>
    %50 = vector.shape_cast %49 : vector<8x16x128xbf16> to vector<128x128xbf16>
    %c2_69 = arith.constant 2 : index
    %c1_70 = arith.constant 1 : index
    %c0_71 = arith.constant 0 : index
    %c0_72 = arith.constant 0 : index
    %51 = vector.load %arg4[%c2_69, %c1_70, %c0_71, %c0_72] : memref<3x3x128x128xbf16, #tpu.memory_space<vmem>>, vector<1x1x128x128xbf16>
    %52 = vector.shape_cast %51 : vector<1x1x128x128xbf16> to vector<128x128xbf16>
    %cst_73 = arith.constant dense<0.000000e+00> : vector<128x128xf32>
    %53 = tpu.matmul %50, %52, %cst_73 {dimension_numbers = #tpu.dot_dimension_numbers<[1], [0], [0], [1], [0, 0, 1, 1], [], []>} : vector<128x128xbf16>, vector<128x128xbf16>, vector<128x128xf32> -> vector<128x128xf32>
    %54 = arith.addf %48, %53 : vector<128x128xf32>
    %c2_74 = arith.constant 2 : index
    %c2_75 = arith.constant 2 : index
    %c0_76 = arith.constant 0 : index
    %55 = vector.load %arg7[%c2_74, %c2_75, %c0_76] : memref<10x18x128xbf16, #tpu.memory_space<vmem>>, vector<8x16x128xbf16>
    %56 = vector.shape_cast %55 : vector<8x16x128xbf16> to vector<128x128xbf16>
    %c2_77 = arith.constant 2 : index
    %c2_78 = arith.constant 2 : index
    %c0_79 = arith.constant 0 : index
    %c0_80 = arith.constant 0 : index
    %57 = vector.load %arg4[%c2_77, %c2_78, %c0_79, %c0_80] : memref<3x3x128x128xbf16, #tpu.memory_space<vmem>>, vector<1x1x128x128xbf16>
    %58 = vector.shape_cast %57 : vector<1x1x128x128xbf16> to vector<128x128xbf16>
    %cst_81 = arith.constant dense<0.000000e+00> : vector<128x128xf32>
    %59 = tpu.matmul %56, %58, %cst_81 {dimension_numbers = #tpu.dot_dimension_numbers<[1], [0], [0], [1], [0, 0, 1, 1], [], []>} : vector<128x128xbf16>, vector<128x128xbf16>, vector<128x128xf32> -> vector<128x128xf32>
    %60 = arith.addf %54, %59 : vector<128x128xf32>
    %c0_82 = arith.constant 0 : index
    %c0_83 = arith.constant 0 : index
    %61 = vector.load %arg5[%c0_82, %c0_83] : memref<1x128xf32, #tpu.memory_space<vmem>>, vector<1x128xf32>
    %62 = vector.broadcast %61 : vector<1x128xf32> to vector<128x128xf32>
    %63 = arith.addf %60, %62 : vector<128x128xf32>
    %cst_84 = arith.constant 0.000000e+00 : f32
    %64 = vector.broadcast %cst_84 : f32 to vector<128x128xf32>
    %65 = arith.maximumf %63, %64 : vector<128x128xf32>
    %66 = vector.shape_cast %65 : vector<128x128xf32> to vector<8x16x128xf32>
    %c0_85 = arith.constant 0 : index
    %c0_86 = arith.constant 0 : index
    %c0_87 = arith.constant 0 : index
    %c0_88 = arith.constant 0 : index
    %67 = vector.load %arg6[%c0_85, %c0_86, %c0_87, %c0_88] : memref<1x8x16x128xf32, #tpu.memory_space<vmem>>, vector<1x8x16x128xf32>
    %68 = vector.shape_cast %67 : vector<1x8x16x128xf32> to vector<8x16x128xf32>
    %69 = vector.shape_cast %66 : vector<8x16x128xf32> to vector<1x8x16x128xf32>
    tpu.vector_store %arg6[%c0_85, %c0_86, %c0_87, %c0_88], %69 {strides = array<i32>} : memref<1x8x16x128xf32, #tpu.memory_space<vmem>>, vector<1x8x16x128xf32>,
    return
  }
  func.func @transform_0(%arg0: i32, %arg1: i32) -> (i32, i32, i32, i32) {
    %c0_i32 = arith.constant 0 : i32
    %c0_i32_0 = arith.constant 0 : i32
    %c0_i32_1 = arith.constant 0 : i32
    return %arg0, %arg1, %c0_i32, %c0_i32_0 : i32, i32, i32, i32
  }
  func.func @transform_1(%arg0: i32, %arg1: i32) -> (i32, i32, i32, i32) {
    %c1_i32 = arith.constant 1 : i32
    %0 = arith.addi %arg1, %c1_i32 : i32
    %c4_i32 = arith.constant 4 : i32
    %1 = arith.muli %0, %c4_i32 : i32
    %c0_i32 = arith.constant 0 : i32
    %c0_i32_0 = arith.constant 0 : i32
    %c0_i32_1 = arith.constant 0 : i32
    return %arg0, %1, %c0_i32, %c0_i32_0 : i32, i32, i32, i32
  }
  func.func @transform_2(%arg0: i32, %arg1: i32) -> (i32, i32, i32, i32) {
    %c0_i32 = arith.constant 0 : i32
    %c0_i32_0 = arith.constant 0 : i32
    %c0_i32_1 = arith.constant 0 : i32
    %c0_i32_2 = arith.constant 0 : i32
    %c0_i32_3 = arith.constant 0 : i32
    return %c0_i32, %c0_i32_0, %c0_i32_1, %c0_i32_2 : i32, i32, i32, i32
  }
  func.func @transform_3(%arg0: i32, %arg1: i32) -> (i32, i32) {
    %c0_i32 = arith.constant 0 : i32
    %c0_i32_0 = arith.constant 0 : i32
    %c0_i32_1 = arith.constant 0 : i32
    return %c0_i32, %c0_i32_0 : i32, i32
  }
  func.func @transform_4(%arg0: i32, %arg1: i32) -> (i32, i32, i32, i32) {
    %c0_i32 = arith.constant 0 : i32
    %c0_i32_0 = arith.constant 0 : i32
    %c0_i32_1 = arith.constant 0 : i32
    return %arg0, %arg1, %c0_i32, %c0_i32_0 : i32, i32, i32, i32
  }
}

</mosaic_0001>

<bundles_post_ra>
// kernel: tile.8
= control target key start
LH: loop header
LB: loop body
LE: loop exit
PB: predicated region body
PF: predicated region fallthrough
CT: control target
= control target key end

     0   :  { %s22_s0 = inlined_call_operand.vmem [shape: f32[128], index: 0, kind: input, shape index: {}]   ;;  %s23_s1 = inlined_call_operand.vmem [shape: f32[4,128], index: 1, kind: output, shape index: {}]  }
   0x1   :  { %v4_v0 = vld [vmem:[%s22_s0] ss:$0 sm:$0xff] }
   0x2   :  { %5 = vst [vmem:[%s23_s1] sm:$0xf] %v4_v0 }

// kernel: unet_up_forward.3
= control target key start
LH: loop header
LB: loop body
LE: loop exit
PB: predicated region body
PF: predicated region fallthrough
CT: control target
= control target key end

     0   :  { %s922_s12 = smov 0   ;;  %s924_s13 = smov 0   ;;  %s1096_s0 = inlined_call_operand.vmem [shape: bf16[2,8,8,128], index: 0, kind: input, shape index: {}]   ;;  %s1097_s1 = inlined_call_operand.vmem [shape: bf16[128,512], index: 1, kind: input, shape index: {}]   ;;  %s1098_s2 = inlined_call_operand.vmem [shape: f32[1,512], index: 2, kind: input, shape index: {}]   ;;  %s1099_s3 = inlined_call_operand.vmem [shape: bf16[2,8,2,8,256], index: 3, kind: output, shape index: {}]  }
   0x1   :  { %s926_s14 = smov 0   ;;  %s928_s15 = smov 0  }
   0x2   :  { %s930_s16 = smov 0  }
   0x3 LB: > { %s22_s17 = sadd.s32 1, %s891_s14  ;;  %s25_s18 = sadd.s32 1, %s895_s15  ;;  %s899_s16 = sphi %s930_s16, %s13_s16   ;;  %s895_s15 = sphi %s928_s15, %s1103_s15   ;;  %s891_s14 = sphi %s926_s14, %s1102_s14   ;;  %s887_s13 = sphi %s924_s13, %s1101_s13   ;;  %s883_s12 = sphi %s922_s12, %s1100_s12  }
   0x4   : > { %p23_p0 = scmp.ge.s32.totalorder %s22_s17, 2  ;;  %p706_p1 = scmp.ge.s32.totalorder %s899_s16, 1 }
   0x5   : > { %p158_p2 = scmp.lt.s32.totalorder %s899_s16, 5 }
   0x6   : > { %s1105_s17 = smov (%p23_p0, %s22_s17), 0  ;;  %s1107_s18 = smov (!%p23_p0, %s25_s18), %s895_s15 }
   0x7   : > { %p159_p3 = pnand %p706_p1, %p158_p2  ;;  %p27_p4 = scmp.ge.s32.totalorder %s1107_s18, 2 }
   0x8   : > { %s707_s21 = sshll.u32 (!%p159_p3), %s883_s12, 2  ;;  %p192_p5 = scmp.lt.s32.totalorder (!%p159_p3), %s887_s13, 1 }
   0x9   : > { %s1109_s18 = smov (%p27_p4, %s1107_s18), 0  ;;  %162 = sbr.rel (%p159_p3) target bundleno = 260 (0x104), region = 32 }
   0xa   : > { %p194_p6 = scmp.lt.s32.totalorder (!%p159_p3), %s707_s21, 7 }
   0xe   : > { %v811_v0 = vld [vmem:[%s1097_s1 + $0xe4] ss:$16 sps:$4 sm:$0xff]   ;;  %v813_v1 = vld [vmem:[%s1097_s1 + $0xec] ss:$16 sps:$4 sm:$0xff]   ;;  %v901_v2 = vmov 0   ;;  %s1111_s13 = smov (!%p192_p5, %s887_s13), 1  ;;  %v251_v35 = vlaneseq }
   0xf   : > { %475 = vmatprep.mubr.bf16.mxu0 %v901_v2  ;;  %528 = vmatprep.mubr.bf16.mxu1 %v901_v2  ;;  %v815_v3 = vld [vmem:[%s1097_s1 + $0xe0] ss:$16 sps:$4 sm:$0xff]   ;;  %v816_v4 = vld [vmem:[%s1097_s1 + $0xe8] ss:$16 sps:$4 sm:$0xff]   ;;  %v817_v5 = vld [vmem:[%s1097_s1 + $0xc4] ss:$16 sps:$4 sm:$0xff]  }
  0x10   : > { %443 = vmatprep.subr.bf16.mxu0 %v811_v0  ;;  %496 = vmatprep.subr.bf16.mxu1 %v813_v1  ;;  %v819_v6 = vld [vmem:[%s1097_s1 + $0xcc] ss:$16 sps:$4 sm:$0xff]   ;;  %v821_v7 = vld [vmem:[%s1097_s1 + $0xc0] ss:$16 sps:$4 sm:$0xff]   ;;  %s1113_s21 = smov (!%p194_p6, %s707_s21), 7  ;;  %s712_s9 = sshll.u32 %s1111_s13, 5 }
  0x11   : > { %444 = vmatpush1.bf16.msra.mxu0 %v815_v3  ;;  %497 = vmatpush1.bf16.msra.mxu1 %v816_v4  ;;  %v822_v8 = vld [vmem:[%s1097_s1 + $0xc8] ss:$16 sps:$4 sm:$0xff]   ;;  %v823_v9 = vld [vmem:[%s1097_s1 + $0xa4] ss:$16 sps:$4 sm:$0xff]   ;;  %s711_s12 = sshll.u32 %s1113_s21, 2  ;;  %s708_s6 = sshll.u32 %s1111_s13, 3 }
  0x12   : > { %445 = vmatprep.subr.bf16.mxu0 %v817_v5  ;;  %498 = vmatprep.subr.bf16.mxu1 %v819_v6  ;;  %v825_v10 = vld [vmem:[%s1097_s1 + $0xac] ss:$16 sps:$4 sm:$0xff]   ;;  %v827_v11 = vld [vmem:[%s1097_s1 + $0xa0] ss:$16 sps:$4 sm:$0xff]   ;;  %v828_v12 = vld [vmem:[%s1097_s1 + $0xa8] ss:$16 sps:$4 sm:$0xff]   ;;  %s996_s26 = sadd.s32 %s712_s9, %s711_s12  ;;  %s197_s19 = sadd.s32 %s708_s6, %s1113_s21 }
  0x13   : > { %v829_v13 = vld [vmem:[%s1097_s1 + $0x84] ss:$16 sps:$4 sm:$0xff]   ;;  %v831_v14 = vld [vmem:[%s1097_s1 + $0x8c] ss:$16 sps:$4 sm:$0xff]   ;;  %v833_v15 = vld [vmem:[%s1097_s1 + $0x80] ss:$16 sps:$4 sm:$0xff]  }
  0x14   : > { %v834_v16 = vld [vmem:[%s1097_s1 + $0x88] ss:$16 sps:$4 sm:$0xff]   ;;  %v835_v17 = vld [vmem:[%s1097_s1 + $0x64] ss:$16 sps:$4 sm:$0xff]   ;;  %v837_v18 = vld [vmem:[%s1097_s1 + $0x6c] ss:$16 sps:$4 sm:$0xff]  }
  0x15   : > { %446 = vmatpush1.bf16.msra.mxu0 %v821_v7  ;;  %499 = vmatpush1.bf16.msra.mxu1 %v822_v8  ;;  %v839_v19 = vld [vmem:[%s1097_s1 + $0x60] ss:$16 sps:$4 sm:$0xff]   ;;  %v840_v20 = vld [vmem:[%s1097_s1 + $0x68] ss:$16 sps:$4 sm:$0xff]   ;;  %v841_v21 = vld [vmem:[%s1097_s1 + $0x44] ss:$16 sps:$4 sm:$0xff]  }
  0x16   : > { %447 = vmatprep.subr.bf16.mxu0 %v823_v9  ;;  %500 = vmatprep.subr.bf16.mxu1 %v825_v10  ;;  %v843_v22 = vld [vmem:[%s1097_s1 + $0x4c] ss:$16 sps:$4 sm:$0xff]   ;;  %s709_s21 = sshll.u32 %s197_s19, 2  ;;  %v845_v23 = vld [vmem:[%s1097_s1 + $0x40] ss:$16 sps:$4 sm:$0xff]   ;;  %v252_v36 = vshrl.u32 %v251_v35, 7 }
  0x17   : > { %v846_v24 = vld [vmem:[%s1097_s1 + $0x48] ss:$16 sps:$4 sm:$0xff]   ;;  %v847_v25 = vld [vmem:[%s1097_s1 + $0x24] ss:$16 sps:$4 sm:$0xff]   ;;  %s199_s10 = scalar_lea.vmem %s1096_s0, %s709_s21  ;;  %v849_v26 = vld [vmem:[%s1097_s1 + $0x2c] ss:$16 sps:$4 sm:$0xff]  }
  0x18   : > { %v851_v27 = vld [vmem:[%s1097_s1 + $0x20] ss:$16 sps:$4 sm:$0xff]   ;;  %v852_v28 = vld [vmem:[%s1097_s1 + $0x28] ss:$16 sps:$4 sm:$0xff]   ;;  %v853_v29 = vld [vmem:[%s1097_s1 + $0x4] ss:$16 sps:$4 sm:$0xff]  }
  0x19   : > { %448 = vmatpush1.bf16.msra.mxu0 %v827_v11  ;;  %501 = vmatpush1.bf16.msra.mxu1 %v828_v12  ;;  %v855_v30 = vld [vmem:[%s1097_s1 + $0xc] ss:$16 sps:$4 sm:$0xff]   ;;  %v857_v31 = vld [vmem:[%s1097_s1] ss:$16 sps:$4 sm:$0xff]   ;;  %v858_v32 = vld [vmem:[%s1097_s1 + $0x8] ss:$16 sps:$4 sm:$0xff]  }
  0x1a   : > { %449 = vmatprep.subr.bf16.mxu0 %v829_v13  ;;  %502 = vmatprep.subr.bf16.mxu1 %v831_v14  ;;  %v859_v33 = vld [vmem:[%s199_s10] sm:$0xff]   ;;  %v860_v34 = vld [vmem:[%s199_s10 + $0x8] sm:$0xff]   ;;  %v253_v37 = vsub.s32 0, %v252_v36  ;;  %v261_v38 = vsub.s32 2, %v252_v36  ;;  %v257_v39 = vsub.s32 1, %v252_v36  ;;  %v265_v40 = vsub.s32 3, %v252_v36 }
  0x1b   : > { %v249_v41 = vld [vmem:[%s1098_s2] sm:$0xf]  ;;  %s713_s6 = sshll.u32 %s996_s26, 2 }
  0x1c   : > { %v254_v42 = vrot.slane %v249_v41, %v253_v37  ;;  %v262_v43 = vrot.slane %v249_v41, %v261_v38  ;;  %v258_v44 = vrot.slane %v249_v41, %v257_v39  ;;  %v266_v45 = vrot.slane %v249_v41, %v265_v40  ;;  %s1071_s9 = scalar_lea.vmem %s1099_s3, %s713_s6 }
  0x1d   : > { %450 = vmatpush1.bf16.msra.mxu0 %v833_v15  ;;  %503 = vmatpush1.bf16.msra.mxu1 %v834_v16 }
  0x1e   : > { %451 = vmatprep.subr.bf16.mxu0 %v835_v17  ;;  %504 = vmatprep.subr.bf16.mxu1 %v837_v18 }
  0x21   : > { %452 = vmatpush1.bf16.msra.mxu0 %v839_v19  ;;  %505 = vmatpush1.bf16.msra.mxu1 %v840_v20 }
  0x22   : > { %453 = vmatprep.subr.bf16.mxu0 %v841_v21  ;;  %506 = vmatprep.subr.bf16.mxu1 %v843_v22 }
  0x25   : > { %454 = vmatpush1.bf16.msra.mxu0 %v845_v23  ;;  %507 = vmatpush1.bf16.msra.mxu1 %v846_v24 }
  0x26   : > { %455 = vmatprep.subr.bf16.mxu0 %v847_v25  ;;  %508 = vmatprep.subr.bf16.mxu1 %v849_v26 }
  0x29   : > { %456 = vmatpush1.bf16.msra.mxu0 %v851_v27  ;;  %509 = vmatpush1.bf16.msra.mxu1 %v852_v28 }
  0x2a   : > { %457 = vmatprep.subr.bf16.mxu0 %v853_v29  ;;  %510 = vmatprep.subr.bf16.mxu1 %v855_v30 }
  0x2d   : > { %458 = vmatpush1.bf16.msra.mxu0 %v857_v31  ;;  %511 = vmatpush1.bf16.msra.mxu1 %v858_v32 }
  0x30   : > { %476 = vmatmul.mubr.bf16.vlgmr.msra.gmra.mxu0 %v859_v33  ;;  %529 = vmatmul.mubr.bf16.vlgmr.msra.gmra.mxu1 %v859_v33 }
  0x31   : > { %485 = vmatprep.mubr.bf16.mxu0 %v901_v2  ;;  %538 = vmatprep.mubr.bf16.mxu1 %v901_v2 }
  0x38   : > { %486 = vmatmul.mubr.bf16.gmra.mxu0 %v860_v34  ;;  %539 = vmatmul.mubr.bf16.gmra.mxu1 %v860_v34 }
  0xf0   : > { %v477_v46 = vpop.f32.mrf.mxu0  ;;  %v530_v47 = vpop.f32.mrf.mxu1 }
  0xf1   : > { %v478_v50 = vadd.f32 %v477_v46, %v254_v42  ;;  %v531_v51 = vadd.f32 %v530_v47, %v262_v43 }
  0xf2   : > { %v479_v48 = vpop.f32.mrf.mxu0  ;;  %v532_v49 = vpop.f32.mrf.mxu1 }
  0xf3   : > { %v480_v52 = vadd.f32 %v479_v48, %v258_v44  ;;  %v533_v53 = vadd.f32 %v532_v49, %v266_v45 }
  0xf4   : > { %v481_v54 = vpop.f32.mrf.mxu0  ;;  %v534_v55 = vpop.f32.mrf.mxu1 }
  0xf5   : > { %v762_v56 = vpack.c.bf16 %v480_v52, %v478_v50  ;;  %v763_v57 = vpack.c.bf16 %v533_v53, %v531_v51  ;;  %v482_v60 = vadd.f32 %v481_v54, %v254_v42  ;;  %v535_v61 = vadd.f32 %v534_v55, %v262_v43 }
  0xf6   : > { %v483_v58 = vpop.f32.mrf.mxu0  ;;  %v536_v59 = vpop.f32.mrf.mxu1 }
  0xf7   : > { %597 = vst [vmem:[%s1071_s9] sm:$0xff] %v762_v56  ;;  %756 = vst [vmem:[%s1071_s9 + $0x8] sm:$0xff] %v763_v57  ;;  %v484_v62 = vadd.f32 %v483_v58, %v258_v44  ;;  %v537_v63 = vadd.f32 %v536_v59, %v266_v45 }
  0xf8   : > { %v487_v0 = vpop.f32.mrf.mxu0  ;;  %v540_v1 = vpop.f32.mrf.mxu1 }
  0xf9   : > { %v764_v2 = vpack.c.bf16 %v484_v62, %v482_v60  ;;  %v765_v3 = vpack.c.bf16 %v537_v63, %v535_v61  ;;  %v488_v6 = vadd.f32 %v487_v0, %v254_v42  ;;  %v541_v7 = vadd.f32 %v540_v1, %v262_v43 }
  0xfa   : > { %v489_v4 = vpop.f32.mrf.mxu0  ;;  %v542_v5 = vpop.f32.mrf.mxu1 }
  0xfb   : > { %598 = vst [vmem:[%s1071_s9 + $0x10] sm:$0xff] %v764_v2  ;;  %757 = vst [vmem:[%s1071_s9 + $0x18] sm:$0xff] %v765_v3  ;;  %v490_v8 = vadd.f32 %v489_v4, %v258_v44  ;;  %v543_v9 = vadd.f32 %v542_v5, %v266_v45 }
  0xfc   : > { %v491_v10 = vpop.f32.mrf.mxu0  ;;  %v544_v11 = vpop.f32.mrf.mxu1 }
  0xfd   : > { %v766_v12 = vpack.c.bf16 %v490_v8, %v488_v6  ;;  %v767_v13 = vpack.c.bf16 %v543_v9, %v541_v7  ;;  %v492_v16 = vadd.f32 %v491_v10, %v254_v42  ;;  %v545_v17 = vadd.f32 %v544_v11, %v262_v43 }
  0xfe   : > { %v493_v14 = vpop.f32.mrf.mxu0  ;;  %v546_v15 = vpop.f32.mrf.mxu1 }
  0xff   : > { %599 = vst [vmem:[%s1071_s9 + $0x20] sm:$0xff] %v766_v12  ;;  %758 = vst [vmem:[%s1071_s9 + $0x28] sm:$0xff] %v767_v13  ;;  %v494_v18 = vadd.f32 %v493_v14, %v258_v44  ;;  %v547_v19 = vadd.f32 %v546_v15, %v266_v45 }
 0x101   : > { %v768_v20 = vpack.c.bf16 %v494_v18, %v492_v16  ;;  %v769_v21 = vpack.c.bf16 %v547_v19, %v545_v17 }
 0x103   : > { %600 = vst [vmem:[%s1071_s9 + $0x30] sm:$0xff] %v768_v20  ;;  %759 = vst [vmem:[%s1071_s9 + $0x38] sm:$0xff] %v769_v21 }
 0x104 PF: > { %s13_s16 = sadd.s32 1, %s899_s16   ;;  %s1100_s12 = smov %s891_s14 }
 0x105   : > { %p10_p7 = scmp.ge.s32.totalorder %s13_s16, 6   ;;  %s1101_s13 = smov %s895_s15 }
 0x106   : > { %s1102_s14 = smov %s1105_s17  ;;  %s1103_s15 = smov %s1109_s18 }
 0x107   :  { %12 = sbr.rel (!%p10_p7) target bundleno = 3 (0x3), region = 63 }

// kernel: unet_up_forward.5
= control target key start
LH: loop header
LB: loop body
LE: loop exit
PB: predicated region body
PF: predicated region fallthrough
CT: control target
= control target key end

     0   :  { %s4382_s15 = smov 0   ;;  %s4384_s16 = smov 0   ;;  %s5353_s0 = inlined_call_operand.vmem [shape: bf16[2,18,18,128], index: 0, kind: input, shape index: {}, may-alias: {0,1}]   ;;  %s5354_s1 = inlined_call_operand.vmem [shape: bf16[2,18,18,128], index: 1, kind: input, shape index: {}, may-alias: {0,1}]   ;;  %s5355_s2 = inlined_call_operand.vmem [shape: bf16[3,3,128,128], index: 2, kind: input, shape index: {}]   ;;  %s5356_s3 = inlined_call_operand.vmem [shape: f32[1,128], index: 3, kind: input, shape index: {}]   ;;  %s5357_s4 = inlined_call_operand.vmem [shape: f32[2,16,16,128], index: 4, kind: output, shape index: {}]  }
   0x1   :  { %s4386_s17 = smov 0   ;;  %s4388_s18 = smov 0  }
   0x2   :  { %s4390_s19 = smov 0  }
   0x3 LB: > { %s23_s20 = sadd.s32 1, %s4347_s17  ;;  %s26_s21 = sadd.s32 1, %s4351_s18  ;;  %s4355_s19 = sphi %s4390_s19, %s14_s19   ;;  %s4351_s18 = sphi %s4388_s18, %s5396_s18   ;;  %s4347_s17 = sphi %s4386_s17, %s5395_s17   ;;  %s4343_s16 = sphi %s4384_s16, %s5394_s16   ;;  %s4339_s15 = sphi %s4382_s15, %s5393_s15  }
   0x4   : > { %p24_p0 = scmp.ge.s32.totalorder %s23_s20, 2  ;;  %p3412_p1 = scmp.ge.s32.totalorder %s4355_s19, 1 }
   0x5   : > { %p220_p2 = scmp.lt.s32.totalorder %s4355_s19, 5 }
   0x6   : > { %s5398_s20 = smov (%p24_p0, %s23_s20), 0  ;;  %s5400_s21 = smov (!%p24_p0, %s26_s21), %s4351_s18 }
   0x7   : > { %p221_p3 = pnand %p3412_p1, %p220_p2  ;;  %p28_p4 = scmp.ge.s32.totalorder %s5400_s21, 2 }
   0x9   : > { %s5402_s21 = smov (%p28_p4, %s5400_s21), 0  ;;  %224 = sbr.rel (%p221_p3) target bundleno = 402 (0x192), region = 36 }
   0xe   : > { %v4221_v0 = vld [vmem:[%s5355_s2 + $0x78] sm:$0xff]   ;;  %s4415_s24 = sshll.u32 %s4339_s15, 3  ;;  %p279_p5 = scmp.lt.s32.totalorder %s4343_s16, 1  ;;  %v4223_v2 = vld [vmem:[%s5355_s2 + $0x70] sm:$0xff]   ;;  %v4225_v4 = vld [vmem:[%s5355_s2 + $0x68] sm:$0xff]   ;;  %vm1028_vm3 = vcmask 1042432  }
   0xf   : > { %v4222_v1 = vld [vmem:[%s5355_s2 + $0x38] sm:$0xff]   ;;  %3874 = vmatprep.subr.bf16.mxu0 %v4221_v0  ;;  %p281_p6 = scmp.lt.s32.totalorder %s4415_s24, 17  ;;  %v4224_v3 = vld [vmem:[%s5355_s2 + $0x30] sm:$0xff]   ;;  %v4226_v5 = vld [vmem:[%s5355_s2 + $0x28] sm:$0xff]   ;;  %vm422_vm0 = vsmask.f32 3328 }
  0x10   : > { %3906 = vmatprep.subr.bf16.mxu1 %v4222_v1  ;;  %3875 = vmatpush3.bf16.msra.mxu0 %v4221_v0  ;;  %s5404_s16 = smov (!%p279_p5, %s4343_s16), 1  ;;  %v4227_v6 = vld [vmem:[%s5355_s2 + $0x60] sm:$0xff]   ;;  %v4229_v8 = vld [vmem:[%s5355_s2 + $0x58] sm:$0xff]   ;;  %v4231_v10 = vld [vmem:[%s5355_s2 + $0x50] sm:$0xff]   ;;  %vm423_vm1 = vsmask.f32 7440 }
  0x11   : > { %3907 = vmatpush3.bf16.msra.mxu1 %v4222_v1  ;;  %3876 = vmatprep.subr.bf16.mxu0 %v4223_v2  ;;  %s282_s7 = scalar_select %p281_p6, %s4415_s24, 17  ;;  %v4228_v7 = vld [vmem:[%s5355_s2 + $0x20] sm:$0xff]   ;;  %v4230_v9 = vld [vmem:[%s5355_s2 + $0x18] sm:$0xff]   ;;  %v4232_v14 = vld [vmem:[%s5355_s2 + $0x10] sm:$0xff]   ;;  %vm1029_vm4 = vcmask 1046532  }
  0x12   : > { %3908 = vmatprep.subr.bf16.mxu1 %v4224_v3  ;;  %s4179_s10 = smul.u32 54, %s5404_s16  ;;  %v4233_v16 = vld [vmem:[%s5355_s2 + $0x48] sm:$0xff]   ;;  %v4235_v18 = vld [vmem:[%s5355_s2 + $0x40] sm:$0xff]   ;;  %v4497_v40 = vld [vmem:[%s5355_s2 + $0xb8] sm:$0xff]   ;;  %s3729_s12 = sadd.s32 8, %s4415_s24 }
  0x13   : > { %s4178_s11 = smul.u32 3, %s282_s7  ;;  %v4234_v17 = vld [vmem:[%s5355_s2 + $0x8] sm:$0xff]   ;;  %v4236_v22 = vld [vmem:[%s5355_s2] sm:$0xff]   ;;  %v4240_v41 = vld [vmem:[%s5355_s2 + $0xf8] sm:$0xff]   ;;  %p4591_p7 = scmp.lt.s32.totalorder %s3729_s12, 17 }
  0x14   : > { %3877 = vmatpush3.bf16.msra.mxu0 %v4223_v2  ;;  %vm4507_vm2 = vmor %vm422_vm0, %vm423_vm1  ;;  %p312_p8 = scmp.lt.s32.totalorder %s4415_s24, 15  ;;  %s3420_s13 = sshll.u32 %s5404_s16, 5 }
  0x15   : > { %3909 = vmatpush3.bf16.msra.mxu1 %v4224_v3  ;;  %3878 = vmatprep.subr.bf16.mxu0 %v4225_v4  ;;  %s285_s14 = sadd.s32 %s4179_s10, %s4178_s11  ;;  %s5406_s12 = smov (!%p4591_p7, %s3729_s12), 17  ;;  %vm4656_vm5 = vmor %vm1028_vm3, %vm1029_vm4 }
  0x16   : > { %3910 = vmatprep.subr.bf16.mxu1 %v4226_v5  ;;  %s3414_s23 = sshll.u32 %s285_s14, 2  ;;  %s5408_s24 = smov (!%p312_p8, %s4415_s24), 15 }
  0x17   : > { %s4454_s5 = scalar_lea.vmem %s5353_s0, %s3414_s23  ;;  %s4180_s23 = smul.u32 3, %s5406_s12 }
  0x18   : > { %3879 = vmatpush3.bf16.msra.mxu0 %v4225_v4  ;;  %v321_v11 = vld [vmem:[%s4454_s5] sm:$0xff]   ;;  %v323_v12 = vld [vmem:[%s4454_s5 + $0x8] sm:$0x1]  ;;  %v324_v13 = vld [vmem:[%s4454_s5 + $0xc] sm:$0xff]   ;;  %s3419_s11 = sshll.u32 %s5408_s24, 1 }
  0x19   : > { %3911 = vmatpush3.bf16.msra.mxu1 %v4226_v5  ;;  %3880 = vmatprep.subr.bf16.mxu0 %v4227_v6  ;;  %345 = vst [vmem:[#allocation2] sm:$0xff] %v321_v11   ;;  %347 = vst [vmem:[#allocation2 + $0x8] sm:$0x1] %v323_v12  ;;  %v326_v15 = vld [vmem:[%s4454_s5 + $0x14] sm:$0x1]  ;;  %v327_v19 = vld [vmem:[%s4454_s5 + $0x18] sm:$0xff]   ;;  %s5253_s16 = sadd.s32 %s3420_s13, %s3419_s11 }
  0x1a   : > { %3912 = vmatprep.subr.bf16.mxu1 %v4228_v7  ;;  %348 = vst [vmem:[#allocation2 + $0xc] sm:$0xff] %v324_v13   ;;  %350 = vst [vmem:[#allocation2 + $0x14] sm:$0x1] %v326_v15  ;;  %v329_v20 = vld [vmem:[%s4454_s5 + $0x20] sm:$0x1]  ;;  %v330_v21 = vld [vmem:[%s4454_s5 + $0x24] sm:$0xff]  }
  0x1b   : > { %351 = vst [vmem:[#allocation2 + $0x18] sm:$0xff] %v327_v19   ;;  %353 = vst [vmem:[#allocation2 + $0x20] sm:$0x1] %v329_v20  ;;  %v332_v23 = vld [vmem:[%s4454_s5 + $0x2c] sm:$0x1]  ;;  %v4242_v5 = vld [vmem:[%s5355_s2 + $0xf0] sm:$0xff]  }
  0x1c   : > { %3881 = vmatpush3.bf16.msra.mxu0 %v4227_v6  ;;  %354 = vst [vmem:[#allocation2 + $0x24] sm:$0xff] %v330_v21   ;;  %356 = vst [vmem:[#allocation2 + $0x2c] sm:$0x1] %v332_v23  ;;  %v333_v23 = vld [vmem:[%s4454_s5 + $0x30] sm:$0xff]   ;;  %s3421_s15 = sshll.u32 %s5253_s16, 3 }
  0x1d   : > { %3913 = vmatpush3.bf16.msra.mxu1 %v4228_v7  ;;  %3882 = vmatprep.subr.bf16.mxu0 %v4229_v8  ;;  %357 = vst [vmem:[#allocation2 + $0x30] sm:$0xff] %v333_v23   ;;  %s5287_s26 = scalar_lea.vmem %s5357_s4, %s3421_s15 }
  0x1e   : > { %3914 = vmatprep.subr.bf16.mxu1 %v4230_v9 }
  0x20   : > { %3883 = vmatpush3.bf16.msra.mxu0 %v4229_v8  ;;  %v382_v24 = vld [vmem:[#allocation2] sm:$0xf]  ;;  %v4482_v25 = vld [vmem:[#allocation2 + $0x4] sm:$0xf]  ;;  %v4484_v26 = vld [vmem:[#allocation2 + $0x8] sm:$0x1] }
  0x21   : > { %3915 = vmatpush3.bf16.msra.mxu1 %v4230_v9  ;;  %3884 = vmatprep.subr.bf16.mxu0 %v4231_v10  ;;  %v426_v27 = vshrl.u32 %v382_v24, 16  ;;  %v429_v28 = vshll.u32 %v382_v24, 16  ;;  %v435_v29 = vshll.u32 %v4482_v25, 16  ;;  %v439_v30 = vshrl.u32 %v4482_v25, 16  ;;  %v384_v31 = vld [vmem:[#allocation2 + $0xc] sm:$0xf] }
  0x22   : > { %3916 = vmatprep.subr.bf16.mxu1 %v4232_v14  ;;  %v445_v32 = vshll.u32 %v4484_v26, 16  ;;  %v3454_v33 = vcombine.low %v382_v24, %v4482_v25  ;;  %v4490_v34 = vld [vmem:[#allocation2 + $0x10] sm:$0xf]  ;;  %v4492_v35 = vld [vmem:[#allocation2 + $0x14] sm:$0x1]  ;;  %v450_v43 = vshrl.u32 %v384_v31, 16 }
  0x23   : > { %v428_v36 = vrot.slane %v426_v27, 4  ;;  %v431_v37 = vrot.slane %v429_v28, 5  ;;  %v437_v38 = vrot.slane %v435_v29, 5  ;;  %v441_v39 = vrot.slane %v439_v30, 4  ;;  %v386_v55 = vld [vmem:[#allocation2 + $0x18] sm:$0xf] }
  0x24   : > { %3885 = vmatpush3.bf16.msra.mxu0 %v4231_v10  ;;  %v447_v42 = vrot.slane %v445_v32, 5  ;;  %v453_v44 = vshll.u32 %v384_v31, 16  ;;  %v459_v45 = vshll.u32 %v4490_v34, 16  ;;  %3922 = vmatprep.mubr.bf16.mxu1 %v3454_v33  ;;  %v463_v48 = vshrl.u32 %v4490_v34, 16  ;;  %v4512_v60 = vld [vmem:[#allocation2 + $0x1c] sm:$0xf] }
  0x25   : > { %3917 = vmatpush3.bf16.msra.mxu1 %v4232_v14  ;;  %3886 = vmatprep.subr.bf16.mxu0 %v4233_v16  ;;  %v432_v46 = vor.u32 %v431_v37, %v428_v36  ;;  %v442_v47 = vor.u32 %v441_v39, %v437_v38  ;;  %v469_v49 = vshll.u32 %v4492_v35, 16  ;;  %v1036_v51 = vrot.slane %v4484_v26, 5  ;;  %v4516_v63 = vld [vmem:[#allocation2 + $0x20] sm:$0x1]  ;;  %v388_v7 = vld [vmem:[#allocation2 + $0x24] sm:$0xf] }
  0x26   : > { %3918 = vmatprep.subr.bf16.mxu1 %v4234_v17  ;;  %v452_v52 = vrot.slane %v450_v43, 4  ;;  %v455_v53 = vrot.slane %v453_v44, 5  ;;  %v461_v54 = vrot.slane %v459_v45, 5  ;;  %v465_v58 = vrot.slane %v463_v48, 4  ;;  %v4526_v8 = vld [vmem:[#allocation2 + $0x28] sm:$0xf] }
  0x27   : > { %v433_v56 = vrot.slane %v432_v46, 4  ;;  %v443_v57 = vrot.slane %v442_v47, 4  ;;  %v471_v59 = vrot.slane %v469_v49, 5  ;;  %v3455_v62 = vcombine.low %v384_v31, %v4490_v34  ;;  %v4528_v13 = vld [vmem:[#allocation2 + $0x2c] sm:$0x1]  ;;  %v4241_v36 = vld [vmem:[%s5355_s2 + $0xb0] sm:$0xff]  }
  0x28   : > { %3887 = vmatpush3.bf16.msra.mxu0 %v4233_v16  ;;  %v456_v61 = vor.u32 %v455_v53, %v452_v52  ;;  %v474_v0 = vshrl.u32 %v386_v55, 16  ;;  %v477_v1 = vshll.u32 %v386_v55, 16  ;;  %v466_v4 = vor.u32 %v465_v58, %v461_v54  ;;  %v335_v24 = vld [vmem:[%s4454_s5 + $0x38] sm:$0x1]  ;;  %v336_v31 = vld [vmem:[%s4454_s5 + $0x3c] sm:$0xff]   ;;  %v4245_v48 = vld [vmem:[%s5355_s2 + $0xa8] sm:$0xff]  }
  0x29   : > { %3919 = vmatpush3.bf16.msra.mxu1 %v4234_v17  ;;  %3888 = vmatprep.subr.bf16.mxu0 %v4235_v18  ;;  %v438_v2 = vsel %vm4507_vm2, %v433_v56, %v437_v38  ;;  %v448_v3 = vsel %vm4507_vm2, %v443_v57, %v447_v42  ;;  %v483_v6 = vshll.u32 %v4512_v60, 16  ;;  %v487_v16 = vshrl.u32 %v4512_v60, 16  ;;  %359 = vst [vmem:[#allocation2 + $0x38] sm:$0x1] %v335_v24  ;;  %v338_v32 = vld [vmem:[%s4454_s5 + $0x44] sm:$0x1] }
  0x2a   : > { %3920 = vmatprep.subr.bf16.mxu1 %v4236_v22  ;;  %v3438_v9 = vcombine.low %v438_v2, %v448_v3  ;;  %v457_v10 = vrot.slane %v456_v61, 4  ;;  %v476_v11 = vrot.slane %v474_v0, 4  ;;  %v479_v12 = vrot.slane %v477_v1, 5  ;;  %360 = vst [vmem:[#allocation2 + $0x3c] sm:$0xff] %v336_v31   ;;  %362 = vst [vmem:[#allocation2 + $0x44] sm:$0x1] %v338_v32 }
  0x2b   : > { %v467_v14 = vrot.slane %v466_v4, 4  ;;  %v485_v15 = vrot.slane %v483_v6, 5  ;;  %v493_v17 = vshll.u32 %v4516_v63, 16  ;;  %v3456_v21 = vcombine.low %v386_v55, %v4512_v60  ;;  %v4248_v55 = vld [vmem:[%s5355_s2 + $0xe0] sm:$0xff]   ;;  %v341_v61 = vld [vmem:[%s4454_s5 + $0x50] sm:$0x1] }
  0x2c   : > { %3889 = vmatpush3.bf16.msra.mxu0 %v4235_v18  ;;  %v4246_v18 = vld [vmem:[%s5355_s2 + $0xe8] sm:$0xff]   ;;  %3890 = vmatprep.mubr.bf16.mxu0 %v3438_v9  ;;  %v462_v19 = vsel %vm4507_vm2, %v457_v10, %v461_v54  ;;  %v480_v20 = vor.u32 %v479_v12, %v476_v11  ;;  %v489_v28 = vrot.slane %v487_v16, 4  ;;  %v501_v30 = vshll.u32 %v388_v7, 16  ;;  %v390_v1 = vld [vmem:[#allocation2 + $0x30] sm:$0xf]  ;;  %v4252_v10 = vld [vmem:[%s5355_s2 + $0xd8] sm:$0xff]  }
  0x2d   : > { %3921 = vmatpush3.bf16.msra.mxu1 %v4236_v22  ;;  %3938 = vmatprep.subr.bf16.mxu0 %v4497_v40  ;;  %v498_v22 = vshrl.u32 %v388_v7, 16  ;;  %v472_v27 = vsel %vm4507_vm2, %v467_v14, %v471_v59  ;;  %v495_v29 = vrot.slane %v493_v17, 5  ;;  %v507_v39 = vshll.u32 %v4526_v8, 16  ;;  %v339_v59 = vld [vmem:[%s4454_s5 + $0x48] sm:$0xff]   ;;  %v4567_v2 = vld [vmem:[#allocation2 + $0x34] sm:$0xf] }
  0x2e   : > { %3970 = vmatprep.subr.bf16.mxu1 %v4240_v41  ;;  %v3439_v33 = vcombine.low %v462_v19, %v472_v27  ;;  %v481_v37 = vrot.slane %v480_v20, 4  ;;  %v503_v42 = vrot.slane %v501_v30, 5  ;;  %v511_v43 = vshrl.u32 %v4526_v8, 16  ;;  %363 = vst [vmem:[#allocation2 + $0x48] sm:$0xff] %v339_v59   ;;  %365 = vst [vmem:[#allocation2 + $0x50] sm:$0x1] %v341_v61 }
  0x2f   : > { %v500_v38 = vrot.slane %v498_v22, 4  ;;  %v517_v44 = vshll.u32 %v4528_v13, 16  ;;  %v509_v46 = vrot.slane %v507_v39, 5  ;;  %v3457_v47 = vcombine.low %v388_v7, %v4526_v8  ;;  %v4247_v11 = vld [vmem:[%s5355_s2 + $0xa0] sm:$0xff]   ;;  %v344_v30 = vld [vmem:[%s4454_s5 + $0x5c] sm:$0x1] }
  0x30   : > { %3923 = vmatmul.mubr.bf16.vlgmr.msra.gmra.mxu1 %v3455_v62  ;;  %3891 = vmatmul.mubr.bf16.vlgmr.msra.gmra.mxu0 %v3439_v33  ;;  %v486_v45 = vsel %vm4507_vm2, %v481_v37, %v485_v15  ;;  %v513_v53 = vrot.slane %v511_v43, 4  ;;  %v342_v62 = vld [vmem:[%s4454_s5 + $0x54] sm:$0xff]   ;;  %v4569_v3 = vld [vmem:[#allocation2 + $0x38] sm:$0x1]  ;;  %v522_v6 = vshrl.u32 %v390_v1, 16  ;;  %v525_v7 = vshll.u32 %v390_v1, 16  ;;  %s4697_s5 = sadd.s32 %s4180_s23, %s4179_s10 }
  0x31   : > { %3971 = vmatpush3.bf16.msra.mxu1 %v4240_v41  ;;  %3926 = vmatprep.mubr.bf16.mxu1 %v3456_v21  ;;  %v490_v41 = vor.u32 %v489_v28, %v485_v15  ;;  %v504_v52 = vor.u32 %v503_v42, %v500_v38  ;;  %v519_v54 = vrot.slane %v517_v44, 5  ;;  %366 = vst [vmem:[#allocation2 + $0x54] sm:$0xff] %v342_v62   ;;  %v392_v9 = vld [vmem:[#allocation2 + $0x3c] sm:$0xf]  ;;  %v531_v12 = vshll.u32 %v4567_v2, 16  ;;  %v4254_v37 = vld [vmem:[%s5355_s2 + $0xd0] sm:$0xff]  }
  0x32   : > { %3972 = vmatprep.subr.bf16.mxu1 %v4242_v5  ;;  %3939 = vmatpush3.bf16.msra.mxu0 %v4497_v40  ;;  %v514_v58 = vor.u32 %v513_v53, %v509_v46  ;;  %v1033_v40 = vrot.slane %v4482_v25, 5  ;;  %v535_v14 = vshrl.u32 %v4567_v2, 16  ;;  %v541_v15 = vshll.u32 %v4569_v3, 16  ;;  %v4583_v17 = vld [vmem:[#allocation2 + $0x40] sm:$0xf]  ;;  %s3417_s10 = sshll.u32 %s4697_s5, 2 }
  0x33   : > { %v491_v49 = vrot.slane %v490_v41, 4  ;;  %3940 = vmatprep.subr.bf16.mxu0 %v4241_v36  ;;  %v505_v57 = vrot.slane %v504_v52, 4  ;;  %v3458_v16 = vcombine.low %v390_v1, %v4567_v2  ;;  %v524_v19 = vrot.slane %v522_v6, 4  ;;  %v4587_v21 = vld [vmem:[#allocation2 + $0x44] sm:$0x1]  ;;  %s4725_s23 = scalar_lea.vmem %s5354_s1, %s3417_s10 }
  0x34   : > { %v527_v20 = vrot.slane %v525_v7, 5  ;;  %v546_v22 = vshrl.u32 %v392_v9, 16  ;;  %v533_v24 = vrot.slane %v531_v12, 5  ;;  %v537_v27 = vrot.slane %v535_v14, 4  ;;  %368 = vst [vmem:[#allocation2 + $0x5c] sm:$0x1] %v344_v30 }
  0x35   : > { %3973 = vmatpush3.bf16.msra.mxu1 %v4242_v5  ;;  %v496_v56 = vsel %vm4507_vm2, %v491_v49, %v495_v29  ;;  %v510_v4 = vsel %vm4507_vm2, %v505_v57, %v509_v46  ;;  %v515_v5 = vrot.slane %v514_v58, 4  ;;  %v543_v28 = vrot.slane %v541_v15, 5  ;;  %v4251_v29 = vld [vmem:[%s5355_s2 + $0x98] sm:$0xff]   ;;  %v4253_v53 = vld [vmem:[%s5355_s2 + $0x90] sm:$0xff]   ;;  %v4617_v58 = vld [vmem:[#allocation2 + $0x50] sm:$0x1] }
  0x36   : > { %3974 = vmatprep.subr.bf16.mxu1 %v4246_v18  ;;  %v3440_v0 = vcombine.low %v486_v45, %v496_v56  ;;  %3941 = vmatpush3.bf16.msra.mxu0 %v4241_v36  ;;  %v528_v31 = vor.u32 %v527_v20, %v524_v19  ;;  %v548_v32 = vrot.slane %v546_v22, 4  ;;  %v549_v33 = vshll.u32 %v392_v9, 16  ;;  %v394_v46 = vld [vmem:[#allocation2 + $0x48] sm:$0xf]  ;;  %v4258_v12 = vld [vmem:[%s5355_s2 + $0xc8] sm:$0xff]  }
  0x37   : > { %3942 = vmatprep.subr.bf16.mxu0 %v4245_v48  ;;  %v555_v36 = vshll.u32 %v4583_v17, 16  ;;  %v538_v38 = vor.u32 %v537_v27, %v533_v24  ;;  %v559_v39 = vshrl.u32 %v4583_v17, 16  ;;  %v565_v41 = vshll.u32 %v4587_v21, 16  ;;  %v4257_v27 = vld [vmem:[%s5355_s2 + $0x88] sm:$0xff]  }
  0x38   : > { %3927 = vmatmul.mubr.bf16.gmra.mxu1 %v3457_v47  ;;  %3894 = vmatprep.mubr.bf16.mxu0 %v3440_v0  ;;  %v3459_v42 = vcombine.low %v392_v9, %v4583_v17  ;;  %v529_v43 = vrot.slane %v528_v31, 4  ;;  %v551_v44 = vrot.slane %v549_v33, 5  ;;  %v4608_v47 = vrot.slane %v1033_v40, 4  ;;  %v396_v62 = vld [vmem:[#allocation2 + $0x54] sm:$0xf] }
  0x39   : > { %3975 = vmatpush3.bf16.msra.mxu1 %v4246_v18  ;;  %v520_v18 = vsel %vm4507_vm2, %v515_v5, %v519_v54  ;;  %3930 = vmatprep.mubr.bf16.mxu1 %v3458_v16  ;;  %v557_v45 = vrot.slane %v555_v36, 5  ;;  %v561_v49 = vrot.slane %v559_v39, 4  ;;  %v567_v52 = vrot.slane %v565_v41, 5  ;;  %v4613_v54 = vld [vmem:[#allocation2 + $0x4c] sm:$0xf] }
  0x3a   : > { %3976 = vmatprep.subr.bf16.mxu1 %v4248_v55  ;;  %v3441_v23 = vcombine.low %v510_v4, %v520_v18  ;;  %3943 = vmatpush3.bf16.msra.mxu0 %v4245_v48  ;;  %v539_v48 = vrot.slane %v538_v38, 4  ;;  %v534_v56 = vsel %vm4507_vm2, %v529_v43, %v533_v24  ;;  %v552_v57 = vor.u32 %v551_v44, %v548_v32  ;;  %v4623_v6 = vld [vmem:[#allocation2 + $0x58] sm:$0xf]  ;;  %v1004_v33 = vld [vmem:[#allocation2] sm:$0xe] }
  0x3b   : > { %3944 = vmatprep.subr.bf16.mxu0 %v4247_v11  ;;  %v573_v59 = vshll.u32 %v394_v46, 16  ;;  %v579_v61 = vshll.u32 %v4613_v54, 16  ;;  %v562_v1 = vor.u32 %v561_v49, %v557_v45  ;;  %v583_v5 = vshrl.u32 %v4613_v54, 16  ;;  %v4630_v19 = vld [vmem:[#allocation2 + $0x5c] sm:$0x1] }
  0x3c   : > { %3895 = vmatmul.mubr.bf16.gmra.mxu0 %v3441_v23  ;;  %v544_v0 = vsel %vm4507_vm2, %v539_v48, %v543_v28  ;;  %v553_v9 = vrot.slane %v552_v57, 4  ;;  %v589_v16 = vshll.u32 %v4617_v58, 16  ;;  %v3460_v18 = vcombine.low %v394_v46, %v4613_v54 }
  0x3d   : > { %3977 = vmatpush3.bf16.msra.mxu1 %v4248_v55  ;;  %v570_v55 = vshrl.u32 %v394_v46, 16  ;;  %v3442_v7 = vcombine.low %v534_v56, %v544_v0  ;;  %v563_v14 = vrot.slane %v562_v1, 4  ;;  %v585_v15 = vrot.slane %v583_v5, 4  ;;  %v4264_v1 = vld [vmem:[%s5355_s2 + $0x178] sm:$0xff]  }
  0x3e   : > { %3978 = vmatprep.subr.bf16.mxu1 %v4252_v10  ;;  %3945 = vmatpush3.bf16.msra.mxu0 %v4247_v11  ;;  %v581_v11 = vrot.slane %v579_v61, 5  ;;  %v558_v20 = vsel %vm4507_vm2, %v553_v9, %v557_v45  ;;  %v594_v23 = vshrl.u32 %v396_v62, 16  ;;  %v597_v24 = vshll.u32 %v396_v62, 16  ;;  %v1005_v61 = vld [vmem:[#allocation2 + $0xc] sm:$0xe] }
  0x3f   : > { %3946 = vmatprep.subr.bf16.mxu0 %v4251_v29  ;;  %v572_v4 = vrot.slane %v570_v55, 4  ;;  %3898 = vmatprep.mubr.bf16.mxu0 %v3442_v7  ;;  %v568_v28 = vsel %vm4507_vm2, %v563_v14, %v567_v52  ;;  %v591_v31 = vrot.slane %v589_v16, 5  ;;  %v603_v32 = vshll.u32 %v4623_v6, 16  ;;  %v1006_v14 = vld [vmem:[#allocation2 + $0x18] sm:$0xe]  ;;  %v4267_v16 = vld [vmem:[#allocation2 + $0x24] sm:$0xff]  }
  0x40   : > { %3931 = vmatmul.mubr.bf16.gmra.mxu1 %v3459_v42  ;;  %v586_v30 = vor.u32 %v585_v15, %v581_v11  ;;  %v3443_v36 = vcombine.low %v558_v20, %v568_v28  ;;  %v596_v39 = vrot.slane %v594_v23, 4  ;;  %v599_v41 = vrot.slane %v597_v24, 5  ;;  %v4261_v42 = vld [vmem:[#allocation2 + $0xc] sm:$0xff]   ;;  %v1007_v23 = vld [vmem:[#allocation2 + $0x24] sm:$0xe] }
  0x41   : > { %3979 = vmatpush3.bf16.msra.mxu1 %v4252_v10  ;;  %v575_v10 = vrot.slane %v573_v59, 5  ;;  %3934 = vmatprep.mubr.bf16.mxu1 %v3460_v18  ;;  %v605_v44 = vrot.slane %v603_v32, 5  ;;  %v613_v45 = vshll.u32 %v4630_v19, 16  ;;  %v3461_v49 = vcombine.low %v396_v62, %v4623_v6  ;;  %v4259_v59 = vld [vmem:[%s5355_s2 + $0x80] sm:$0xff]  }
  0x42   : > { %3980 = vmatprep.subr.bf16.mxu1 %v4254_v37  ;;  %3947 = vmatpush3.bf16.msra.mxu0 %v4251_v29  ;;  %v4260_v29 = vld [vmem:[%s5355_s2 + $0xc0] sm:$0xff]   ;;  %v587_v43 = vrot.slane %v586_v30, 4  ;;  %v600_v48 = vor.u32 %v599_v41, %v596_v39  ;;  %v3470_v55 = vrot.slane %v1004_v33, 9  ;;  %v1040_v5 = vrot.slane %v4490_v34, 5  ;;  %v4262_v34 = vld [vmem:[#allocation2 + $0x18] sm:$0xff]  }
  0x43   : > { %v576_v22 = vor.u32 %v575_v10, %v572_v4  ;;  %3948 = vmatprep.subr.bf16.mxu0 %v4253_v53  ;;  %v1037_v9 = vsel %vm4656_vm5, %v4608_v47, %v1036_v51  ;;  %v1043_v10 = vrot.slane %v4492_v35, 5  ;;  %v1047_v25 = vrot.slane %v4512_v60, 5  ;;  %v4263_v47 = vld [vmem:[%s5355_s2 + $0x138] sm:$0xff]   ;;  %v1008_v32 = vld [vmem:[#allocation2 + $0x30] sm:$0xe] }
  0x44   : > { %3899 = vmatmul.mubr.bf16.gmra.mxu0 %v3443_v36  ;;  %v592_v56 = vsel %vm4507_vm2, %v587_v43, %v591_v31  ;;  %v601_v0 = vrot.slane %v600_v48, 4  ;;  %v1034_v7 = vsel %vm4656_vm5, %v3470_v55, %v1033_v40  ;;  %v3471_v26 = vrot.slane %v1005_v61, 9  ;;  %v4270_v36 = vld [vmem:[%s5355_s2 + $0x168] sm:$0xff]   ;;  %v4268_v39 = vld [vmem:[#allocation2 + $0x30] sm:$0xff]  }
  0x45   : > { %3981 = vmatpush3.bf16.msra.mxu1 %v4254_v37  ;;  %v577_v38 = vrot.slane %v576_v22, 4  ;;  %v607_v37 = vshrl.u32 %v4623_v6, 16  ;;  %v1042_v40 = vrot.slane %v1040_v5, 4  ;;  %v3494_v35 = vcombine.low %v1034_v7, %v1037_v9  ;;  %v4266_v22 = vld [vmem:[%s5355_s2 + $0x170] sm:$0xff]   ;;  %v4271_v9 = vld [vmem:[%s5355_s2 + $0x120] sm:$0xff]  }
  0x46   : > { %3982 = vmatprep.subr.bf16.mxu1 %v4258_v12  ;;  %3949 = vmatpush3.bf16.msra.mxu0 %v4253_v53  ;;  %v615_v53 = vrot.slane %v613_v45, 5  ;;  %v3472_v15 = vrot.slane %v1006_v14, 9  ;;  %v1049_v20 = vrot.slane %v1047_v25, 4  ;;  %v1050_v60 = vrot.slane %v4516_v63, 5  ;;  %v1009_v45 = vld [vmem:[#allocation2 + $0x3c] sm:$0xe] }
  0x47   : > { %v582_v46 = vsel %vm4507_vm2, %v577_v38, %v581_v11  ;;  %v609_v57 = vrot.slane %v607_v37, 4  ;;  %3950 = vmatprep.subr.bf16.mxu0 %v4257_v27  ;;  %v606_v11 = vsel %vm4507_vm2, %v601_v0, %v605_v44  ;;  %v1054_v24 = vrot.slane %v4526_v8, 5  ;;  %v4272_v37 = vld [vmem:[%s5355_s2 + $0x160] sm:$0xff]   ;;  %v4276_v0 = vld [vmem:[%s5355_s2 + $0x158] sm:$0xff]  }
  0x48   : > { %v3444_v62 = vcombine.low %v582_v46, %v592_v56  ;;  %3935 = vmatmul.mubr.bf16.gmra.mxu1 %v3461_v49  ;;  %v1044_v63 = vsel %vm4656_vm5, %v1042_v40, %v1043_v10  ;;  %v1061_v28 = vrot.slane %v4567_v2, 5  ;;  %v1048_v8 = vsel %vm4656_vm5, %v3472_v15, %v1047_v25  ;;  %v4265_v2 = vld [vmem:[%s5355_s2 + $0x130] sm:$0xff]   ;;  %v1011_v10 = vld [vmem:[#allocation2 + $0x54] sm:$0xe]  ;;  %v4275_v40 = vld [vmem:[%s5355_s2 + $0x118] sm:$0xff]  }
  0x49   : > { %3983 = vmatpush3.bf16.msra.mxu1 %v4258_v12  ;;  %v610_v4 = vor.u32 %v609_v57, %v605_v44  ;;  %3986 = vmatprep.mubr.bf16.mxu1 %v4261_v42  ;;  %v1051_v30 = vsel %vm4656_vm5, %v1049_v20, %v1050_v60  ;;  %v3473_v31 = vrot.slane %v1007_v23, 9  ;;  %v1056_v33 = vrot.slane %v1054_v24, 4  ;;  %v4273_v46 = vld [vmem:[#allocation2 + $0x3c] sm:$0xff]   ;;  %v1541_v15 = vld [vmem:[#allocation2 + $0x10] sm:$0xf] }
  0x4a   : > { %3984 = vmatprep.subr.bf16.mxu1 %v4260_v29  ;;  %3902 = vmatprep.mubr.bf16.mxu0 %v3444_v62  ;;  %v1057_v38 = vrot.slane %v4528_v13, 5  ;;  %v3474_v41 = vrot.slane %v1008_v32, 9  ;;  %v1063_v42 = vrot.slane %v1061_v28, 4  ;;  %v1064_v43 = vrot.slane %v4569_v3, 5  ;;  %v4274_v62 = vld [vmem:[#allocation2 + $0x48] sm:$0xff]  }
  0x4b   : > { %v611_v12 = vrot.slane %v610_v4, 4  ;;  %3951 = vmatpush3.bf16.msra.mxu0 %v4257_v27  ;;  %v1041_v27 = vsel %vm4656_vm5, %v3471_v26, %v1040_v5  ;;  %v3496_v44 = vcombine.low %v1048_v8, %v1051_v30  ;;  %v1068_v48 = vrot.slane %v4583_v17, 5  ;;  %v4269_v17 = vld [vmem:[%s5355_s2 + $0x128] sm:$0xff]   ;;  %v369_v5 = vld [vmem:[%s4725_s23] sm:$0xff]  }
  0x4c   : > { %3952 = vmatprep.subr.bf16.mxu0 %v4259_v59  ;;  %v1075_v13 = vrot.slane %v4613_v54, 5  ;;  %v1055_v3 = vsel %vm4656_vm5, %v3473_v31, %v1054_v24  ;;  %v1058_v49 = vsel %vm4656_vm5, %v1056_v33, %v1057_v38  ;;  %v1071_v55 = vrot.slane %v4587_v21, 5  ;;  %v1010_v54 = vld [vmem:[#allocation2 + $0x48] sm:$0xe]  ;;  %376 = vst [vmem:[#allocation2 + $0x60] sm:$0xff] %v369_v5  }
  0x4d   : > { %3985 = vmatpush3.bf16.msra.mxu1 %v4260_v29  ;;  %v616_v51 = vsel %vm4507_vm2, %v611_v12, %v615_v53  ;;  %v3495_v29 = vcombine.low %v1041_v27, %v1044_v63  ;;  %v1062_v56 = vsel %vm4656_vm5, %v3474_v41, %v1061_v28  ;;  %v1065_v57 = vsel %vm4656_vm5, %v1063_v42, %v1064_v43  ;;  %v4278_v12 = vld [vmem:[%s5355_s2 + $0x150] sm:$0xff]   ;;  %v1966_v24 = vld [vmem:[#allocation2 + $0xc] sm:$0xe]  ;;  %v1543_v30 = vld [vmem:[#allocation2 + $0x18] sm:$0xf] }
  0x4e   : > { %4034 = vmatprep.subr.bf16.mxu1 %v4264_v1  ;;  %v3445_v18 = vcombine.low %v606_v11, %v616_v51  ;;  %v1070_v61 = vrot.slane %v1068_v48, 4  ;;  %v3476_v21 = vrot.slane %v1010_v54, 9  ;;  %v1078_v4 = vrot.slane %v4617_v58, 5  ;;  %v1544_v42 = vld [vmem:[#allocation2 + $0x1c] sm:$0xf]  ;;  %v4277_v43 = vld [vmem:[%s5355_s2 + $0x110] sm:$0xff]  }
  0x4f   : > { %3953 = vmatpush3.bf16.msra.mxu0 %v4259_v59  ;;  %v3475_v59 = vrot.slane %v1009_v45, 9  ;;  %v1082_v53 = vrot.slane %v4623_v6, 5  ;;  %v3497_v7 = vcombine.low %v1055_v3, %v1058_v49  ;;  %v3498_v11 = vcombine.low %v1062_v56, %v1065_v57  ;;  %v1545_v45 = vld [vmem:[#allocation2 + $0x20] sm:$0x1]  ;;  %v4284_v54 = vld [vmem:[%s5355_s2 + $0x140] sm:$0xff]  }
  0x50   : > { %3903 = vmatmul.mubr.bf16.gmra.mxu0 %v3445_v18  ;;  %3987 = vmatmul.mubr.bf16.vlgmr.msra.gmra.mxu1 %v4262_v34  ;;  %v4279_v34 = vld [vmem:[#allocation2 + $0x54] sm:$0xff]   ;;  %v1085_v58 = vrot.slane %v4630_v19, 5  ;;  %v3477_v14 = vrot.slane %v1011_v10, 9  ;;  %v1072_v26 = vsel %vm4656_vm5, %v1070_v61, %v1071_v55  ;;  %v1076_v51 = vsel %vm4656_vm5, %v3476_v21, %v1075_v13  ;;  %v4286_v10 = vld [vmem:[%s5355_s2 + $0x1f8] sm:$0xff]  }
  0x51   : > { %3954 = vmatprep.mubr.bf16.mxu0 %v3494_v35  ;;  %4002 = vmatprep.subr.bf16.mxu0 %v4263_v47  ;;  %v1069_v6 = vsel %vm4656_vm5, %v3475_v59, %v1068_v48  ;;  %v4754_v25 = vrot.slane %v1082_v53, 4  ;;  %v4282_v18 = vld [vmem:[%s5355_s2 + $0x148] sm:$0xff]   ;;  %v1578_v23 = vshrl.u32 %v1541_v15, 16  ;;  %v3574_v63 = vrot.slane %v1966_v24, 9 }
  0x52   : > { %4035 = vmatpush3.bf16.msra.mxu1 %v4264_v1  ;;  %3990 = vmatprep.mubr.bf16.mxu1 %v4267_v16  ;;  %v1077_v1 = vrot.slane %v1075_v13, 4  ;;  %v1542_v16 = vld [vmem:[#allocation2 + $0x14] sm:$0x1]  ;;  %v2000_v28 = vrot.slane %v1541_v15, 5  ;;  %v3499_v31 = vcombine.low %v1069_v6, %v1072_v26  ;;  %v1592_v48 = vshll.u32 %v1543_v30, 16 }
  0x53   : > { %4036 = vmatprep.subr.bf16.mxu1 %v4266_v22  ;;  %v1584_v27 = vshll.u32 %v1542_v16, 16  ;;  %v2003_v8 = vrot.slane %v1542_v16, 5  ;;  %v4280_v33 = vld [vmem:[#allocation2 + $0x60] sm:$0xff]   ;;  %v1598_v49 = vshll.u32 %v1544_v42, 16  ;;  %v1967_v55 = vld [vmem:[#allocation2 + $0x18] sm:$0xe] }
  0x54   : > { %v1079_v35 = vsel %vm4656_vm5, %v1077_v1, %v1078_v4  ;;  %v1594_v59 = vrot.slane %v1592_v48, 5  ;;  %v1608_v61 = vshll.u32 %v1545_v45, 16  ;;  %v1086_v4 = vsel %vm4656_vm5, %v4754_v25, %v1085_v58  ;;  %v4285_v48 = vld [vmem:[%s5355_s2 + $0x1b8] sm:$0xff]  }
  0x55   : > { %v3500_v32 = vcombine.low %v1076_v51, %v1079_v35  ;;  %v1586_v41 = vrot.slane %v1584_v27, 5  ;;  %v1600_v1 = vrot.slane %v1598_v49, 5  ;;  %v1546_v35 = vld [vmem:[#allocation2 + $0x24] sm:$0xf] }
  0x56   : > { %4037 = vmatpush3.bf16.msra.mxu1 %v4266_v22  ;;  %v1574_v22 = vshll.u32 %v1541_v15, 16 }
  0x57   : > { %4038 = vmatprep.subr.bf16.mxu1 %v4270_v36 }
  0x58   : > { %3955 = vmatmul.mubr.bf16.vlgmr.msra.gmra.mxu0 %v3495_v29  ;;  %3991 = vmatmul.mubr.bf16.gmra.mxu1 %v4268_v39  ;;  %v4770_v29 = vsel %vm4656_vm5, %v3477_v14, %v1082_v53  ;;  %v1576_v38 = vrot.slane %v1574_v22, 5  ;;  %v1580_v39 = vrot.slane %v1578_v23, 4  ;;  %v4281_v53 = vld [vmem:[%s5355_s2 + $0x108] sm:$0xff]   ;;  %v1610_v14 = vrot.slane %v1608_v61, 5  ;;  %v4283_v22 = vld [vmem:[%s5355_s2 + $0x100] sm:$0xff]  }
  0x59   : > { %4003 = vmatpush3.bf16.msra.mxu0 %v4263_v47  ;;  %3958 = vmatprep.mubr.bf16.mxu0 %v3496_v44  ;;  %v1540_v47 = vld [vmem:[#allocation2 + $0xc] sm:$0xf]  ;;  %v2001_v44 = vsel %vm4656_vm5, %v3574_v63, %v2000_v28  ;;  %v3501_v25 = vcombine.low %v4770_v29, %v1086_v4  ;;  %v1549_v29 = vld [vmem:[#allocation2 + $0x30] sm:$0xf] }
  0x5a   : > { %4004 = vmatprep.subr.bf16.mxu0 %v4265_v2  ;;  %4039 = vmatpush3.bf16.msra.mxu1 %v4270_v36  ;;  %v1565_v20 = vshrl.u32 %v1540_v47, 16  ;;  %v1568_v60 = vshll.u32 %v1540_v47, 16  ;;  %v1581_v3 = vor.u32 %v1580_v39, %v1576_v38  ;;  %v1547_v47 = vld [vmem:[#allocation2 + $0x28] sm:$0xf]  ;;  %v1640_v49 = vshll.u32 %v1549_v29, 16 }
  0x5b   : > { %4040 = vmatprep.subr.bf16.mxu1 %v4272_v37  ;;  %3994 = vmatprep.mubr.bf16.mxu1 %v4273_v46  ;;  %v1589_v46 = vshrl.u32 %v1543_v30, 16  ;;  %v1622_v24 = vshll.u32 %v1547_v47, 16  ;;  %v1626_v27 = vshrl.u32 %v1547_v47, 16 }
  0x5c   : > { %v1567_v36 = vrot.slane %v1565_v20, 4  ;;  %v1613_v20 = vshrl.u32 %v1546_v35, 16 }
  0x5d   : > { %4005 = vmatpush3.bf16.msra.mxu0 %v4265_v2  ;;  %v1570_v2 = vrot.slane %v1568_v60, 5  ;;  %v1591_v57 = vrot.slane %v1589_v46, 4  ;;  %v1616_v60 = vshll.u32 %v1546_v35, 16  ;;  %v1628_v39 = vrot.slane %v1626_v27, 4  ;;  %v1969_v46 = vld [vmem:[#allocation2 + $0x30] sm:$0xe] }
  0x5e   : > { %4006 = vmatprep.subr.bf16.mxu0 %v4269_v17  ;;  %4041 = vmatpush3.bf16.msra.mxu1 %v4272_v37  ;;  %v2002_v37 = vrot.slane %v2000_v28, 4  ;;  %v1968_v28 = vld [vmem:[#allocation2 + $0x24] sm:$0xe]  ;;  %v1554_v35 = vld [vmem:[#allocation2 + $0x44] sm:$0x1] }
  0x5f   : > { %4042 = vmatprep.subr.bf16.mxu1 %v4276_v0  ;;  %v1571_v13 = vor.u32 %v1570_v2, %v1567_v36  ;;  %v1595_v5 = vor.u32 %v1594_v59, %v1591_v57  ;;  %v4288_v2 = vld [vmem:[%s5355_s2 + $0x1f0] sm:$0xff]   ;;  %v1970_v27 = vld [vmem:[#allocation2 + $0x3c] sm:$0xe] }
  0x60   : > { %3959 = vmatmul.mubr.bf16.gmra.mxu0 %v3497_v7  ;;  %3995 = vmatmul.mubr.bf16.gmra.mxu1 %v4274_v62  ;;  %v2004_v56 = vsel %vm4656_vm5, %v2002_v37, %v2003_v8  ;;  %v2014_v37 = vrot.slane %v1547_v47, 5  ;;  %v4287_v59 = vld [vmem:[%s5355_s2 + $0x1b0] sm:$0xff]  }
  0x61   : > { %4007 = vmatpush3.bf16.msra.mxu0 %v4269_v17  ;;  %3962 = vmatprep.mubr.bf16.mxu0 %v3498_v11  ;;  %v1602_v17 = vshrl.u32 %v1544_v42, 16  ;;  %v1572_v62 = vrot.slane %v1571_v13, 4  ;;  %v3598_v21 = vcombine.low %v2001_v44, %v2004_v56  ;;  %v1596_v58 = vrot.slane %v1595_v5, 4 }
  0x62   : > { %4008 = vmatprep.subr.bf16.mxu0 %v4271_v9  ;;  %4043 = vmatpush3.bf16.msra.mxu1 %v4276_v0  ;;  %v1582_v0 = vrot.slane %v1581_v3, 4  ;;  %v3576_v44 = vrot.slane %v1968_v28, 9  ;;  %v1637_v3 = vshrl.u32 %v1549_v29, 16  ;;  %v2016_v56 = vrot.slane %v2014_v37, 4  ;;  %v1556_v29 = vld [vmem:[#allocation2 + $0x4c] sm:$0xf] }
  0x63   : > { %4044 = vmatprep.subr.bf16.mxu1 %v4278_v12  ;;  %3998 = vmatprep.mubr.bf16.mxu1 %v4279_v34  ;;  %v1604_v7 = vrot.slane %v1602_v17, 4  ;;  %v1577_v19 = vsel %vm4507_vm2, %v1572_v62, %v1576_v38  ;;  %v2010_v34 = vrot.slane %v1545_v45, 5  ;;  %v1601_v15 = vsel %vm4507_vm2, %v1596_v58, %v1600_v1 }
  0x64   : > { %v1587_v11 = vsel %vm4507_vm2, %v1582_v0, %v1586_v41  ;;  %v1624_v38 = vrot.slane %v1622_v24, 5  ;;  %v1639_v62 = vrot.slane %v1637_v3, 4  ;;  %v1642_v0 = vrot.slane %v1640_v49, 5  ;;  %v1971_v3 = vld [vmem:[#allocation2 + $0x48] sm:$0xe]  ;;  %v4296_v49 = vld [vmem:[%s5355_s2 + $0x1d0] sm:$0xff]  }
  0x65   : > { %4009 = vmatpush3.bf16.msra.mxu0 %v4271_v9  ;;  %v3575_v9 = vrot.slane %v1967_v55, 9  ;;  %v1605_v6 = vor.u32 %v1604_v7, %v1600_v1  ;;  %v3558_v26 = vcombine.low %v1577_v19, %v1587_v11  ;;  %v4290_v1 = vld [vmem:[%s5355_s2 + $0x1e8] sm:$0xff]   ;;  %v3577_v11 = vrot.slane %v1969_v46, 9 }
  0x66   : > { %4010 = vmatprep.subr.bf16.mxu0 %v4275_v40  ;;  %4045 = vmatpush3.bf16.msra.mxu1 %v4278_v12  ;;  %v2007_v12 = vrot.slane %v1544_v42, 5  ;;  %v4812_v42 = vld [vmem:[#allocation2 + $0x38] sm:$0x1]  ;;  %v1629_v13 = vor.u32 %v1628_v39, %v1624_v38  ;;  %v1643_v19 = vor.u32 %v1642_v0, %v1639_v62  ;;  %v2031_v46 = vrot.slane %v1554_v35, 5 }
  0x67   : > { %4046 = vmatprep.subr.bf16.mxu1 %v4282_v18  ;;  %v1606_v16 = vrot.slane %v1605_v6, 4  ;;  %v1656_v7 = vshll.u32 %v4812_v42, 16  ;;  %v1698_v62 = vshrl.u32 %v1556_v29, 16 }
  0x68   : > { %3963 = vmatmul.mubr.bf16.gmra.mxu0 %v3499_v31  ;;  %3999 = vmatmul.mubr.bf16.gmra.mxu1 %v4280_v33  ;;  %v2009_v51 = vrot.slane %v2007_v12, 4  ;;  %v1615_v31 = vrot.slane %v1613_v20, 4  ;;  %v1550_v33 = vld [vmem:[#allocation2 + $0x34] sm:$0xf]  ;;  %v1630_v61 = vrot.slane %v1629_v13, 4 }
  0x69   : > { %4011 = vmatpush3.bf16.msra.mxu0 %v4275_v40  ;;  %3966 = vmatprep.mubr.bf16.mxu0 %v3500_v32  ;;  %v2008_v40 = vsel %vm4656_vm5, %v3575_v9, %v2007_v12  ;;  %v1611_v8 = vsel %vm4507_vm2, %v1606_v16, %v1610_v14  ;;  %v1618_v32 = vrot.slane %v1616_v60, 5  ;;  %v1646_v17 = vshll.u32 %v1550_v33, 16  ;;  %v4292_v12 = vld [vmem:[%s5355_s2 + $0x1e0] sm:$0xff]  }
  0x6a   : > { %4012 = vmatprep.subr.bf16.mxu0 %v4277_v43  ;;  %4047 = vmatpush3.bf16.msra.mxu1 %v4282_v18  ;;  %v1548_v18 = vld [vmem:[#allocation2 + $0x2c] sm:$0x1]  ;;  %v2011_v23 = vsel %vm4656_vm5, %v2009_v51, %v2010_v34  ;;  %v3559_v36 = vcombine.low %v1601_v15, %v1611_v8  ;;  %v1650_v57 = vshrl.u32 %v1550_v33, 16  ;;  %v1658_v6 = vrot.slane %v1656_v7, 5  ;;  %v1553_v51 = vld [vmem:[#allocation2 + $0x40] sm:$0xf] }
  0x6b   : > { %4048 = vmatprep.subr.bf16.mxu1 %v4284_v54  ;;  %4050 = vmatprep.mubr.bf16.mxu1 %v3598_v21  ;;  %v1632_v63 = vshll.u32 %v1548_v18, 16  ;;  %v3599_v30 = vcombine.low %v2008_v40, %v2011_v23  ;;  %v2017_v45 = vrot.slane %v1548_v18, 5  ;;  %v1648_v21 = vrot.slane %v1646_v17, 5  ;;  %v4289_v18 = vld [vmem:[%s5355_s2 + $0x1a8] sm:$0xff]  }
  0x6c   : > { %v1652_v5 = vrot.slane %v1650_v57, 4  ;;  %v2021_v14 = vrot.slane %v1550_v33, 5  ;;  %v2024_v40 = vrot.slane %v4812_v42, 5  ;;  %v1670_v23 = vshll.u32 %v1553_v51, 16 }
  0x6d   : > { %4013 = vmatpush3.bf16.msra.mxu0 %v4277_v43  ;;  %v1634_v41 = vrot.slane %v1632_v63, 5  ;;  %v1619_v43 = vor.u32 %v1618_v32, %v1615_v31  ;;  %v1674_v24 = vshrl.u32 %v1553_v51, 16  ;;  %v4294_v63 = vld [vmem:[%s5355_s2 + $0x1d8] sm:$0xff]   ;;  %v1680_v31 = vshll.u32 %v1554_v35, 16  ;;  %v4298_v35 = vld [vmem:[%s5355_s2 + $0x1c8] sm:$0xff]  }
  0x6e   : > { %4014 = vmatprep.subr.bf16.mxu0 %v4281_v53  ;;  %4049 = vmatpush3.bf16.msra.mxu1 %v4284_v54  ;;  %v2015_v54 = vsel %vm4656_vm5, %v3576_v44, %v2014_v37  ;;  %v1653_v58 = vor.u32 %v1652_v5, %v1648_v21  ;;  %v2022_v15 = vsel %vm4656_vm5, %v3577_v11, %v2021_v14  ;;  %v2023_v16 = vrot.slane %v2021_v14, 4  ;;  %v1555_v32 = vld [vmem:[#allocation2 + $0x48] sm:$0xf] }
  0x6f   : > { %4098 = vmatprep.subr.bf16.mxu1 %v4286_v10  ;;  %v1620_v55 = vrot.slane %v1619_v43, 4  ;;  %v1635_v9 = vsel %vm4507_vm2, %v1630_v61, %v1634_v41  ;;  %v1672_v39 = vrot.slane %v1670_v23, 5  ;;  %v4853_v41 = vld [vmem:[#allocation2 + $0x50] sm:$0x1]  ;;  %v1676_v42 = vrot.slane %v1674_v24, 4  ;;  %v4295_v23 = vld [vmem:[%s5355_s2 + $0x190] sm:$0xff]  }
  0x70   : > { %3967 = vmatmul.mubr.bf16.gmra.mxu0 %v3501_v25  ;;  %v1552_v25 = vld [vmem:[#allocation2 + $0x3c] sm:$0xf]  ;;  %v1654_v47 = vrot.slane %v1653_v58, 4  ;;  %v2025_v8 = vsel %vm4656_vm5, %v2023_v16, %v2024_v40  ;;  %v1682_v43 = vrot.slane %v1680_v31, 5  ;;  %v3578_v44 = vrot.slane %v1970_v27, 9 }
  0x71   : > { %4015 = vmatpush3.bf16.msra.mxu0 %v4281_v53  ;;  %4018 = vmatprep.mubr.bf16.mxu0 %v3558_v26  ;;  %v1625_v4 = vsel %vm4507_vm2, %v1620_v55, %v1624_v38  ;;  %v2018_v53 = vsel %vm4656_vm5, %v2016_v56, %v2017_v45  ;;  %v1644_v26 = vrot.slane %v1643_v19, 4  ;;  %v1661_v20 = vshrl.u32 %v1552_v25, 16  ;;  %v1558_v19 = vld [vmem:[#allocation2 + $0x54] sm:$0xf] }
  0x72   : > { %4016 = vmatprep.subr.bf16.mxu0 %v4283_v22  ;;  %4051 = vmatmul.mubr.bf16.vlgmr.msra.gmra.mxu1 %v3599_v30  ;;  %v3560_v34 = vcombine.low %v1625_v4, %v1635_v9  ;;  %v1659_v28 = vsel %vm4507_vm2, %v1654_v47, %v1658_v6  ;;  %v2028_v37 = vrot.slane %v1553_v51, 5  ;;  %v1688_v13 = vshll.u32 %v1555_v32, 16  ;;  %v1559_v6 = vld [vmem:[#allocation2 + $0x58] sm:$0xf]  ;;  %v4871_v51 = vld [vmem:[#allocation2 + $0x5c] sm:$0x1] }
  0x73   : > { %4099 = vmatpush3.bf16.msra.mxu1 %v4286_v10  ;;  %v3600_v10 = vcombine.low %v2015_v54, %v2018_v53  ;;  %v1649_v60 = vsel %vm4507_vm2, %v1644_v26, %v1648_v21  ;;  %v1663_v30 = vrot.slane %v1661_v20, 4  ;;  %v1677_v17 = vor.u32 %v1676_v42, %v1672_v39  ;;  %v371_v20 = vld [vmem:[%s4725_s23 + $0x8] sm:$0x1] }
  0x74   : > { %4100 = vmatprep.subr.bf16.mxu1 %v4288_v2  ;;  %v3561_v33 = vcombine.low %v1649_v60, %v1659_v28  ;;  %v2029_v55 = vsel %vm4656_vm5, %v3578_v44, %v2028_v37  ;;  %v2030_v54 = vrot.slane %v2028_v37, 4  ;;  %v1694_v56 = vshll.u32 %v1556_v29, 16  ;;  %378 = vst [vmem:[#allocation2 + $0x68] sm:$0x1] %v371_v20  ;;  %v1973_v37 = vld [vmem:[#allocation2 + $0x60] sm:$0xe] }
  0x75   : > { %4017 = vmatpush3.bf16.msra.mxu0 %v4283_v22  ;;  %4054 = vmatprep.mubr.bf16.mxu1 %v3600_v10  ;;  %v1664_v22 = vshll.u32 %v1552_v25, 16  ;;  %v1690_v61 = vrot.slane %v1688_v13, 5  ;;  %v1678_v0 = vrot.slane %v1677_v17, 4  ;;  %v1704_v4 = vshll.u32 %v4853_v41, 16  ;;  %v4293_v10 = vld [vmem:[%s5355_s2 + $0x198] sm:$0xff]  }
  0x76   : > { %4066 = vmatprep.subr.bf16.mxu0 %v4285_v48  ;;  %v2032_v21 = vsel %vm4656_vm5, %v2030_v54, %v2031_v46  ;;  %v1700_v9 = vrot.slane %v1698_v62, 4  ;;  %v2035_v58 = vrot.slane %v1556_v29, 5  ;;  %v2038_v40 = vrot.slane %v4853_v41, 5  ;;  %v4300_v29 = vld [vmem:[%s5355_s2 + $0x1c0] sm:$0xff]   ;;  %v4901_v62 = vld [vmem:[%s5355_s2 + $0x238] sm:$0xff]  }
  0x77   : > { %4101 = vmatpush3.bf16.msra.mxu1 %v4288_v2  ;;  %v4291_v2 = vld [vmem:[%s5355_s2 + $0x1a0] sm:$0xff]   ;;  %v1666_v38 = vrot.slane %v1664_v22, 5  ;;  %v3602_v5 = vcombine.low %v2029_v55, %v2032_v21  ;;  %v1683_v11 = vsel %vm4507_vm2, %v1678_v0, %v1682_v43  ;;  %v1709_v16 = vshrl.u32 %v1558_v19, 16 }
  0x78   : > { %4019 = vmatmul.mubr.bf16.vlgmr.msra.gmra.mxu0 %v3559_v36  ;;  %4102 = vmatprep.subr.bf16.mxu1 %v4290_v1  ;;  %v3601_v36 = vcombine.low %v2022_v15, %v2025_v8  ;;  %v2037_v15 = vrot.slane %v2035_v58, 4  ;;  %v1718_v24 = vshll.u32 %v1559_v6, 16  ;;  %v1722_v27 = vshrl.u32 %v1559_v6, 16 }
  0x79   : > { %4067 = vmatpush3.bf16.msra.mxu0 %v4285_v48  ;;  %4022 = vmatprep.mubr.bf16.mxu0 %v3560_v34  ;;  %v1667_v45 = vor.u32 %v1666_v38, %v1663_v30  ;;  %v1685_v48 = vshrl.u32 %v1555_v32, 16  ;;  %v3579_v34 = vrot.slane %v1971_v3, 9  ;;  %v1711_v8 = vrot.slane %v1709_v16, 4  ;;  %v1561_v32 = vld [vmem:[#allocation2 + $0x60] sm:$0xf]  ;;  %v4297_v3 = vld [vmem:[%s5355_s2 + $0x188] sm:$0xff]  }
  0x7a   : > { %4068 = vmatprep.subr.bf16.mxu0 %v4287_v59  ;;  %4055 = vmatmul.mubr.bf16.gmra.mxu1 %v3601_v36  ;;  %v2039_v28 = vsel %vm4656_vm5, %v2037_v15, %v2038_v40  ;;  %v1728_v31 = vshll.u32 %v4871_v51, 16  ;;  %v1724_v38 = vrot.slane %v1722_v27, 4  ;;  %v2042_v46 = vrot.slane %v1559_v6, 5  ;;  %v2507_v6 = vld [vmem:[#allocation2 + $0x18] sm:$0xf] }
  0x7b   : > { %4103 = vmatpush3.bf16.msra.mxu1 %v4290_v1  ;;  %v1668_v57 = vrot.slane %v1667_v45, 4  ;;  %v1696_v1 = vrot.slane %v1694_v56, 5  ;;  %4058 = vmatprep.mubr.bf16.mxu1 %v3602_v5  ;;  %v2036_v47 = vsel %vm4656_vm5, %v3579_v34, %v2035_v58  ;;  %v1733_v13 = vshrl.u32 %v1561_v32, 16  ;;  %v1563_v21 = vld [vmem:[#allocation2 + $0x68] sm:$0x1]  ;;  %v4299_v5 = vld [vmem:[%s5355_s2 + $0x180] sm:$0xff]  }
  0x7c   : > { %4104 = vmatprep.subr.bf16.mxu1 %v4292_v12  ;;  %v3603_v36 = vcombine.low %v2036_v47, %v2039_v28  ;;  %v1730_v43 = vrot.slane %v1728_v31, 5  ;;  %v1736_v17 = vshll.u32 %v1561_v32, 16  ;;  %v4912_v40 = vld [vmem:[#allocation2 + $0x1c] sm:$0xf]  ;;  %v4915_v15 = vld [vmem:[#allocation2 + $0x20] sm:$0x1] }
  0x7d   : > { %4069 = vmatpush3.bf16.msra.mxu0 %v4287_v59  ;;  %v1687_v59 = vrot.slane %v1685_v48, 4  ;;  %v1673_v53 = vsel %vm4507_vm2, %v1668_v57, %v1672_v39  ;;  %v1701_v26 = vor.u32 %v1700_v9, %v1696_v1  ;;  %v1562_v39 = vld [vmem:[#allocation2 + $0x64] sm:$0xf]  ;;  %v2045_v48 = vrot.slane %v4871_v51, 5 }
  0x7e   : > { %4070 = vmatprep.subr.bf16.mxu0 %v4289_v18  ;;  %v3562_v14 = vcombine.low %v1673_v53, %v1683_v11  ;;  %v1742_v55 = vshll.u32 %v1562_v39, 16  ;;  %v1746_v54 = vshrl.u32 %v1562_v39, 16  ;;  %v2532_v51 = vshrl.u32 %v2507_v6, 16 }
  0x7f   : > { %4105 = vmatpush3.bf16.msra.mxu1 %v4292_v12  ;;  %v1691_v7 = vor.u32 %v1690_v61, %v1687_v59  ;;  %v1706_v12 = vrot.slane %v1704_v4, 5  ;;  %v1702_v22 = vrot.slane %v1701_v26, 4  ;;  %v2044_v59 = vrot.slane %v2042_v46, 4 }
  0x80   : > { %4023 = vmatmul.mubr.bf16.gmra.mxu0 %v3561_v33  ;;  %4106 = vmatprep.subr.bf16.mxu1 %v4294_v63  ;;  %v1735_v61 = vrot.slane %v1733_v13, 4  ;;  %v1744_v4 = vrot.slane %v1742_v55, 5  ;;  %v1748_v53 = vrot.slane %v1746_v54, 4  ;;  %v2052_v26 = vrot.slane %v1563_v21, 5 }
  0x81   : > { %4071 = vmatpush3.bf16.msra.mxu0 %v4289_v18  ;;  %v1692_v25 = vrot.slane %v1691_v7, 4  ;;  %v1712_v18 = vshll.u32 %v1558_v19, 16  ;;  %4026 = vmatprep.mubr.bf16.mxu0 %v3562_v14  ;;  %v1707_v33 = vsel %vm4507_vm2, %v1702_v22, %v1706_v12  ;;  %v2046_v9 = vsel %vm4656_vm5, %v2044_v59, %v2045_v48  ;;  %v4301_v22 = vld [vmem:[#allocation2 + $0x18] sm:$0xff]  }
  0x82   : > { %4072 = vmatprep.subr.bf16.mxu0 %v4291_v2  ;;  %4059 = vmatmul.mubr.bf16.gmra.mxu1 %v3603_v36  ;;  %v3581_v19 = vrot.slane %v1973_v37, 9  ;;  %v1749_v58 = vor.u32 %v1748_v53, %v1744_v4  ;;  %v2535_v16 = vshll.u32 %v2507_v6, 16  ;;  %v4928_v36 = vld [vmem:[#allocation2 + $0x28] sm:$0xf]  ;;  %v4945_v53 = vld [vmem:[#allocation2 + $0x34] sm:$0xf] }
  0x83   : > { %4107 = vmatpush3.bf16.msra.mxu1 %v4294_v63  ;;  %v1697_v60 = vsel %vm4507_vm2, %v1692_v25, %v1696_v1  ;;  %v1972_v63 = vld [vmem:[#allocation2 + $0x54] sm:$0xe]  ;;  %v1714_v30 = vrot.slane %v1712_v18, 5  ;;  %v1738_v1 = vrot.slane %v1736_v17, 5  ;;  %v2049_v25 = vrot.slane %v1562_v39, 5  ;;  %v4302_v17 = vld [vmem:[#allocation2 + $0x24] sm:$0xff]  }
  0x84   : > { %4108 = vmatprep.subr.bf16.mxu1 %v4296_v49  ;;  %v3563_v41 = vcombine.low %v1697_v60, %v1707_v33  ;;  %v3580_v44 = vrot.slane %v1972_v63, 9  ;;  %v1750_v47 = vrot.slane %v1749_v58, 4  ;;  %v2541_v18 = vshll.u32 %v4912_v40, 16 }
  0x85   : > { %4073 = vmatpush3.bf16.msra.mxu0 %v4291_v2  ;;  %v1720_v2 = vrot.slane %v1718_v24, 5  ;;  %v1715_v42 = vor.u32 %v1714_v30, %v1711_v8  ;;  %v1739_v34 = vor.u32 %v1738_v1, %v1735_v61  ;;  %v2050_v20 = vsel %vm4656_vm5, %v3581_v19, %v2049_v25  ;;  %v2510_v30 = vld [vmem:[#allocation2 + $0x24] sm:$0xf]  ;;  %v4305_v61 = vld [vmem:[#allocation2 + $0x30] sm:$0xff]  }
  0x86   : > { %4074 = vmatprep.subr.bf16.mxu0 %v4293_v10  ;;  %v2043_v57 = vsel %vm4656_vm5, %v3580_v44, %v2042_v46  ;;  %v2051_v60 = vrot.slane %v2049_v25, 4  ;;  %v2545_v24 = vshrl.u32 %v4912_v40, 16  ;;  %v2537_v28 = vrot.slane %v2535_v16, 5  ;;  %v4955_v16 = vld [vmem:[#allocation2 + $0x40] sm:$0xf] }
  0x87   : > { %4109 = vmatpush3.bf16.msra.mxu1 %v4296_v49  ;;  %v1725_v45 = vor.u32 %v1724_v38, %v1720_v2  ;;  %v1716_v49 = vrot.slane %v1715_v42, 4  ;;  %v3604_v12 = vcombine.low %v2043_v57, %v2046_v9  ;;  %v2543_v8 = vrot.slane %v2541_v18, 5 }
  0x88   : > { %4110 = vmatprep.subr.bf16.mxu1 %v4298_v35  ;;  %4027 = vmatmul.mubr.bf16.gmra.mxu0 %v3563_v41  ;;  %v2053_v32 = vsel %vm4656_vm5, %v2051_v60, %v2052_v26  ;;  %v2551_v33 = vshll.u32 %v4915_v15, 16  ;;  %v2556_v41 = vshrl.u32 %v2510_v30, 16  ;;  %v2559_v42 = vshll.u32 %v2510_v30, 16 }
  0x89   : > { %4075 = vmatpush3.bf16.msra.mxu0 %v4293_v10  ;;  %v1726_v56 = vrot.slane %v1725_v45, 4  ;;  %v1721_v0 = vsel %vm4507_vm2, %v1716_v49, %v1720_v2  ;;  %v1752_v10 = vshll.u32 %v1563_v21, 16  ;;  %4062 = vmatprep.mubr.bf16.mxu1 %v3604_v12  ;;  %v4930_v2 = vld [vmem:[#allocation2 + $0x2c] sm:$0x1]  ;;  %v3605_v38 = vcombine.low %v2050_v20, %v2053_v32 }
  0x8a   : > { %4076 = vmatprep.subr.bf16.mxu0 %v4295_v23  ;;  %v2553_v44 = vrot.slane %v2551_v33, 5  ;;  %v2565_v37 = vshll.u32 %v4928_v36, 16  ;;  %v2569_v45 = vshrl.u32 %v4928_v36, 16  ;;  %v2558_v48 = vrot.slane %v2556_v41, 4 }
  0x8b   : > { %4111 = vmatpush3.bf16.msra.mxu1 %v4298_v35  ;;  %v1731_v7 = vsel %vm4507_vm2, %v1726_v56, %v1730_v43  ;;  %v1754_v14 = vrot.slane %v1752_v10, 5  ;;  %v1740_v35 = vrot.slane %v1739_v34, 4  ;;  %v2561_v13 = vrot.slane %v2559_v42, 5  ;;  %v372_v34 = vld [vmem:[%s4725_s23 + $0xc] sm:$0xff]  }
  0x8c   : > { %4112 = vmatprep.subr.bf16.mxu1 %v4300_v29  ;;  %v3564_v11 = vcombine.low %v1721_v0, %v1731_v7  ;;  %4063 = vmatmul.mubr.bf16.gmra.mxu1 %v3605_v38  ;;  %v2567_v55 = vrot.slane %v2565_v37, 5  ;;  %v2571_v54 = vrot.slane %v2569_v45, 4  ;;  %v2513_v0 = vld [vmem:[#allocation2 + $0x30] sm:$0xf]  ;;  %v2593_v12 = vshrl.u32 %v4945_v53, 16  ;;  %379 = vst [vmem:[#allocation2 + $0x6c] sm:$0xff] %v372_v34  }
  0x8d   : > { %4077 = vmatpush3.bf16.msra.mxu0 %v4295_v23  ;;  %v2534_v23 = vrot.slane %v2532_v51, 4  ;;  %v1745_v27 = vsel %vm4507_vm2, %v1740_v35, %v1744_v4  ;;  %v1755_v63 = vsel %vm4507_vm2, %v1750_v47, %v1754_v14  ;;  %v2562_v57 = vor.u32 %v2561_v13, %v2558_v48  ;;  %v4943_v4 = vld [vmem:[%s5355_s2 + $0x230] sm:$0xff]   ;;  %v2516_v47 = vld [vmem:[#allocation2 + $0x3c] sm:$0xf]  ;;  %v4309_v37 = vld [vmem:[#allocation2 + $0x48] sm:$0xff]  }
  0x8e   : > { %4078 = vmatprep.subr.bf16.mxu0 %v4297_v3  ;;  %4030 = vmatprep.mubr.bf16.mxu0 %v3564_v11  ;;  %v3565_v31 = vcombine.low %v1745_v27, %v1755_v63  ;;  %v2572_v1 = vor.u32 %v2571_v54, %v2567_v55  ;;  %v2580_v7 = vshrl.u32 %v2513_v0, 16  ;;  %v2583_v9 = vshll.u32 %v2513_v0, 16  ;;  %v4306_v38 = vld [vmem:[#allocation2 + $0x3c] sm:$0xff]   ;;  %v2519_v45 = vld [vmem:[#allocation2 + $0x48] sm:$0xf]  ;;  %v4981_v13 = vld [vmem:[%s5355_s2 + $0x220] sm:$0xff]  }
  0x8f   : > { %4113 = vmatpush3.bf16.msra.mxu1 %v4300_v29  ;;  %v2547_v29 = vrot.slane %v2545_v24, 4  ;;  %v2538_v39 = vor.u32 %v2537_v28, %v2534_v23  ;;  %v2563_v19 = vrot.slane %v2562_v57, 4  ;;  %v2589_v11 = vshll.u32 %v4945_v53, 16  ;;  %v4964_v24 = vld [vmem:[%s5355_s2 + $0x228] sm:$0xff]  }
  0x90   : > { %4162 = vmatprep.subr.bf16.mxu1 %v4901_v62  ;;  %4031 = vmatmul.mubr.bf16.gmra.mxu0 %v3565_v31  ;;  %v2573_v58 = vrot.slane %v2572_v1, 4  ;;  %v2582_v6 = vrot.slane %v2580_v7, 4  ;;  %v2585_v14 = vrot.slane %v2583_v9, 5  ;;  %v2595_v35 = vrot.slane %v2593_v12, 4  ;;  %v2522_v1 = vld [vmem:[#allocation2 + $0x54] sm:$0xf] }
  0x91   : > { %4079 = vmatpush3.bf16.msra.mxu0 %v4297_v3  ;;  %v2548_v43 = vor.u32 %v2547_v29, %v2543_v8  ;;  %v2539_v46 = vrot.slane %v2538_v39, 4  ;;  %v2575_v3 = vshll.u32 %v4930_v2, 16  ;;  %4082 = vmatprep.mubr.bf16.mxu0 %v4301_v22  ;;  %v2568_v26 = vsel %vm4507_vm2, %v2563_v19, %v2567_v55  ;;  %v4959_v22 = vld [vmem:[#allocation2 + $0x44] sm:$0x1]  ;;  %v4992_v19 = vld [vmem:[#allocation2 + $0x58] sm:$0xf] }
  0x92   : > { %4080 = vmatprep.subr.bf16.mxu0 %v4299_v5  ;;  %v2591_v51 = vrot.slane %v2589_v11, 5  ;;  %v2586_v20 = vor.u32 %v2585_v14, %v2582_v6  ;;  %v2604_v23 = vshrl.u32 %v2516_v47, 16  ;;  %v2607_v28 = vshll.u32 %v2516_v47, 16  ;;  %v4997_v6 = vld [vmem:[#allocation2 + $0x5c] sm:$0x1] }
  0x93   : > { %v2549_v49 = vrot.slane %v2548_v43, 4  ;;  %v2544_v56 = vsel %vm4507_vm2, %v2539_v46, %v2543_v8  ;;  %v2577_v59 = vrot.slane %v2575_v3, 5  ;;  %v2613_v8 = vshll.u32 %v4955_v16, 16  ;;  %v4985_v3 = vld [vmem:[#allocation2 + $0x50] sm:$0x1] }
  0x94   : > { %v2596_v63 = vor.u32 %v2595_v35, %v2591_v51  ;;  %v2587_v30 = vrot.slane %v2586_v20, 4  ;;  %v2606_v31 = vrot.slane %v2604_v23, 4  ;;  %v2617_v32 = vshrl.u32 %v4955_v16, 16  ;;  %v4311_v23 = vld [vmem:[%s5355_s2 + $0x218] sm:$0xff]  }
  0x95   : > { %4081 = vmatpush3.bf16.msra.mxu0 %v4299_v5  ;;  %v2554_v21 = vsel %vm4507_vm2, %v2549_v49, %v2553_v44  ;;  %v4947_v5 = vld [vmem:[#allocation2 + $0x38] sm:$0x1]  ;;  %v2578_v18 = vsel %vm4507_vm2, %v2573_v58, %v2577_v59  ;;  %v2623_v29 = vshll.u32 %v4959_v22, 16  ;;  %v2609_v39 = vrot.slane %v2607_v28, 5 }
  0x96   : > { %4130 = vmatprep.subr.bf16.mxu0 %v4901_v62  ;;  %v3662_v10 = vcombine.low %v2544_v56, %v2554_v21  ;;  %v2599_v25 = vshll.u32 %v4947_v5, 16  ;;  %v3663_v27 = vcombine.low %v2568_v26, %v2578_v18  ;;  %v2597_v33 = vrot.slane %v2596_v63, 4  ;;  %v4310_v18 = vld [vmem:[#allocation2 + $0x54] sm:$0xff]  }
  0x97   : > { %v2615_v41 = vrot.slane %v2613_v8, 5  ;;  %v2592_v42 = vsel %vm4507_vm2, %v2587_v30, %v2591_v51  ;;  %v2619_v43 = vrot.slane %v2617_v32, 4  ;;  %v2625_v44 = vrot.slane %v2623_v29, 5 }
  0x98   : > { %4114 = vmatprep.mubr.bf16.mxu1 %v3662_v10  ;;  %4083 = vmatmul.mubr.bf16.vlgmr.msra.gmra.mxu0 %v4302_v17  ;;  %v2601_v60 = vrot.slane %v2599_v25, 5  ;;  %v2610_v48 = vor.u32 %v2609_v39, %v2606_v31  ;;  %v2628_v49 = vshrl.u32 %v2519_v45, 16  ;;  %v2631_v17 = vshll.u32 %v2519_v45, 16 }
  0x99   : > { %4131 = vmatpush3.bf16.msra.mxu0 %v4901_v62  ;;  %4086 = vmatprep.mubr.bf16.mxu0 %v4305_v61  ;;  %v2620_v54 = vor.u32 %v2619_v43, %v2615_v41  ;;  %v2647_v21 = vshll.u32 %v4985_v3, 16  ;;  %v2652_v11 = vshrl.u32 %v2522_v1, 16  ;;  %v2655_v14 = vshll.u32 %v2522_v1, 16  ;;  %v5027_v43 = vld [vmem:[#allocation2 + $0x64] sm:$0xf] }
  0x9a   : > { %4132 = vmatprep.subr.bf16.mxu0 %v4943_v4  ;;  %4115 = vmatmul.mubr.bf16.vlgmr.msra.gmra.mxu1 %v3663_v27  ;;  %v2602_v46 = vsel %vm4507_vm2, %v2597_v33, %v2601_v60  ;;  %v2611_v59 = vrot.slane %v2610_v48, 4  ;;  %v2630_v61 = vrot.slane %v2628_v49, 4  ;;  %v2633_v0 = vrot.slane %v2631_v17, 5  ;;  %v4313_v33 = vld [vmem:[#allocation2 + $0x60] sm:$0xff]  }
  0x9b   : > { %4170 = vmatpush3.bf16.msra.mxu1 %v4901_v62  ;;  %v4983_v62 = vld [vmem:[#allocation2 + $0x4c] sm:$0xf]  ;;  %v3664_v55 = vcombine.low %v2592_v42, %v2602_v46  ;;  %v2621_v7 = vrot.slane %v2620_v54, 4  ;;  %v2649_v58 = vrot.slane %v2647_v21, 5  ;;  %v2654_v26 = vrot.slane %v2652_v11, 4 }
  0x9c   : > { %4163 = vmatprep.subr.bf16.mxu1 %v4943_v4  ;;  %v2637_v56 = vshll.u32 %v4983_v62, 16  ;;  %v2641_v57 = vshrl.u32 %v4983_v62, 16  ;;  %v2616_v12 = vsel %vm4507_vm2, %v2611_v59, %v2615_v41  ;;  %v2634_v34 = vor.u32 %v2633_v0, %v2630_v61  ;;  %v2528_v0 = vld [vmem:[#allocation2 + $0x6c] sm:$0xf]  ;;  %v5038_v21 = vld [vmem:[#allocation2 + $0x70] sm:$0xf] }
  0x9d   : > { %4133 = vmatpush3.bf16.msra.mxu0 %v4943_v4  ;;  %4118 = vmatprep.mubr.bf16.mxu1 %v3664_v55  ;;  %v2661_v51 = vshll.u32 %v4992_v19, 16  ;;  %v2657_v20 = vrot.slane %v2655_v14, 5  ;;  %v2665_v60 = vshrl.u32 %v4992_v19, 16  ;;  %v2671_v28 = vshll.u32 %v4997_v6, 16 }
  0x9e   : > { %4134 = vmatprep.subr.bf16.mxu0 %v4964_v24  ;;  %v2639_v9 = vrot.slane %v2637_v56, 5  ;;  %v2643_v10 = vrot.slane %v2641_v57, 4  ;;  %v2635_v47 = vrot.slane %v2634_v34, 4  ;;  %v3002_v8 = vrot.slane %v4992_v19, 5  ;;  %v374_v56 = vld [vmem:[%s4725_s23 + $0x14] sm:$0x1] }
  0x9f   : > { %4171 = vmatpush3.bf16.msra.mxu1 %v4943_v4  ;;  %v2626_v4 = vsel %vm4507_vm2, %v2621_v7, %v2625_v44  ;;  %v2663_v63 = vrot.slane %v2661_v51, 5  ;;  %v2658_v31 = vor.u32 %v2657_v20, %v2654_v26  ;;  %v2667_v32 = vrot.slane %v2665_v60, 4  ;;  %v5029_v44 = vld [vmem:[#allocation2 + $0x68] sm:$0x1]  ;;  %381 = vst [vmem:[#allocation2 + $0x74] sm:$0x1] %v374_v56 }
  0xa0   : > { %4087 = vmatmul.mubr.bf16.gmra.mxu0 %v4306_v38  ;;  %4164 = vmatprep.subr.bf16.mxu1 %v4964_v24  ;;  %v2644_v25 = vor.u32 %v2643_v10, %v2639_v9  ;;  %v3665_v35 = vcombine.low %v2616_v12, %v2626_v4  ;;  %v2640_v30 = vsel %vm4507_vm2, %v2635_v47, %v2639_v9  ;;  %v3005_v29 = vrot.slane %v4997_v6, 5  ;;  %v2525_v38 = vld [vmem:[#allocation2 + $0x60] sm:$0xf]  ;;  %v4314_v26 = vld [vmem:[#allocation2 + $0x6c] sm:$0xff]   ;;  %v2933_v20 = vld [vmem:[#allocation2 + $0x18] sm:$0xe] }
  0xa1   : > { %4135 = vmatpush3.bf16.msra.mxu0 %v4964_v24  ;;  %4090 = vmatprep.mubr.bf16.mxu0 %v4309_v37  ;;  %v2673_v41 = vrot.slane %v2671_v28, 5  ;;  %v5025_v42 = vrot.slane %v3002_v8, 4  ;;  %v2659_v45 = vrot.slane %v2658_v31, 4  ;;  %v2668_v46 = vor.u32 %v2667_v32, %v2663_v63  ;;  %v4316_v32 = vld [vmem:[%s5355_s2 + $0x200] sm:$0xff]  }
  0xa2   : > { %4136 = vmatprep.subr.bf16.mxu0 %v4981_v13  ;;  %v2645_v27 = vrot.slane %v2644_v25, 4  ;;  %4119 = vmatmul.mubr.bf16.gmra.mxu1 %v3665_v35  ;;  %v2676_v48 = vshrl.u32 %v2525_v38, 16  ;;  %v2679_v49 = vshll.u32 %v2525_v38, 16  ;;  %v2685_v17 = vshll.u32 %v5027_v43, 16 }
  0xa3   : > { %4172 = vmatpush3.bf16.msra.mxu1 %v4964_v24  ;;  %v5018_v24 = vld [vmem:[%s5355_s2 + $0x210] sm:$0xff]   ;;  %v2689_v55 = vshrl.u32 %v5027_v43, 16  ;;  %v2695_v54 = vshll.u32 %v5029_v44, 16  ;;  %v2664_v57 = vsel %vm4507_vm2, %v2659_v45, %v2663_v63  ;;  %v2669_v59 = vrot.slane %v2668_v46, 4 }
  0xa4   : > { %4165 = vmatprep.subr.bf16.mxu1 %v4981_v13  ;;  %v2650_v39 = vsel %vm4507_vm2, %v2645_v27, %v2649_v58  ;;  %v2678_v61 = vrot.slane %v2676_v48, 4  ;;  %v2687_v1 = vrot.slane %v2685_v17, 5  ;;  %v2700_v11 = vshrl.u32 %v2528_v0, 16  ;;  %v4315_v58 = vld [vmem:[%s5355_s2 + $0x208] sm:$0xff]   ;;  %v2934_v48 = vld [vmem:[#allocation2 + $0x24] sm:$0xe] }
  0xa5   : > { %4137 = vmatpush3.bf16.msra.mxu0 %v4981_v13  ;;  %v3666_v37 = vcombine.low %v2640_v30, %v2650_v39  ;;  %v2691_v7 = vrot.slane %v2689_v55, 4  ;;  %v2697_v9 = vrot.slane %v2695_v54, 5  ;;  %v2674_v10 = vsel %vm4507_vm2, %v2669_v59, %v2673_v41  ;;  %v2937_v30 = vld [vmem:[#allocation2 + $0x48] sm:$0xe]  ;;  %v2938_v55 = vld [vmem:[#allocation2 + $0x54] sm:$0xe] }
  0xa6   : > { %4138 = vmatprep.subr.bf16.mxu0 %v4311_v23  ;;  %v2703_v12 = vshll.u32 %v2528_v0, 16  ;;  %v2709_v34 = vshll.u32 %v5038_v21, 16  ;;  %v3667_v14 = vcombine.low %v2664_v57, %v2674_v10  ;;  %v2713_v51 = vshrl.u32 %v5038_v21, 16 }
  0xa7   : > { %4173 = vmatpush3.bf16.msra.mxu1 %v4981_v13  ;;  %4122 = vmatprep.mubr.bf16.mxu1 %v3666_v37  ;;  %v2681_v13 = vrot.slane %v2679_v49, 5  ;;  %v2692_v25 = vor.u32 %v2691_v7, %v2687_v1  ;;  %v2702_v35 = vrot.slane %v2700_v11, 4  ;;  %v2967_v60 = vrot.slane %v4912_v40, 5  ;;  %v5060_v37 = vld [vmem:[#allocation2 + $0x74] sm:$0x1] }
  0xa8   : > { %4091 = vmatmul.mubr.bf16.gmra.mxu0 %v4310_v18  ;;  %4166 = vmatprep.subr.bf16.mxu1 %v4311_v23  ;;  %v2705_v47 = vrot.slane %v2703_v12, 5  ;;  %v2711_v18 = vrot.slane %v2709_v34, 5  ;;  %v2715_v28 = vrot.slane %v2713_v51, 4  ;;  %v2970_v38 = vrot.slane %v4915_v15, 5 }
  0xa9   : > { %4139 = vmatpush3.bf16.msra.mxu0 %v4311_v23  ;;  %4094 = vmatprep.mubr.bf16.mxu0 %v4313_v33  ;;  %v2682_v4 = vor.u32 %v2681_v13, %v2678_v61  ;;  %v2693_v63 = vrot.slane %v2692_v25, 4  ;;  %v2969_v33 = vrot.slane %v2967_v60, 4  ;;  %v3682_v39 = vrot.slane %v2937_v30, 9  ;;  %v2935_v61 = vld [vmem:[#allocation2 + $0x30] sm:$0xe] }
  0xaa   : > { %4140 = vmatprep.subr.bf16.mxu0 %v5018_v24  ;;  %4123 = vmatmul.mubr.bf16.gmra.mxu1 %v3667_v14  ;;  %v2706_v31 = vor.u32 %v2705_v47, %v2702_v35  ;;  %v2716_v45 = vor.u32 %v2715_v28, %v2711_v18  ;;  %v2719_v15 = vshll.u32 %v5060_v37, 16  ;;  %v2995_v57 = vrot.slane %v4983_v62, 5  ;;  %v2936_v25 = vld [vmem:[#allocation2 + $0x3c] sm:$0xe] }
  0xab   : > { %4174 = vmatpush3.bf16.msra.mxu1 %v4311_v23  ;;  %v2683_v27 = vrot.slane %v2682_v4, 4  ;;  %v3678_v23 = vrot.slane %v2933_v20, 9  ;;  %v2698_v41 = vsel %vm4507_vm2, %v2693_v63, %v2697_v9  ;;  %v2998_v59 = vrot.slane %v4985_v3, 5  ;;  %v2939_v4 = vld [vmem:[#allocation2 + $0x60] sm:$0xe] }
  0xac   : > { %4167 = vmatprep.subr.bf16.mxu1 %v5018_v24  ;;  %v2707_v17 = vrot.slane %v2706_v31, 4  ;;  %v2717_v54 = vrot.slane %v2716_v45, 4  ;;  %v2721_v13 = vrot.slane %v2719_v15, 5  ;;  %v2974_v7 = vrot.slane %v4928_v36, 5 }
  0xad   : > { %4141 = vmatpush3.bf16.msra.mxu0 %v5018_v24  ;;  %v2688_v40 = vsel %vm4507_vm2, %v2683_v27, %v2687_v1  ;;  %v2968_v46 = vsel %vm4656_vm5, %v3678_v23, %v2967_v60  ;;  %v3679_v1 = vrot.slane %v2934_v48, 9  ;;  %v2996_v9 = vsel %vm4656_vm5, %v3682_v39, %v2995_v57  ;;  %v2940_v27 = vld [vmem:[#allocation2 + $0x6c] sm:$0xe] }
  0xae   : > { %4142 = vmatprep.subr.bf16.mxu0 %v4315_v58  ;;  %v3668_v49 = vcombine.low %v2688_v40, %v2698_v41  ;;  %v2712_v0 = vsel %vm4507_vm2, %v2707_v17, %v2711_v18  ;;  %v2997_v10 = vrot.slane %v2995_v57, 4  ;;  %v2977_v62 = vrot.slane %v4930_v2, 5 }
  0xaf   : > { %4175 = vmatpush3.bf16.msra.mxu1 %v5018_v24  ;;  %v2971_v24 = vsel %vm4656_vm5, %v2969_v33, %v2970_v38  ;;  %v3683_v11 = vrot.slane %v2938_v55, 9  ;;  %v2722_v3 = vsel %vm4507_vm2, %v2717_v54, %v2721_v13  ;;  %v2975_v12 = vsel %vm4656_vm5, %v3679_v1, %v2974_v7 }
  0xb0   : > { %4095 = vmatmul.mubr.bf16.gmra.mxu0 %v4314_v26  ;;  %4168 = vmatprep.subr.bf16.mxu1 %v4315_v58  ;;  %v3702_v56 = vcombine.low %v2968_v46, %v2971_v24  ;;  %v2976_v34 = vrot.slane %v2974_v7, 4  ;;  %v3680_v14 = vrot.slane %v2935_v61, 9  ;;  %v3669_v36 = vcombine.low %v2712_v0, %v2722_v3 }
  0xb1   : > { %4143 = vmatpush3.bf16.msra.mxu0 %v4315_v58  ;;  %4126 = vmatprep.mubr.bf16.mxu1 %v3668_v49  ;;  %v3006_v2 = vsel %vm4656_vm5, %v5025_v42, %v3005_v29  ;;  %v2981_v50 = vrot.slane %v4945_v53, 5  ;;  %v3003_v35 = vsel %vm4656_vm5, %v3683_v11, %v3002_v8  ;;  %v2984_v47 = vrot.slane %v4947_v5, 5 }
  0xb2   : > { %4144 = vmatprep.subr.bf16.mxu0 %v4316_v32  ;;  %4146 = vmatprep.mubr.bf16.mxu0 %v3702_v56  ;;  %v2978_v51 = vsel %vm4656_vm5, %v2976_v34, %v2977_v62  ;;  %v3684_v42 = vrot.slane %v2939_v4, 9  ;;  %v3009_v53 = vrot.slane %v5027_v43, 5  ;;  %v3012_v20 = vrot.slane %v5029_v44, 5 }
  0xb3   : > { %4176 = vmatpush3.bf16.msra.mxu1 %v4315_v58  ;;  %v2999_v58 = vsel %vm4656_vm5, %v2997_v10, %v2998_v59  ;;  %v3703_v6 = vcombine.low %v2975_v12, %v2978_v51  ;;  %v2982_v18 = vsel %vm4656_vm5, %v3680_v14, %v2981_v50  ;;  %v2983_v29 = vrot.slane %v2981_v50, 4 }
  0xb4   : > { %4169 = vmatprep.subr.bf16.mxu1 %v4316_v32  ;;  %v3706_v26 = vcombine.low %v2996_v9, %v2999_v58  ;;  %4127 = vmatmul.mubr.bf16.gmra.mxu1 %v3669_v36  ;;  %v3681_v60 = vrot.slane %v2936_v25, 9  ;;  %v2988_v19 = vrot.slane %v4955_v16, 5  ;;  %v2991_v8 = vrot.slane %v4959_v22, 5 }
  0xb5   : > { %4145 = vmatpush3.bf16.msra.mxu0 %v4316_v32  ;;  %v2985_v5 = vsel %vm4656_vm5, %v2983_v29, %v2984_v47  ;;  %v3016_v63 = vrot.slane %v5038_v21, 5  ;;  %v3010_v23 = vsel %vm4656_vm5, %v3684_v42, %v3009_v53  ;;  %v3011_v30 = vrot.slane %v3009_v53, 4 }
  0xb6   : > { %4154 = vmatprep.mubr.bf16.mxu1 %v3706_v26  ;;  %v3704_v28 = vcombine.low %v2982_v18, %v2985_v5  ;;  %v3707_v43 = vcombine.low %v3003_v35, %v3006_v2  ;;  %v2989_v44 = vsel %vm4656_vm5, %v3681_v60, %v2988_v19  ;;  %v2990_v31 = vrot.slane %v2988_v19, 4 }
  0xb7   : > { %4177 = vmatpush3.bf16.msra.mxu1 %v4316_v32  ;;  %v3013_v16 = vsel %vm4656_vm5, %v3011_v30, %v3012_v20  ;;  %v3685_v32 = vrot.slane %v2940_v27, 9  ;;  %v3018_v33 = vrot.slane %v3016_v63, 4  ;;  %v3019_v22 = vrot.slane %v5060_v37, 5 }
  0xb8   : > { %4147 = vmatmul.mubr.bf16.vlgmr.msra.gmra.mxu0 %v3703_v6  ;;  %v3708_v38 = vcombine.low %v3010_v23, %v3013_v16  ;;  %v2992_v21 = vsel %vm4656_vm5, %v2990_v31, %v2991_v8 }
  0xb9   : > { %4150 = vmatprep.mubr.bf16.mxu0 %v3704_v28  ;;  %v3705_v39 = vcombine.low %v2989_v44, %v2992_v21  ;;  %v3017_v40 = vsel %vm4656_vm5, %v3685_v32, %v3016_v63  ;;  %v3020_v41 = vsel %vm4656_vm5, %v3018_v33, %v3019_v22 }
  0xba   : > { %v3709_v45 = vcombine.low %v3017_v40, %v3020_v41 }
  0xbc   : > { %4155 = vmatmul.mubr.bf16.vlgmr.msra.gmra.mxu1 %v3707_v43 }
  0xbd   : > { %4158 = vmatprep.mubr.bf16.mxu1 %v3708_v38 }
  0xc0   : > { %4151 = vmatmul.mubr.bf16.gmra.mxu0 %v3705_v39 }
  0xc4   : > { %4159 = vmatmul.mubr.bf16.gmra.mxu1 %v3709_v45 }
  0xf0   : > { %v3924_v46 = vpop.f32.mrf.mxu1  ;;  %v3892_v37 = vpop.f32.mrf.mxu0 }
  0xf1   : > { %v950_v17 = vadd.f32 %v3924_v46, %v3892_v37 }
  0xf2   : > { %v941_v48 = vpop.f32.mrf.mxu1  ;;  %v748_v24 = vpop.f32.mrf.mxu0 }
  0xf3   : > { %v942_v55 = vadd.f32 %v941_v48, %v748_v24 }
  0xf4   : > { %v3925_v49 = vpop.f32.mrf.mxu1  ;;  %v3893_v56 = vpop.f32.mrf.mxu0 }
  0xf5   : > { %v953_v57 = vadd.f32 %v3925_v49, %v3893_v56 }
  0xf6   : > { %v944_v15 = vpop.f32.mrf.mxu1  ;;  %v751_v61 = vpop.f32.mrf.mxu0 }
  0xf7   : > { %v945_v0 = vadd.f32 %v944_v15, %v751_v61 }
  0xf8   : > { %v3928_v54 = vpop.f32.mrf.mxu1 }
  0xfa   : > { %v957_v59 = vpop.f32.mrf.mxu1 }
  0xfc   : > { %v3929_v13 = vpop.f32.mrf.mxu1  ;;  %v3896_v1 = vpop.f32.mrf.mxu0 }
  0xfd   : > { %v966_v7 = vadd.f32 %v3928_v54, %v3896_v1 }
  0xfe   : > { %v960_v52 = vpop.f32.mrf.mxu1  ;;  %v764_v9 = vpop.f32.mrf.mxu0 }
  0xff   : > { %v958_v62 = vadd.f32 %v957_v59, %v764_v9 }
 0x100   : > { %v3932_v10 = vpop.f32.mrf.mxu1  ;;  %v3897_v11 = vpop.f32.mrf.mxu0 }
 0x101   : > { %v969_v12 = vadd.f32 %v3929_v13, %v3897_v11 }
 0x102   : > { %v973_v3 = vpop.f32.mrf.mxu1  ;;  %v767_v34 = vpop.f32.mrf.mxu0 }
 0x103   : > { %v961_v4 = vadd.f32 %v960_v52, %v767_v34 }
 0x104   : > { %v3933_v14 = vpop.f32.mrf.mxu1  ;;  %v3900_v58 = vpop.f32.mrf.mxu0 }
 0x105   : > { %v982_v2 = vadd.f32 %v3932_v10, %v3900_v58 }
 0x106   : > { %v976_v36 = vpop.f32.mrf.mxu1  ;;  %v780_v50 = vpop.f32.mrf.mxu0 }
 0x107   : > { %v974_v26 = vadd.f32 %v973_v3, %v780_v50 }
 0x108   : > { %v3936_v25 = vpop.f32.mrf.mxu1  ;;  %v3901_v51 = vpop.f32.mrf.mxu0 }
 0x109   : > { %v985_v47 = vadd.f32 %v3933_v14, %v3901_v51 }
 0x10a   : > { %v989_v35 = vpop.f32.mrf.mxu1  ;;  %v783_v6 = vpop.f32.mrf.mxu0 }
 0x10b   : > { %v977_v29 = vadd.f32 %v976_v36, %v783_v6 }
 0x10c   : > { %v3937_v18 = vpop.f32.mrf.mxu1 }
 0x10e   : > { %v992_v42 = vpop.f32.mrf.mxu1 }
 0x110   : > { %v3904_v53 = vpop.f32.mrf.mxu0  ;;  %v3988_v20 = vpop.f32.mrf.mxu1 }
 0x111   : > { %v998_v60 = vadd.f32 %v3936_v25, %v3904_v53 }
 0x112   : > { %v796_v19 = vpop.f32.mrf.mxu0  ;;  %v1461_v5 = vpop.f32.mrf.mxu1 }
 0x113   : > { %v990_v8 = vadd.f32 %v989_v35, %v796_v19 }
 0x114   : > { %v3905_v27 = vpop.f32.mrf.mxu0  ;;  %v3989_v63 = vpop.f32.mrf.mxu1 }
 0x115   : > { %v1001_v28 = vadd.f32 %v3937_v18, %v3905_v27 }
 0x116   : > { %v799_v23 = vpop.f32.mrf.mxu0  ;;  %v1464_v30 = vpop.f32.mrf.mxu1 }
 0x117   : > { %v993_v43 = vadd.f32 %v992_v42, %v799_v23 }
 0x118   : > { %v3956_v44 = vpop.f32.mrf.mxu0  ;;  %v3992_v31 = vpop.f32.mrf.mxu1 }
 0x119   : > { %v1283_v16 = vadd.f32 %v3956_v44, %v950_v17 }
 0x11a   : > { %v1218_v32 = vpop.f32.mrf.mxu0  ;;  %v1477_v33 = vpop.f32.mrf.mxu1 }
 0x11b   : > { %v5116_v22 = vadd.f32 %v3988_v20, %v1283_v16  ;;  %v1281_v38 = vadd.f32 %v1218_v32, %v942_v55 }
 0x11c   : > { %v3957_v21 = vpop.f32.mrf.mxu0  ;;  %v3993_v39 = vpop.f32.mrf.mxu1 }
 0x11d   : > { %v5118_v40 = vadd.f32 %v1461_v5, %v1281_v38  ;;  %v1284_v41 = vadd.f32 %v3957_v21, %v953_v57 }
 0x11e   : > { %v1221_v45 = vpop.f32.mrf.mxu0  ;;  %v1480_v46 = vpop.f32.mrf.mxu1 }
 0x11f   : > { %v5120_v48 = vadd.f32 %v3989_v63, %v1284_v41  ;;  %v1282_v49 = vadd.f32 %v1221_v45, %v945_v0 }
 0x120   : > { %v3960_v37 = vpop.f32.mrf.mxu0  ;;  %v3996_v15 = vpop.f32.mrf.mxu1 }
 0x121   : > { %v5122_v24 = vadd.f32 %v1464_v30, %v1282_v49  ;;  %v1287_v17 = vadd.f32 %v3960_v37, %v966_v7 }
 0x122   : > { %v1234_v54 = vpop.f32.mrf.mxu0  ;;  %v1493_v56 = vpop.f32.mrf.mxu1 }
 0x123   : > { %v5124_v59 = vadd.f32 %v3992_v31, %v1287_v17  ;;  %v1285_v55 = vadd.f32 %v1234_v54, %v958_v62 }
 0x124   : > { %v3961_v61 = vpop.f32.mrf.mxu0  ;;  %v3997_v13 = vpop.f32.mrf.mxu1 }
 0x125   : > { %v5126_v52 = vadd.f32 %v1477_v33, %v1285_v55  ;;  %v1288_v57 = vadd.f32 %v3961_v61, %v969_v12 }
 0x126   : > { %v1237_v1 = vpop.f32.mrf.mxu0  ;;  %v1496_v9 = vpop.f32.mrf.mxu1 }
 0x127   : > { %v5128_v10 = vadd.f32 %v3993_v39, %v1288_v57  ;;  %v1286_v0 = vadd.f32 %v1237_v1, %v961_v4 }
 0x128   : > { %v3964_v11 = vpop.f32.mrf.mxu0  ;;  %v4000_v3 = vpop.f32.mrf.mxu1 }
 0x129   : > { %v5130_v34 = vadd.f32 %v1480_v46, %v1286_v0  ;;  %v1291_v7 = vadd.f32 %v3964_v11, %v982_v2 }
 0x12a   : > { %v1250_v14 = vpop.f32.mrf.mxu0  ;;  %v1509_v36 = vpop.f32.mrf.mxu1 }
 0x12b   : > { %v5132_v58 = vadd.f32 %v3996_v15, %v1291_v7  ;;  %v1289_v62 = vadd.f32 %v1250_v14, %v974_v26 }
 0x12c   : > { %v3965_v50 = vpop.f32.mrf.mxu0  ;;  %v4001_v25 = vpop.f32.mrf.mxu1 }
 0x12d   : > { %v5134_v51 = vadd.f32 %v1493_v56, %v1289_v62  ;;  %v1292_v12 = vadd.f32 %v3965_v50, %v985_v47 }
 0x12e   : > { %v1253_v35 = vpop.f32.mrf.mxu0  ;;  %v1512_v6 = vpop.f32.mrf.mxu1 }
 0x12f   : > { %v5136_v18 = vadd.f32 %v3997_v13, %v1292_v12  ;;  %v1290_v4 = vadd.f32 %v1253_v35, %v977_v29 }
 0x130   : > { %v3968_v42 = vpop.f32.mrf.mxu0 }
 0x131   : > { %v5138_v53 = vadd.f32 %v1496_v9, %v1290_v4  ;;  %v1295_v20 = vadd.f32 %v3968_v42, %v998_v60 }
 0x132   : > { %v1266_v2 = vpop.f32.mrf.mxu0  ;;  %v5140_v19 = vpop.f32.mrf.mxu1 }
 0x133   : > { %v5142_v5 = vadd.f32 %v4000_v3, %v1295_v20  ;;  %v1293_v26 = vadd.f32 %v1266_v2, %v990_v8 }
 0x134   : > { %v3969_v27 = vpop.f32.mrf.mxu0  ;;  %v5144_v63 = vpop.f32.mrf.mxu1 }
 0x135   : > { %v5146_v23 = vadd.f32 %v1509_v36, %v1293_v26  ;;  %v1296_v47 = vadd.f32 %v3969_v27, %v1001_v28 }
 0x136   : > { %v1269_v30 = vpop.f32.mrf.mxu0  ;;  %v5148_v44 = vpop.f32.mrf.mxu1 }
 0x137   : > { %v5150_v29 = vadd.f32 %v4001_v25, %v1296_v47  ;;  %v1294_v31 = vadd.f32 %v1269_v30, %v993_v43 }
 0x138   : > { %v4020_v16 = vpop.f32.mrf.mxu0  ;;  %v5154_v33 = vpop.f32.mrf.mxu1 }
 0x139   : > { %v5152_v60 = vadd.f32 %v1512_v6, %v1294_v31 }
 0x13a   : > { %v1887_v32 = vpop.f32.mrf.mxu0  ;;  %v5156_v21 = vpop.f32.mrf.mxu1 }
 0x13c   : > { %v4021_v38 = vpop.f32.mrf.mxu0  ;;  %v5158_v41 = vpop.f32.mrf.mxu1 }
 0x13e   : > { %v1890_v8 = vpop.f32.mrf.mxu0  ;;  %v5160_v45 = vpop.f32.mrf.mxu1 }
 0x140   : > { %v4024_v39 = vpop.f32.mrf.mxu0  ;;  %v5162_v49 = vpop.f32.mrf.mxu1 }
 0x142   : > { %v1903_v28 = vpop.f32.mrf.mxu0  ;;  %v5164_v37 = vpop.f32.mrf.mxu1 }
 0x144   : > { %v4025_v46 = vpop.f32.mrf.mxu0  ;;  %v5166_v17 = vpop.f32.mrf.mxu1 }
 0x146   : > { %v1906_v43 = vpop.f32.mrf.mxu0  ;;  %v5168_v55 = vpop.f32.mrf.mxu1 }
 0x148   : > { %v4028_v15 = vpop.f32.mrf.mxu0  ;;  %v5170_v13 = vpop.f32.mrf.mxu1 }
 0x14a   : > { %v1919_v54 = vpop.f32.mrf.mxu0 }
 0x14c   : > { %v4029_v56 = vpop.f32.mrf.mxu0  ;;  %v5172_v1 = vpop.f32.mrf.mxu1 }
 0x14e   : > { %v1922_v61 = vpop.f32.mrf.mxu0  ;;  %v5174_v0 = vpop.f32.mrf.mxu1 }
 0x150   : > { %v4032_v57 = vpop.f32.mrf.mxu0  ;;  %v5176_v3 = vpop.f32.mrf.mxu1 }
 0x152   : > { %v1935_v9 = vpop.f32.mrf.mxu0  ;;  %v5178_v14 = vpop.f32.mrf.mxu1 }
 0x153   : > { %5363 = vst [vmem:[#allocation3_spill] sm:$0xff] %v5178_v14 }
 0x154   : > { %v4033_v11 = vpop.f32.mrf.mxu0 }
 0x156   : > { %v1938_v7 = vpop.f32.mrf.mxu0 }
 0x158   : > { %v4084_v36 = vpop.f32.mrf.mxu0 }
 0x15a   : > { %v2428_v62 = vpop.f32.mrf.mxu0  ;;  %v4116_v50 = vpop.f32.mrf.mxu1 }
 0x15c   : > { %v4085_v25 = vpop.f32.mrf.mxu0  ;;  %v5180_v12 = vpop.f32.mrf.mxu1 }
 0x15e   : > { %v2431_v35 = vpop.f32.mrf.mxu0  ;;  %v5182_v6 = vpop.f32.mrf.mxu1 }
 0x15f   : > { %5364 = vst [vmem:[#allocation4_spill] sm:$0xff] %v5182_v6 }
 0x160   : > { %v5184_v4 = vpop.f32.mrf.mxu1  ;;  %v5186_v42 = vpop.f32.mrf.mxu0 }
 0x161   : > { %5365 = vst [vmem:[#allocation5_spill] sm:$0xff] %v5184_v4  ;;  %5366 = vst [vmem:[#allocation6_spill] sm:$0xff] %v5186_v42 }
 0x162   : > { %v5188_v20 = vpop.f32.mrf.mxu0  ;;  %v5190_v2 = vpop.f32.mrf.mxu1 }
 0x163   : > { %5367 = vst [vmem:[#allocation7_spill] sm:$0xff] %v5188_v20  ;;  %5368 = vst [vmem:[#allocation8_spill] sm:$0xff] %v5190_v2  ;;  %v1952_v2 = vadd.f32 %v4020_v16, %v5116_v22  ;;  %v1956_v16 = vadd.f32 %v4024_v39, %v5124_v59 }
 0x164   : > { %v5192_v26 = vpop.f32.mrf.mxu0  ;;  %v5194_v27 = vpop.f32.mrf.mxu1 }
 0x165   : > { %5369 = vst [vmem:[#allocation9_spill] sm:$0xff] %v5192_v26  ;;  %5370 = vst [vmem:[#allocation10_spill] sm:$0xff] %v5194_v27  ;;  %v1950_v27 = vadd.f32 %v1887_v32, %v5118_v40  ;;  %v2250_v22 = vadd.f32 %v5140_v19, %v1952_v2  ;;  %v1957_v40 = vadd.f32 %v4025_v46, %v5128_v10 }
 0x166   : > { %v5196_v47 = vpop.f32.mrf.mxu0  ;;  %v5198_v30 = vpop.f32.mrf.mxu1  ;;  %v1961_v10 = vadd.f32 %v4029_v56, %v5136_v18  ;;  %v2254_v39 = vadd.f32 %v5156_v21, %v1956_v16  ;;  %v5265_v56 = vld [vmem:[%s5356_s3] ss:$0 sm:$0xff] }
 0x167   : > { %5371 = vst [vmem:[#allocation11_spill] sm:$0xff] %v5196_v47  ;;  %5372 = vst [vmem:[#allocation12_spill] sm:$0xff] %v5198_v30  ;;  %v1953_v47 = vadd.f32 %v4021_v38, %v5120_v48  ;;  %v1955_v48 = vadd.f32 %v1906_v43, %v5130_v34  ;;  %v2248_v38 = vadd.f32 %v5144_v63, %v1950_v27 }
 0x168   : > { %v4092_v31 = vpop.f32.mrf.mxu0  ;;  %v5200_v14 = vpop.f32.mrf.mxu1  ;;  %v1959_v34 = vadd.f32 %v1922_v61, %v5138_v53  ;;  %v2255_v46 = vadd.f32 %v5160_v45, %v1957_v40  ;;  %v2259_v45 = vadd.f32 %v5168_v55, %v1961_v10 }
 0x169   : > { %5373 = vst [vmem:[#allocation13_spill] sm:$0xff] %v5200_v14  ;;  %v1951_v14 = vadd.f32 %v1890_v8, %v5122_v24  ;;  %v2251_v24 = vadd.f32 %v5148_v44, %v1953_v47  ;;  %v1960_v8 = vadd.f32 %v4028_v15, %v5132_v58  ;;  %v1964_v44 = vadd.f32 %v4032_v57, %v5142_v5  ;;  %v5378_v57 = vld [vmem:[#allocation6_spill] sm:$0xff] }
 0x16a   : > { %v2460_v6 = vpop.f32.mrf.mxu0  ;;  %v5205_v42 = vpop.f32.mrf.mxu1  ;;  %v2491_v58 = vadd.f32 %v2428_v62, %v2248_v38  ;;  %v2253_v43 = vadd.f32 %v5162_v49, %v1955_v48  ;;  %v1963_v5 = vadd.f32 %v1938_v7, %v5152_v60  ;;  %v2257_v49 = vadd.f32 %v5170_v13, %v1959_v34  ;;  %v5382_v2 = vld [vmem:[#allocation7_spill] sm:$0xff]  ;;  %v5385_v38 = vld [vmem:[#allocation8_spill] sm:$0xff] }
 0x16b   : > { %v2249_v59 = vadd.f32 %v5154_v33, %v1951_v14  ;;  %v1962_v33 = vadd.f32 %v1935_v9, %v5146_v23  ;;  %v2258_v53 = vadd.f32 %v5164_v37, %v1960_v8  ;;  %v2262_v37 = vadd.f32 %v5172_v1, %v1964_v44 }
 0x16c   : > { %v5202_v4 = vpop.f32.mrf.mxu0  ;;  %v5210_v26 = vpop.f32.mrf.mxu1  ;;  %v2917_v60 = vadd.f32 %v5180_v12, %v2491_v58  ;;  %v2497_v9 = vadd.f32 %v5378_v57, %v2254_v39 }
 0x16d   : > { %5374 = vst [vmem:[#allocation14_spill] sm:$0xff] %v5202_v4  ;;  %5376 = vst [vmem:[#allocation16_spill] sm:$0xff] %v5210_v26  ;;  %v2492_v23 = vadd.f32 %v2431_v35, %v2249_v59  ;;  %v2501_v61 = vadd.f32 %v4092_v31, %v2258_v53  ;;  %v2260_v55 = vadd.f32 %v5174_v0, %v1962_v33  ;;  %v5381_v35 = vld [vmem:[#allocation5_spill] sm:$0xff] }
 0x16e   : > { %v5208_v20 = vpop.f32.mrf.mxu0  ;;  %v5220_v4 = vpop.f32.mrf.mxu1  ;;  %v5383_v0 = vld [vmem:[#allocation9_spill] sm:$0xff]  ;;  %v5386_v8 = vld [vmem:[#allocation11_spill] sm:$0xff] }
 0x16f   : > { %5375 = vst [vmem:[#allocation15_spill] sm:$0xff] %v5208_v20  ;;  %v1954_v20 = vadd.f32 %v1903_v28, %v5126_v52  ;;  %v1958_v52 = vadd.f32 %v1919_v54, %v5134_v51  ;;  %v1965_v51 = vadd.f32 %v4033_v11, %v5150_v29  ;;  %v2498_v47 = vadd.f32 %v5383_v0, %v2255_v46 }
 0x170   : > { %v5214_v30 = vpop.f32.mrf.mxu0  ;;  %v5229_v32 = vpop.f32.mrf.mxu1  ;;  %v2496_v59 = vadd.f32 %v5386_v8, %v2253_v43 }
 0x171   : > { %5377 = vst [vmem:[#allocation17_spill] sm:$0xff] %v5214_v30  ;;  %v2493_v30 = vadd.f32 %v4084_v36, %v2250_v22  ;;  %v2252_v63 = vadd.f32 %v5158_v41, %v1954_v20  ;;  %v2494_v41 = vadd.f32 %v4085_v25, %v2251_v24  ;;  %v2256_v15 = vadd.f32 %v5166_v17, %v1958_v52  ;;  %v5379_v36 = vld [vmem:[#allocation3_spill] sm:$0xff] }
 0x172   : > { %v5225_v26 = vpop.f32.mrf.mxu0  ;;  %v2263_v13 = vadd.f32 %v5176_v3, %v1965_v51  ;;  %v2261_v62 = vadd.f32 %v5379_v36, %v1963_v5  ;;  %v2918_v20 = vadd.f32 %v5381_v35, %v2492_v23  ;;  %v2927_v22 = vadd.f32 %v5205_v42, %v2501_v61  ;;  %v5389_v51 = vld [vmem:[#allocation10_spill] sm:$0xff]  ;;  %v5390_v5 = vld [vmem:[#allocation12_spill] sm:$0xff] }
 0x173   : > { %v2919_v21 = vadd.f32 %v4116_v50, %v2493_v30  ;;  %v2499_v11 = vadd.f32 %v2460_v6, %v2256_v15  ;;  %v5380_v50 = vld [vmem:[#allocation4_spill] sm:$0xff]  ;;  %v2495_v27 = vadd.f32 %v5382_v2, %v2252_v63  ;;  %v2923_v24 = vadd.f32 %v5385_v38, %v2497_v9 }
 0x174   : > { %v5234_v19 = vpop.f32.mrf.mxu0  ;;  %v5251_v18 = vpop.f32.mrf.mxu1  ;;  %v2920_v25 = vadd.f32 %v5380_v50, %v2494_v41  ;;  %v5384_v3 = vld [vmem:[#allocation14_spill] sm:$0xff]  ;;  %v5387_v52 = vld [vmem:[#allocation16_spill] sm:$0xff] }
 0x175   : > { %v2502_v30 = vadd.f32 %v5384_v3, %v2259_v45  ;;  %v2925_v10 = vadd.f32 %v5387_v52, %v2499_v11  ;;  %v2921_v53 = vadd.f32 %v5389_v51, %v2495_v27  ;;  %v2503_v11 = vadd.f32 %v5225_v26, %v2260_v55 }
 0x176   : > { %v5245_v28 = vpop.f32.mrf.mxu0  ;;  %v5260_v54 = vpop.f32.mrf.mxu1  ;;  %v5388_v34 = vld [vmem:[#allocation15_spill] sm:$0xff]  ;;  %v2506_v35 = vadd.f32 %v5234_v19, %v2263_v13 }
 0x177   : > { %v2500_v39 = vadd.f32 %v5388_v34, %v2257_v49  ;;  %v2928_v41 = vadd.f32 %v5220_v4, %v2502_v30  ;;  %v2929_v3 = vadd.f32 %v5260_v54, %v2503_v11 }
 0x178   : > { %v4148_v29 = vpop.f32.mrf.mxu0  ;;  %v5273_v7 = vpop.f32.mrf.mxu1  ;;  %v5391_v43 = vld [vmem:[#allocation17_spill] sm:$0xff] }
 0x179   : > { %v3217_v17 = vadd.f32 %v4148_v29, %v2919_v21  ;;  %v2924_v21 = vadd.f32 %v5390_v5, %v2498_v47  ;;  %v2505_v15 = vadd.f32 %v5391_v43, %v2262_v37  ;;  %v2926_v9 = vadd.f32 %v5229_v32, %v2500_v39 }
 0x17a   : > { %v3152_v14 = vpop.f32.mrf.mxu0  ;;  %v5282_v31 = vpop.f32.mrf.mxu1  ;;  %v2932_v38 = vadd.f32 %v5273_v7, %v2506_v35 }
 0x17b   : > { %v3240_v1 = vadd.f32 %v5265_v56, %v3217_v17  ;;  %v3215_v12 = vadd.f32 %v3152_v14, %v2917_v60  ;;  %v5392_v17 = vld [vmem:[#allocation13_spill] sm:$0xff] }
 0x17c   : > { %v4149_v6 = vpop.f32.mrf.mxu0  ;;  %v4156_v63 = vpop.f32.mrf.mxu1  ;;  %v2922_v57 = vadd.f32 %v5392_v17, %v2496_v59 }
 0x17d   : > { %v3256_v16 = vmax.f32 %v3240_v1, 0.0  ;;  %v3238_v40 = vadd.f32 %v5265_v56, %v3215_v12  ;;  %v3218_v48 = vadd.f32 %v4149_v6, %v2920_v25  ;;  %v3225_v58 = vadd.f32 %v4156_v63, %v2927_v22 }
 0x17e   : > { %v3155_v44 = vpop.f32.mrf.mxu0  ;;  %v3184_v45 = vpop.f32.mrf.mxu1  ;;  %v2931_v12 = vadd.f32 %v5251_v18, %v2505_v15  ;;  %v2504_v18 = vadd.f32 %v5245_v28, %v2261_v62 }
 0x17f   : > { %3272 = vst [vmem:[%s5287_s26 + $0x10] sm:$0xff] %v3256_v16  ;;  %v3254_v46 = vmax.f32 %v3238_v40, 0.0  ;;  %v3241_v42 = vadd.f32 %v5265_v56, %v3218_v48  ;;  %v3216_v33 = vadd.f32 %v3155_v44, %v2918_v20  ;;  %v3248_v49 = vadd.f32 %v5265_v56, %v3225_v58 }
 0x180   : > { %v4152_v23 = vpop.f32.mrf.mxu0  ;;  %v3223_v29 = vadd.f32 %v3184_v45, %v2925_v10  ;;  %v4157_v4 = vpop.f32.mrf.mxu1  ;;  %v2930_v7 = vadd.f32 %v5282_v31, %v2504_v18 }
 0x181   : > { %3270 = vst [vmem:[%s5287_s26] sm:$0xff] %v3254_v46  ;;  %v3257_v60 = vmax.f32 %v3241_v42, 0.0  ;;  %v3239_v61 = vadd.f32 %v5265_v56, %v3216_v33  ;;  %v3221_v14 = vadd.f32 %v4152_v23, %v2923_v24  ;;  %v3264_v36 = vmax.f32 %v3248_v49, 0.0 }
 0x182   : > { %v3168_v37 = vpop.f32.mrf.mxu0  ;;  %v3246_v50 = vadd.f32 %v5265_v56, %v3223_v29  ;;  %v3226_v25 = vadd.f32 %v4157_v4, %v2928_v41  ;;  %v3187_v20 = vpop.f32.mrf.mxu1 }
 0x183   : > { %3273 = vst [vmem:[%s5287_s26 + $0x18] sm:$0xff] %v3257_v60  ;;  %v3255_v1 = vmax.f32 %v3239_v61, 0.0  ;;  %v3244_v32 = vadd.f32 %v5265_v56, %v3221_v14  ;;  %v3219_v2 = vadd.f32 %v3168_v37, %v2921_v53  ;;  %3280 = vst [vmem:[%s5287_s26 + $0x50] sm:$0xff] %v3264_v36  ;;  %v3224_v0 = vadd.f32 %v3187_v20, %v2926_v9 }
 0x184   : > { %v4153_v26 = vpop.f32.mrf.mxu0  ;;  %v3262_v55 = vmax.f32 %v3246_v50, 0.0  ;;  %v3249_v27 = vadd.f32 %v5265_v56, %v3226_v25  ;;  %v4160_v13 = vpop.f32.mrf.mxu1 }
 0x185   : > { %3271 = vst [vmem:[%s5287_s26 + $0x8] sm:$0xff] %v3255_v1  ;;  %v3222_v47 = vadd.f32 %v4153_v26, %v2924_v21  ;;  %v3260_v19 = vmax.f32 %v3244_v32, 0.0  ;;  %v3242_v30 = vadd.f32 %v5265_v56, %v3219_v2  ;;  %v3247_v16 = vadd.f32 %v5265_v56, %v3224_v0 }
 0x186   : > { %v3171_v6 = vpop.f32.mrf.mxu0  ;;  %3278 = vst [vmem:[%s5287_s26 + $0x40] sm:$0xff] %v3262_v55  ;;  %v3265_v22 = vmax.f32 %v3249_v27, 0.0  ;;  %v3229_v40 = vadd.f32 %v4160_v13, %v2931_v12  ;;  %v3200_v28 = vpop.f32.mrf.mxu1 }
 0x187   : > { %v3245_v48 = vadd.f32 %v5265_v56, %v3222_v47  ;;  %3276 = vst [vmem:[%s5287_s26 + $0x30] sm:$0xff] %v3260_v19  ;;  %v3258_v54 = vmax.f32 %v3242_v30, 0.0  ;;  %v3220_v62 = vadd.f32 %v3171_v6, %v2922_v57  ;;  %v3263_v24 = vmax.f32 %v3247_v16, 0.0 }
 0x188   : > { %3281 = vst [vmem:[%s5287_s26 + $0x58] sm:$0xff] %v3265_v22  ;;  %v3252_v8 = vadd.f32 %v5265_v56, %v3229_v40  ;;  %v3227_v59 = vadd.f32 %v3200_v28, %v2929_v3  ;;  %v4161_v10 = vpop.f32.mrf.mxu1 }
 0x189   : > { %v3261_v52 = vmax.f32 %v3245_v48, 0.0  ;;  %3274 = vst [vmem:[%s5287_s26 + $0x20] sm:$0xff] %v3258_v54  ;;  %v3243_v34 = vadd.f32 %v5265_v56, %v3220_v62  ;;  %3279 = vst [vmem:[%s5287_s26 + $0x48] sm:$0xff] %v3263_v24  ;;  %v3230_v44 = vadd.f32 %v4161_v10, %v2932_v38 }
 0x18a   : > { %v3268_v39 = vmax.f32 %v3252_v8, 0.0  ;;  %v3250_v63 = vadd.f32 %v5265_v56, %v3227_v59  ;;  %v3203_v46 = vpop.f32.mrf.mxu1 }
 0x18b   : > { %3277 = vst [vmem:[%s5287_s26 + $0x38] sm:$0xff] %v3261_v52  ;;  %v3259_v58 = vmax.f32 %v3243_v34, 0.0  ;;  %v3253_v33 = vadd.f32 %v5265_v56, %v3230_v44  ;;  %v3228_v51 = vadd.f32 %v3203_v46, %v2930_v7 }
 0x18c   : > { %3284 = vst [vmem:[%s5287_s26 + $0x70] sm:$0xff] %v3268_v39  ;;  %v3266_v42 = vmax.f32 %v3250_v63, 0.0 }
 0x18d   : > { %3275 = vst [vmem:[%s5287_s26 + $0x28] sm:$0xff] %v3259_v58  ;;  %v3269_v53 = vmax.f32 %v3253_v33, 0.0  ;;  %v3251_v31 = vadd.f32 %v5265_v56, %v3228_v51 }
 0x18e   : > { %3282 = vst [vmem:[%s5287_s26 + $0x60] sm:$0xff] %v3266_v42 }
 0x18f   : > { %3285 = vst [vmem:[%s5287_s26 + $0x78] sm:$0xff] %v3269_v53  ;;  %v3267_v5 = vmax.f32 %v3251_v31, 0.0 }
 0x191   : > { %3283 = vst [vmem:[%s5287_s26 + $0x68] sm:$0xff] %v3267_v5 }
 0x192 PF: > { %s14_s19 = sadd.s32 1, %s4355_s19   ;;  %s5393_s15 = smov %s4347_s17 }
 0x193   : > { %p11_p9 = scmp.ge.s32.totalorder %s14_s19, 6   ;;  %s5394_s16 = smov %s4351_s18 }
 0x194   : > { %s5395_s17 = smov %s5398_s20  ;;  %s5396_s18 = smov %s5402_s21 }
 0x195   :  { %13 = sbr.rel (!%p11_p9) target bundleno = 3 (0x3), region = 80 }

// kernel: unet_up_forward.4
= control target key start
LH: loop header
LB: loop body
LE: loop exit
PB: predicated region body
PF: predicated region fallthrough
CT: control target
= control target key end

     0   :  { %s4525_s15 = smov 0   ;;  %s4527_s16 = smov 0   ;;  %s5496_s0 = inlined_call_operand.vmem [shape: bf16[2,18,18,128], index: 0, kind: input, shape index: {}, may-alias: {0,1}]   ;;  %s5497_s1 = inlined_call_operand.vmem [shape: bf16[2,18,18,128], index: 1, kind: input, shape index: {}, may-alias: {0,1}]   ;;  %s5498_s2 = inlined_call_operand.vmem [shape: bf16[3,3,128,128], index: 2, kind: input, shape index: {}]   ;;  %s5499_s3 = inlined_call_operand.vmem [shape: f32[1,128], index: 3, kind: input, shape index: {}]   ;;  %s5500_s4 = inlined_call_operand.vmem [shape: bf16[2,16,16,128], index: 4, kind: output, shape index: {}]  }
   0x1   :  { %s4529_s17 = smov 0   ;;  %s4531_s18 = smov 0  }
   0x2   :  { %s4533_s19 = smov 0  }
   0x3 LB: > { %s23_s20 = sadd.s32 1, %s4490_s17  ;;  %s26_s21 = sadd.s32 1, %s4494_s18  ;;  %s4498_s19 = sphi %s4533_s19, %s14_s19   ;;  %s4494_s18 = sphi %s4531_s18, %s5539_s18   ;;  %s4490_s17 = sphi %s4529_s17, %s5538_s17   ;;  %s4486_s16 = sphi %s4527_s16, %s5537_s16   ;;  %s4482_s15 = sphi %s4525_s15, %s5536_s15  }
   0x4   : > { %p24_p0 = scmp.ge.s32.totalorder %s23_s20, 2  ;;  %p3476_p1 = scmp.ge.s32.totalorder %s4498_s19, 1 }
   0x5   : > { %p220_p2 = scmp.lt.s32.totalorder %s4498_s19, 5 }
   0x6   : > { %s5541_s20 = smov (%p24_p0, %s23_s20), 0  ;;  %s5543_s21 = smov (!%p24_p0, %s26_s21), %s4494_s18 }
   0x7   : > { %p221_p3 = pnand %p3476_p1, %p220_p2  ;;  %p28_p4 = scmp.ge.s32.totalorder %s5543_s21, 2 }
   0x9   : > { %s5545_s21 = smov (%p28_p4, %s5543_s21), 0  ;;  %224 = sbr.rel (%p221_p3) target bundleno = 404 (0x194), region = 36 }
   0xe   : > { %v4364_v0 = vld [vmem:[%s5498_s2 + $0x78] sm:$0xff]   ;;  %s4558_s24 = sshll.u32 %s4482_s15, 3  ;;  %p279_p5 = scmp.lt.s32.totalorder %s4486_s16, 1  ;;  %v4366_v2 = vld [vmem:[%s5498_s2 + $0x70] sm:$0xff]   ;;  %v4368_v4 = vld [vmem:[%s5498_s2 + $0x68] sm:$0xff]   ;;  %vm1028_vm3 = vcmask 1042432  }
   0xf   : > { %v4365_v1 = vld [vmem:[%s5498_s2 + $0x38] sm:$0xff]   ;;  %4017 = vmatprep.subr.bf16.mxu0 %v4364_v0  ;;  %p281_p6 = scmp.lt.s32.totalorder %s4558_s24, 17  ;;  %v4367_v3 = vld [vmem:[%s5498_s2 + $0x30] sm:$0xff]   ;;  %v4369_v5 = vld [vmem:[%s5498_s2 + $0x28] sm:$0xff]   ;;  %vm422_vm0 = vsmask.f32 3328 }
  0x10   : > { %4049 = vmatprep.subr.bf16.mxu1 %v4365_v1  ;;  %4018 = vmatpush3.bf16.msra.mxu0 %v4364_v0  ;;  %s5547_s16 = smov (!%p279_p5, %s4486_s16), 1  ;;  %v4370_v6 = vld [vmem:[%s5498_s2 + $0x60] sm:$0xff]   ;;  %v4372_v8 = vld [vmem:[%s5498_s2 + $0x58] sm:$0xff]   ;;  %v4374_v10 = vld [vmem:[%s5498_s2 + $0x50] sm:$0xff]   ;;  %vm423_vm1 = vsmask.f32 7440 }
  0x11   : > { %4050 = vmatpush3.bf16.msra.mxu1 %v4365_v1  ;;  %4019 = vmatprep.subr.bf16.mxu0 %v4366_v2  ;;  %s282_s7 = scalar_select %p281_p6, %s4558_s24, 17  ;;  %v4371_v7 = vld [vmem:[%s5498_s2 + $0x20] sm:$0xff]   ;;  %v4373_v9 = vld [vmem:[%s5498_s2 + $0x18] sm:$0xff]   ;;  %v4375_v14 = vld [vmem:[%s5498_s2 + $0x10] sm:$0xff]   ;;  %vm1029_vm4 = vcmask 1046532  }
  0x12   : > { %4051 = vmatprep.subr.bf16.mxu1 %v4367_v3  ;;  %s4322_s10 = smul.u32 54, %s5547_s16  ;;  %v4376_v16 = vld [vmem:[%s5498_s2 + $0x48] sm:$0xff]   ;;  %v4378_v18 = vld [vmem:[%s5498_s2 + $0x40] sm:$0xff]   ;;  %v4640_v40 = vld [vmem:[%s5498_s2 + $0xb8] sm:$0xff]   ;;  %s3865_s12 = sadd.s32 8, %s4558_s24 }
  0x13   : > { %s4321_s11 = smul.u32 3, %s282_s7  ;;  %v4377_v17 = vld [vmem:[%s5498_s2 + $0x8] sm:$0xff]   ;;  %v4379_v22 = vld [vmem:[%s5498_s2] sm:$0xff]   ;;  %v4383_v41 = vld [vmem:[%s5498_s2 + $0xf8] sm:$0xff]   ;;  %p4734_p7 = scmp.lt.s32.totalorder %s3865_s12, 17 }
  0x14   : > { %4020 = vmatpush3.bf16.msra.mxu0 %v4366_v2  ;;  %vm4650_vm2 = vmor %vm422_vm0, %vm423_vm1  ;;  %p312_p8 = scmp.lt.s32.totalorder %s4558_s24, 15  ;;  %s3484_s13 = sshll.u32 %s5547_s16, 5 }
  0x15   : > { %4052 = vmatpush3.bf16.msra.mxu1 %v4367_v3  ;;  %4021 = vmatprep.subr.bf16.mxu0 %v4368_v4  ;;  %s285_s14 = sadd.s32 %s4322_s10, %s4321_s11  ;;  %s5549_s12 = smov (!%p4734_p7, %s3865_s12), 17  ;;  %vm4799_vm5 = vmor %vm1028_vm3, %vm1029_vm4 }
  0x16   : > { %4053 = vmatprep.subr.bf16.mxu1 %v4369_v5  ;;  %s3478_s23 = sshll.u32 %s285_s14, 2  ;;  %s5551_s24 = smov (!%p312_p8, %s4558_s24), 15 }
  0x17   : > { %s4597_s5 = scalar_lea.vmem %s5496_s0, %s3478_s23  ;;  %s4323_s23 = smul.u32 3, %s5549_s12 }
  0x18   : > { %4022 = vmatpush3.bf16.msra.mxu0 %v4368_v4  ;;  %v321_v11 = vld [vmem:[%s4597_s5] sm:$0xff]   ;;  %v323_v12 = vld [vmem:[%s4597_s5 + $0x8] sm:$0x1]  ;;  %v324_v13 = vld [vmem:[%s4597_s5 + $0xc] sm:$0xff]   ;;  %s3483_s11 = sshll.u32 %s5551_s24, 1 }
  0x19   : > { %4054 = vmatpush3.bf16.msra.mxu1 %v4369_v5  ;;  %4023 = vmatprep.subr.bf16.mxu0 %v4370_v6  ;;  %345 = vst [vmem:[#allocation2] sm:$0xff] %v321_v11   ;;  %347 = vst [vmem:[#allocation2 + $0x8] sm:$0x1] %v323_v12  ;;  %v326_v15 = vld [vmem:[%s4597_s5 + $0x14] sm:$0x1]  ;;  %v327_v19 = vld [vmem:[%s4597_s5 + $0x18] sm:$0xff]   ;;  %s5431_s16 = sadd.s32 %s3484_s13, %s3483_s11 }
  0x1a   : > { %4055 = vmatprep.subr.bf16.mxu1 %v4371_v7  ;;  %348 = vst [vmem:[#allocation2 + $0xc] sm:$0xff] %v324_v13   ;;  %350 = vst [vmem:[#allocation2 + $0x14] sm:$0x1] %v326_v15  ;;  %v329_v20 = vld [vmem:[%s4597_s5 + $0x20] sm:$0x1]  ;;  %v330_v21 = vld [vmem:[%s4597_s5 + $0x24] sm:$0xff]  }
  0x1b   : > { %351 = vst [vmem:[#allocation2 + $0x18] sm:$0xff] %v327_v19   ;;  %353 = vst [vmem:[#allocation2 + $0x20] sm:$0x1] %v329_v20  ;;  %v332_v23 = vld [vmem:[%s4597_s5 + $0x2c] sm:$0x1]  ;;  %v4385_v5 = vld [vmem:[%s5498_s2 + $0xf0] sm:$0xff]  }
  0x1c   : > { %4024 = vmatpush3.bf16.msra.mxu0 %v4370_v6  ;;  %354 = vst [vmem:[#allocation2 + $0x24] sm:$0xff] %v330_v21   ;;  %356 = vst [vmem:[#allocation2 + $0x2c] sm:$0x1] %v332_v23  ;;  %v333_v23 = vld [vmem:[%s4597_s5 + $0x30] sm:$0xff]   ;;  %s3485_s24 = sshll.u32 %s5431_s16, 2 }
  0x1d   : > { %4056 = vmatpush3.bf16.msra.mxu1 %v4371_v7  ;;  %4025 = vmatprep.subr.bf16.mxu0 %v4372_v8  ;;  %357 = vst [vmem:[#allocation2 + $0x30] sm:$0xff] %v333_v23   ;;  %s5454_s26 = scalar_lea.vmem %s5500_s4, %s3485_s24 }
  0x1e   : > { %4057 = vmatprep.subr.bf16.mxu1 %v4373_v9 }
  0x20   : > { %4026 = vmatpush3.bf16.msra.mxu0 %v4372_v8  ;;  %v382_v24 = vld [vmem:[#allocation2] sm:$0xf]  ;;  %v4625_v25 = vld [vmem:[#allocation2 + $0x4] sm:$0xf]  ;;  %v4627_v26 = vld [vmem:[#allocation2 + $0x8] sm:$0x1] }
  0x21   : > { %4058 = vmatpush3.bf16.msra.mxu1 %v4373_v9  ;;  %4027 = vmatprep.subr.bf16.mxu0 %v4374_v10  ;;  %v426_v27 = vshrl.u32 %v382_v24, 16  ;;  %v429_v28 = vshll.u32 %v382_v24, 16  ;;  %v435_v29 = vshll.u32 %v4625_v25, 16  ;;  %v439_v30 = vshrl.u32 %v4625_v25, 16  ;;  %v384_v31 = vld [vmem:[#allocation2 + $0xc] sm:$0xf] }
  0x22   : > { %4059 = vmatprep.subr.bf16.mxu1 %v4375_v14  ;;  %v445_v32 = vshll.u32 %v4627_v26, 16  ;;  %v3518_v33 = vcombine.low %v382_v24, %v4625_v25  ;;  %v4633_v34 = vld [vmem:[#allocation2 + $0x10] sm:$0xf]  ;;  %v4635_v35 = vld [vmem:[#allocation2 + $0x14] sm:$0x1]  ;;  %v450_v43 = vshrl.u32 %v384_v31, 16 }
  0x23   : > { %v428_v36 = vrot.slane %v426_v27, 4  ;;  %v431_v37 = vrot.slane %v429_v28, 5  ;;  %v437_v38 = vrot.slane %v435_v29, 5  ;;  %v441_v39 = vrot.slane %v439_v30, 4  ;;  %v386_v55 = vld [vmem:[#allocation2 + $0x18] sm:$0xf] }
  0x24   : > { %4028 = vmatpush3.bf16.msra.mxu0 %v4374_v10  ;;  %v447_v42 = vrot.slane %v445_v32, 5  ;;  %v453_v44 = vshll.u32 %v384_v31, 16  ;;  %v459_v45 = vshll.u32 %v4633_v34, 16  ;;  %4065 = vmatprep.mubr.bf16.mxu1 %v3518_v33  ;;  %v463_v48 = vshrl.u32 %v4633_v34, 16  ;;  %v4655_v60 = vld [vmem:[#allocation2 + $0x1c] sm:$0xf] }
  0x25   : > { %4060 = vmatpush3.bf16.msra.mxu1 %v4375_v14  ;;  %4029 = vmatprep.subr.bf16.mxu0 %v4376_v16  ;;  %v432_v46 = vor.u32 %v431_v37, %v428_v36  ;;  %v442_v47 = vor.u32 %v441_v39, %v437_v38  ;;  %v469_v49 = vshll.u32 %v4635_v35, 16  ;;  %v1036_v51 = vrot.slane %v4627_v26, 5  ;;  %v4659_v63 = vld [vmem:[#allocation2 + $0x20] sm:$0x1]  ;;  %v388_v7 = vld [vmem:[#allocation2 + $0x24] sm:$0xf] }
  0x26   : > { %4061 = vmatprep.subr.bf16.mxu1 %v4377_v17  ;;  %v452_v52 = vrot.slane %v450_v43, 4  ;;  %v455_v53 = vrot.slane %v453_v44, 5  ;;  %v461_v54 = vrot.slane %v459_v45, 5  ;;  %v465_v58 = vrot.slane %v463_v48, 4  ;;  %v4669_v8 = vld [vmem:[#allocation2 + $0x28] sm:$0xf] }
  0x27   : > { %v433_v56 = vrot.slane %v432_v46, 4  ;;  %v443_v57 = vrot.slane %v442_v47, 4  ;;  %v471_v59 = vrot.slane %v469_v49, 5  ;;  %v3519_v62 = vcombine.low %v384_v31, %v4633_v34  ;;  %v4671_v13 = vld [vmem:[#allocation2 + $0x2c] sm:$0x1]  ;;  %v4384_v36 = vld [vmem:[%s5498_s2 + $0xb0] sm:$0xff]  }
  0x28   : > { %4030 = vmatpush3.bf16.msra.mxu0 %v4376_v16  ;;  %v456_v61 = vor.u32 %v455_v53, %v452_v52  ;;  %v474_v0 = vshrl.u32 %v386_v55, 16  ;;  %v477_v1 = vshll.u32 %v386_v55, 16  ;;  %v466_v4 = vor.u32 %v465_v58, %v461_v54  ;;  %v335_v24 = vld [vmem:[%s4597_s5 + $0x38] sm:$0x1]  ;;  %v336_v31 = vld [vmem:[%s4597_s5 + $0x3c] sm:$0xff]   ;;  %v4388_v48 = vld [vmem:[%s5498_s2 + $0xa8] sm:$0xff]  }
  0x29   : > { %4062 = vmatpush3.bf16.msra.mxu1 %v4377_v17  ;;  %4031 = vmatprep.subr.bf16.mxu0 %v4378_v18  ;;  %v438_v2 = vsel %vm4650_vm2, %v433_v56, %v437_v38  ;;  %v448_v3 = vsel %vm4650_vm2, %v443_v57, %v447_v42  ;;  %v483_v6 = vshll.u32 %v4655_v60, 16  ;;  %v487_v16 = vshrl.u32 %v4655_v60, 16  ;;  %359 = vst [vmem:[#allocation2 + $0x38] sm:$0x1] %v335_v24  ;;  %v338_v32 = vld [vmem:[%s4597_s5 + $0x44] sm:$0x1] }
  0x2a   : > { %4063 = vmatprep.subr.bf16.mxu1 %v4379_v22  ;;  %v3502_v9 = vcombine.low %v438_v2, %v448_v3  ;;  %v457_v10 = vrot.slane %v456_v61, 4  ;;  %v476_v11 = vrot.slane %v474_v0, 4  ;;  %v479_v12 = vrot.slane %v477_v1, 5  ;;  %360 = vst [vmem:[#allocation2 + $0x3c] sm:$0xff] %v336_v31   ;;  %362 = vst [vmem:[#allocation2 + $0x44] sm:$0x1] %v338_v32 }
  0x2b   : > { %v467_v14 = vrot.slane %v466_v4, 4  ;;  %v485_v15 = vrot.slane %v483_v6, 5  ;;  %v493_v17 = vshll.u32 %v4659_v63, 16  ;;  %v3520_v21 = vcombine.low %v386_v55, %v4655_v60  ;;  %v4391_v55 = vld [vmem:[%s5498_s2 + $0xe0] sm:$0xff]   ;;  %v341_v61 = vld [vmem:[%s4597_s5 + $0x50] sm:$0x1] }
  0x2c   : > { %4032 = vmatpush3.bf16.msra.mxu0 %v4378_v18  ;;  %v4389_v18 = vld [vmem:[%s5498_s2 + $0xe8] sm:$0xff]   ;;  %4033 = vmatprep.mubr.bf16.mxu0 %v3502_v9  ;;  %v462_v19 = vsel %vm4650_vm2, %v457_v10, %v461_v54  ;;  %v480_v20 = vor.u32 %v479_v12, %v476_v11  ;;  %v489_v28 = vrot.slane %v487_v16, 4  ;;  %v501_v30 = vshll.u32 %v388_v7, 16  ;;  %v390_v1 = vld [vmem:[#allocation2 + $0x30] sm:$0xf]  ;;  %v4395_v10 = vld [vmem:[%s5498_s2 + $0xd8] sm:$0xff]  }
  0x2d   : > { %4064 = vmatpush3.bf16.msra.mxu1 %v4379_v22  ;;  %4081 = vmatprep.subr.bf16.mxu0 %v4640_v40  ;;  %v498_v22 = vshrl.u32 %v388_v7, 16  ;;  %v472_v27 = vsel %vm4650_vm2, %v467_v14, %v471_v59  ;;  %v495_v29 = vrot.slane %v493_v17, 5  ;;  %v507_v39 = vshll.u32 %v4669_v8, 16  ;;  %v339_v59 = vld [vmem:[%s4597_s5 + $0x48] sm:$0xff]   ;;  %v4710_v2 = vld [vmem:[#allocation2 + $0x34] sm:$0xf] }
  0x2e   : > { %4113 = vmatprep.subr.bf16.mxu1 %v4383_v41  ;;  %v3503_v33 = vcombine.low %v462_v19, %v472_v27  ;;  %v481_v37 = vrot.slane %v480_v20, 4  ;;  %v503_v42 = vrot.slane %v501_v30, 5  ;;  %v511_v43 = vshrl.u32 %v4669_v8, 16  ;;  %363 = vst [vmem:[#allocation2 + $0x48] sm:$0xff] %v339_v59   ;;  %365 = vst [vmem:[#allocation2 + $0x50] sm:$0x1] %v341_v61 }
  0x2f   : > { %v500_v38 = vrot.slane %v498_v22, 4  ;;  %v517_v44 = vshll.u32 %v4671_v13, 16  ;;  %v509_v46 = vrot.slane %v507_v39, 5  ;;  %v3521_v47 = vcombine.low %v388_v7, %v4669_v8  ;;  %v4390_v11 = vld [vmem:[%s5498_s2 + $0xa0] sm:$0xff]   ;;  %v344_v30 = vld [vmem:[%s4597_s5 + $0x5c] sm:$0x1] }
  0x30   : > { %4066 = vmatmul.mubr.bf16.vlgmr.msra.gmra.mxu1 %v3519_v62  ;;  %4034 = vmatmul.mubr.bf16.vlgmr.msra.gmra.mxu0 %v3503_v33  ;;  %v486_v45 = vsel %vm4650_vm2, %v481_v37, %v485_v15  ;;  %v513_v53 = vrot.slane %v511_v43, 4  ;;  %v342_v62 = vld [vmem:[%s4597_s5 + $0x54] sm:$0xff]   ;;  %v4712_v3 = vld [vmem:[#allocation2 + $0x38] sm:$0x1]  ;;  %v522_v6 = vshrl.u32 %v390_v1, 16  ;;  %v525_v7 = vshll.u32 %v390_v1, 16  ;;  %s4840_s5 = sadd.s32 %s4323_s23, %s4322_s10 }
  0x31   : > { %4114 = vmatpush3.bf16.msra.mxu1 %v4383_v41  ;;  %4069 = vmatprep.mubr.bf16.mxu1 %v3520_v21  ;;  %v490_v41 = vor.u32 %v489_v28, %v485_v15  ;;  %v504_v52 = vor.u32 %v503_v42, %v500_v38  ;;  %v519_v54 = vrot.slane %v517_v44, 5  ;;  %366 = vst [vmem:[#allocation2 + $0x54] sm:$0xff] %v342_v62   ;;  %v392_v9 = vld [vmem:[#allocation2 + $0x3c] sm:$0xf]  ;;  %v531_v12 = vshll.u32 %v4710_v2, 16  ;;  %v4397_v37 = vld [vmem:[%s5498_s2 + $0xd0] sm:$0xff]  }
  0x32   : > { %4115 = vmatprep.subr.bf16.mxu1 %v4385_v5  ;;  %4082 = vmatpush3.bf16.msra.mxu0 %v4640_v40  ;;  %v514_v58 = vor.u32 %v513_v53, %v509_v46  ;;  %v1033_v40 = vrot.slane %v4625_v25, 5  ;;  %v535_v14 = vshrl.u32 %v4710_v2, 16  ;;  %v541_v15 = vshll.u32 %v4712_v3, 16  ;;  %v4726_v17 = vld [vmem:[#allocation2 + $0x40] sm:$0xf]  ;;  %s3481_s10 = sshll.u32 %s4840_s5, 2 }
  0x33   : > { %v491_v49 = vrot.slane %v490_v41, 4  ;;  %4083 = vmatprep.subr.bf16.mxu0 %v4384_v36  ;;  %v505_v57 = vrot.slane %v504_v52, 4  ;;  %v3522_v16 = vcombine.low %v390_v1, %v4710_v2  ;;  %v524_v19 = vrot.slane %v522_v6, 4  ;;  %v4730_v21 = vld [vmem:[#allocation2 + $0x44] sm:$0x1]  ;;  %s4868_s23 = scalar_lea.vmem %s5497_s1, %s3481_s10 }
  0x34   : > { %v527_v20 = vrot.slane %v525_v7, 5  ;;  %v546_v22 = vshrl.u32 %v392_v9, 16  ;;  %v533_v24 = vrot.slane %v531_v12, 5  ;;  %v537_v27 = vrot.slane %v535_v14, 4  ;;  %368 = vst [vmem:[#allocation2 + $0x5c] sm:$0x1] %v344_v30 }
  0x35   : > { %4116 = vmatpush3.bf16.msra.mxu1 %v4385_v5  ;;  %v496_v56 = vsel %vm4650_vm2, %v491_v49, %v495_v29  ;;  %v510_v4 = vsel %vm4650_vm2, %v505_v57, %v509_v46  ;;  %v515_v5 = vrot.slane %v514_v58, 4  ;;  %v543_v28 = vrot.slane %v541_v15, 5  ;;  %v4394_v29 = vld [vmem:[%s5498_s2 + $0x98] sm:$0xff]   ;;  %v4396_v53 = vld [vmem:[%s5498_s2 + $0x90] sm:$0xff]   ;;  %v4760_v58 = vld [vmem:[#allocation2 + $0x50] sm:$0x1] }
  0x36   : > { %4117 = vmatprep.subr.bf16.mxu1 %v4389_v18  ;;  %v3504_v0 = vcombine.low %v486_v45, %v496_v56  ;;  %4084 = vmatpush3.bf16.msra.mxu0 %v4384_v36  ;;  %v528_v31 = vor.u32 %v527_v20, %v524_v19  ;;  %v548_v32 = vrot.slane %v546_v22, 4  ;;  %v549_v33 = vshll.u32 %v392_v9, 16  ;;  %v394_v46 = vld [vmem:[#allocation2 + $0x48] sm:$0xf]  ;;  %v4401_v12 = vld [vmem:[%s5498_s2 + $0xc8] sm:$0xff]  }
  0x37   : > { %4085 = vmatprep.subr.bf16.mxu0 %v4388_v48  ;;  %v555_v36 = vshll.u32 %v4726_v17, 16  ;;  %v538_v38 = vor.u32 %v537_v27, %v533_v24  ;;  %v559_v39 = vshrl.u32 %v4726_v17, 16  ;;  %v565_v41 = vshll.u32 %v4730_v21, 16  ;;  %v4400_v27 = vld [vmem:[%s5498_s2 + $0x88] sm:$0xff]  }
  0x38   : > { %4070 = vmatmul.mubr.bf16.gmra.mxu1 %v3521_v47  ;;  %4037 = vmatprep.mubr.bf16.mxu0 %v3504_v0  ;;  %v3523_v42 = vcombine.low %v392_v9, %v4726_v17  ;;  %v529_v43 = vrot.slane %v528_v31, 4  ;;  %v551_v44 = vrot.slane %v549_v33, 5  ;;  %v4751_v47 = vrot.slane %v1033_v40, 4  ;;  %v396_v62 = vld [vmem:[#allocation2 + $0x54] sm:$0xf] }
  0x39   : > { %4118 = vmatpush3.bf16.msra.mxu1 %v4389_v18  ;;  %v520_v18 = vsel %vm4650_vm2, %v515_v5, %v519_v54  ;;  %4073 = vmatprep.mubr.bf16.mxu1 %v3522_v16  ;;  %v557_v45 = vrot.slane %v555_v36, 5  ;;  %v561_v49 = vrot.slane %v559_v39, 4  ;;  %v567_v52 = vrot.slane %v565_v41, 5  ;;  %v4756_v54 = vld [vmem:[#allocation2 + $0x4c] sm:$0xf] }
  0x3a   : > { %4119 = vmatprep.subr.bf16.mxu1 %v4391_v55  ;;  %v3505_v23 = vcombine.low %v510_v4, %v520_v18  ;;  %4086 = vmatpush3.bf16.msra.mxu0 %v4388_v48  ;;  %v539_v48 = vrot.slane %v538_v38, 4  ;;  %v534_v56 = vsel %vm4650_vm2, %v529_v43, %v533_v24  ;;  %v552_v57 = vor.u32 %v551_v44, %v548_v32  ;;  %v4766_v6 = vld [vmem:[#allocation2 + $0x58] sm:$0xf]  ;;  %v1004_v33 = vld [vmem:[#allocation2] sm:$0xe] }
  0x3b   : > { %4087 = vmatprep.subr.bf16.mxu0 %v4390_v11  ;;  %v573_v59 = vshll.u32 %v394_v46, 16  ;;  %v579_v61 = vshll.u32 %v4756_v54, 16  ;;  %v562_v1 = vor.u32 %v561_v49, %v557_v45  ;;  %v583_v5 = vshrl.u32 %v4756_v54, 16  ;;  %v4773_v19 = vld [vmem:[#allocation2 + $0x5c] sm:$0x1] }
  0x3c   : > { %4038 = vmatmul.mubr.bf16.gmra.mxu0 %v3505_v23  ;;  %v544_v0 = vsel %vm4650_vm2, %v539_v48, %v543_v28  ;;  %v553_v9 = vrot.slane %v552_v57, 4  ;;  %v589_v16 = vshll.u32 %v4760_v58, 16  ;;  %v3524_v18 = vcombine.low %v394_v46, %v4756_v54 }
  0x3d   : > { %4120 = vmatpush3.bf16.msra.mxu1 %v4391_v55  ;;  %v570_v55 = vshrl.u32 %v394_v46, 16  ;;  %v3506_v7 = vcombine.low %v534_v56, %v544_v0  ;;  %v563_v14 = vrot.slane %v562_v1, 4  ;;  %v585_v15 = vrot.slane %v583_v5, 4  ;;  %v4407_v1 = vld [vmem:[%s5498_s2 + $0x178] sm:$0xff]  }
  0x3e   : > { %4121 = vmatprep.subr.bf16.mxu1 %v4395_v10  ;;  %4088 = vmatpush3.bf16.msra.mxu0 %v4390_v11  ;;  %v581_v11 = vrot.slane %v579_v61, 5  ;;  %v558_v20 = vsel %vm4650_vm2, %v553_v9, %v557_v45  ;;  %v594_v23 = vshrl.u32 %v396_v62, 16  ;;  %v597_v24 = vshll.u32 %v396_v62, 16  ;;  %v1005_v61 = vld [vmem:[#allocation2 + $0xc] sm:$0xe] }
  0x3f   : > { %4089 = vmatprep.subr.bf16.mxu0 %v4394_v29  ;;  %v572_v4 = vrot.slane %v570_v55, 4  ;;  %4041 = vmatprep.mubr.bf16.mxu0 %v3506_v7  ;;  %v568_v28 = vsel %vm4650_vm2, %v563_v14, %v567_v52  ;;  %v591_v31 = vrot.slane %v589_v16, 5  ;;  %v603_v32 = vshll.u32 %v4766_v6, 16  ;;  %v1006_v14 = vld [vmem:[#allocation2 + $0x18] sm:$0xe]  ;;  %v4410_v16 = vld [vmem:[#allocation2 + $0x24] sm:$0xff]  }
  0x40   : > { %4074 = vmatmul.mubr.bf16.gmra.mxu1 %v3523_v42  ;;  %v586_v30 = vor.u32 %v585_v15, %v581_v11  ;;  %v3507_v36 = vcombine.low %v558_v20, %v568_v28  ;;  %v596_v39 = vrot.slane %v594_v23, 4  ;;  %v599_v41 = vrot.slane %v597_v24, 5  ;;  %v4404_v42 = vld [vmem:[#allocation2 + $0xc] sm:$0xff]   ;;  %v1007_v23 = vld [vmem:[#allocation2 + $0x24] sm:$0xe] }
  0x41   : > { %4122 = vmatpush3.bf16.msra.mxu1 %v4395_v10  ;;  %v575_v10 = vrot.slane %v573_v59, 5  ;;  %4077 = vmatprep.mubr.bf16.mxu1 %v3524_v18  ;;  %v605_v44 = vrot.slane %v603_v32, 5  ;;  %v613_v45 = vshll.u32 %v4773_v19, 16  ;;  %v3525_v49 = vcombine.low %v396_v62, %v4766_v6  ;;  %v4402_v59 = vld [vmem:[%s5498_s2 + $0x80] sm:$0xff]  }
  0x42   : > { %4123 = vmatprep.subr.bf16.mxu1 %v4397_v37  ;;  %4090 = vmatpush3.bf16.msra.mxu0 %v4394_v29  ;;  %v4403_v29 = vld [vmem:[%s5498_s2 + $0xc0] sm:$0xff]   ;;  %v587_v43 = vrot.slane %v586_v30, 4  ;;  %v600_v48 = vor.u32 %v599_v41, %v596_v39  ;;  %v3534_v55 = vrot.slane %v1004_v33, 9  ;;  %v1040_v5 = vrot.slane %v4633_v34, 5  ;;  %v4405_v34 = vld [vmem:[#allocation2 + $0x18] sm:$0xff]  }
  0x43   : > { %v576_v22 = vor.u32 %v575_v10, %v572_v4  ;;  %4091 = vmatprep.subr.bf16.mxu0 %v4396_v53  ;;  %v1037_v9 = vsel %vm4799_vm5, %v4751_v47, %v1036_v51  ;;  %v1043_v10 = vrot.slane %v4635_v35, 5  ;;  %v1047_v25 = vrot.slane %v4655_v60, 5  ;;  %v4406_v47 = vld [vmem:[%s5498_s2 + $0x138] sm:$0xff]   ;;  %v1008_v32 = vld [vmem:[#allocation2 + $0x30] sm:$0xe] }
  0x44   : > { %4042 = vmatmul.mubr.bf16.gmra.mxu0 %v3507_v36  ;;  %v592_v56 = vsel %vm4650_vm2, %v587_v43, %v591_v31  ;;  %v601_v0 = vrot.slane %v600_v48, 4  ;;  %v1034_v7 = vsel %vm4799_vm5, %v3534_v55, %v1033_v40  ;;  %v3535_v26 = vrot.slane %v1005_v61, 9  ;;  %v4413_v36 = vld [vmem:[%s5498_s2 + $0x168] sm:$0xff]   ;;  %v4411_v39 = vld [vmem:[#allocation2 + $0x30] sm:$0xff]  }
  0x45   : > { %4124 = vmatpush3.bf16.msra.mxu1 %v4397_v37  ;;  %v577_v38 = vrot.slane %v576_v22, 4  ;;  %v607_v37 = vshrl.u32 %v4766_v6, 16  ;;  %v1042_v40 = vrot.slane %v1040_v5, 4  ;;  %v3558_v35 = vcombine.low %v1034_v7, %v1037_v9  ;;  %v4409_v22 = vld [vmem:[%s5498_s2 + $0x170] sm:$0xff]   ;;  %v4414_v9 = vld [vmem:[%s5498_s2 + $0x120] sm:$0xff]  }
  0x46   : > { %4125 = vmatprep.subr.bf16.mxu1 %v4401_v12  ;;  %4092 = vmatpush3.bf16.msra.mxu0 %v4396_v53  ;;  %v615_v53 = vrot.slane %v613_v45, 5  ;;  %v3536_v15 = vrot.slane %v1006_v14, 9  ;;  %v1049_v20 = vrot.slane %v1047_v25, 4  ;;  %v1050_v60 = vrot.slane %v4659_v63, 5  ;;  %v1009_v45 = vld [vmem:[#allocation2 + $0x3c] sm:$0xe] }
  0x47   : > { %v582_v46 = vsel %vm4650_vm2, %v577_v38, %v581_v11  ;;  %v609_v57 = vrot.slane %v607_v37, 4  ;;  %4093 = vmatprep.subr.bf16.mxu0 %v4400_v27  ;;  %v606_v11 = vsel %vm4650_vm2, %v601_v0, %v605_v44  ;;  %v1054_v24 = vrot.slane %v4669_v8, 5  ;;  %v4415_v37 = vld [vmem:[%s5498_s2 + $0x160] sm:$0xff]   ;;  %v4419_v0 = vld [vmem:[%s5498_s2 + $0x158] sm:$0xff]  }
  0x48   : > { %v3508_v62 = vcombine.low %v582_v46, %v592_v56  ;;  %4078 = vmatmul.mubr.bf16.gmra.mxu1 %v3525_v49  ;;  %v1044_v63 = vsel %vm4799_vm5, %v1042_v40, %v1043_v10  ;;  %v1061_v28 = vrot.slane %v4710_v2, 5  ;;  %v1048_v8 = vsel %vm4799_vm5, %v3536_v15, %v1047_v25  ;;  %v4408_v2 = vld [vmem:[%s5498_s2 + $0x130] sm:$0xff]   ;;  %v1011_v10 = vld [vmem:[#allocation2 + $0x54] sm:$0xe]  ;;  %v4418_v40 = vld [vmem:[%s5498_s2 + $0x118] sm:$0xff]  }
  0x49   : > { %4126 = vmatpush3.bf16.msra.mxu1 %v4401_v12  ;;  %v610_v4 = vor.u32 %v609_v57, %v605_v44  ;;  %4129 = vmatprep.mubr.bf16.mxu1 %v4404_v42  ;;  %v1051_v30 = vsel %vm4799_vm5, %v1049_v20, %v1050_v60  ;;  %v3537_v31 = vrot.slane %v1007_v23, 9  ;;  %v1056_v33 = vrot.slane %v1054_v24, 4  ;;  %v4416_v46 = vld [vmem:[#allocation2 + $0x3c] sm:$0xff]   ;;  %v1541_v15 = vld [vmem:[#allocation2 + $0x10] sm:$0xf] }
  0x4a   : > { %4127 = vmatprep.subr.bf16.mxu1 %v4403_v29  ;;  %4045 = vmatprep.mubr.bf16.mxu0 %v3508_v62  ;;  %v1057_v38 = vrot.slane %v4671_v13, 5  ;;  %v3538_v41 = vrot.slane %v1008_v32, 9  ;;  %v1063_v42 = vrot.slane %v1061_v28, 4  ;;  %v1064_v43 = vrot.slane %v4712_v3, 5  ;;  %v4417_v62 = vld [vmem:[#allocation2 + $0x48] sm:$0xff]  }
  0x4b   : > { %v611_v12 = vrot.slane %v610_v4, 4  ;;  %4094 = vmatpush3.bf16.msra.mxu0 %v4400_v27  ;;  %v1041_v27 = vsel %vm4799_vm5, %v3535_v26, %v1040_v5  ;;  %v3560_v44 = vcombine.low %v1048_v8, %v1051_v30  ;;  %v1068_v48 = vrot.slane %v4726_v17, 5  ;;  %v4412_v17 = vld [vmem:[%s5498_s2 + $0x128] sm:$0xff]   ;;  %v369_v5 = vld [vmem:[%s4868_s23] sm:$0xff]  }
  0x4c   : > { %4095 = vmatprep.subr.bf16.mxu0 %v4402_v59  ;;  %v1075_v13 = vrot.slane %v4756_v54, 5  ;;  %v1055_v3 = vsel %vm4799_vm5, %v3537_v31, %v1054_v24  ;;  %v1058_v49 = vsel %vm4799_vm5, %v1056_v33, %v1057_v38  ;;  %v1071_v55 = vrot.slane %v4730_v21, 5  ;;  %v1010_v54 = vld [vmem:[#allocation2 + $0x48] sm:$0xe]  ;;  %376 = vst [vmem:[#allocation2 + $0x60] sm:$0xff] %v369_v5  }
  0x4d   : > { %4128 = vmatpush3.bf16.msra.mxu1 %v4403_v29  ;;  %v616_v51 = vsel %vm4650_vm2, %v611_v12, %v615_v53  ;;  %v3559_v29 = vcombine.low %v1041_v27, %v1044_v63  ;;  %v1062_v56 = vsel %vm4799_vm5, %v3538_v41, %v1061_v28  ;;  %v1065_v57 = vsel %vm4799_vm5, %v1063_v42, %v1064_v43  ;;  %v4421_v12 = vld [vmem:[%s5498_s2 + $0x150] sm:$0xff]   ;;  %v1966_v24 = vld [vmem:[#allocation2 + $0xc] sm:$0xe]  ;;  %v1543_v30 = vld [vmem:[#allocation2 + $0x18] sm:$0xf] }
  0x4e   : > { %4177 = vmatprep.subr.bf16.mxu1 %v4407_v1  ;;  %v3509_v18 = vcombine.low %v606_v11, %v616_v51  ;;  %v1070_v61 = vrot.slane %v1068_v48, 4  ;;  %v3540_v21 = vrot.slane %v1010_v54, 9  ;;  %v1078_v4 = vrot.slane %v4760_v58, 5  ;;  %v1544_v42 = vld [vmem:[#allocation2 + $0x1c] sm:$0xf]  ;;  %v4420_v43 = vld [vmem:[%s5498_s2 + $0x110] sm:$0xff]  }
  0x4f   : > { %4096 = vmatpush3.bf16.msra.mxu0 %v4402_v59  ;;  %v3539_v59 = vrot.slane %v1009_v45, 9  ;;  %v1082_v53 = vrot.slane %v4766_v6, 5  ;;  %v3561_v7 = vcombine.low %v1055_v3, %v1058_v49  ;;  %v3562_v11 = vcombine.low %v1062_v56, %v1065_v57  ;;  %v1545_v45 = vld [vmem:[#allocation2 + $0x20] sm:$0x1]  ;;  %v4427_v54 = vld [vmem:[%s5498_s2 + $0x140] sm:$0xff]  }
  0x50   : > { %4046 = vmatmul.mubr.bf16.gmra.mxu0 %v3509_v18  ;;  %4130 = vmatmul.mubr.bf16.vlgmr.msra.gmra.mxu1 %v4405_v34  ;;  %v4422_v34 = vld [vmem:[#allocation2 + $0x54] sm:$0xff]   ;;  %v1085_v58 = vrot.slane %v4773_v19, 5  ;;  %v3541_v14 = vrot.slane %v1011_v10, 9  ;;  %v1072_v26 = vsel %vm4799_vm5, %v1070_v61, %v1071_v55  ;;  %v1076_v51 = vsel %vm4799_vm5, %v3540_v21, %v1075_v13  ;;  %v4429_v10 = vld [vmem:[%s5498_s2 + $0x1f8] sm:$0xff]  }
  0x51   : > { %4097 = vmatprep.mubr.bf16.mxu0 %v3558_v35  ;;  %4145 = vmatprep.subr.bf16.mxu0 %v4406_v47  ;;  %v1069_v6 = vsel %vm4799_vm5, %v3539_v59, %v1068_v48  ;;  %v4897_v25 = vrot.slane %v1082_v53, 4  ;;  %v4425_v18 = vld [vmem:[%s5498_s2 + $0x148] sm:$0xff]   ;;  %v1578_v23 = vshrl.u32 %v1541_v15, 16  ;;  %v3638_v63 = vrot.slane %v1966_v24, 9 }
  0x52   : > { %4178 = vmatpush3.bf16.msra.mxu1 %v4407_v1  ;;  %4133 = vmatprep.mubr.bf16.mxu1 %v4410_v16  ;;  %v1077_v1 = vrot.slane %v1075_v13, 4  ;;  %v1542_v16 = vld [vmem:[#allocation2 + $0x14] sm:$0x1]  ;;  %v2000_v28 = vrot.slane %v1541_v15, 5  ;;  %v3563_v31 = vcombine.low %v1069_v6, %v1072_v26  ;;  %v1592_v48 = vshll.u32 %v1543_v30, 16 }
  0x53   : > { %4179 = vmatprep.subr.bf16.mxu1 %v4409_v22  ;;  %v1584_v27 = vshll.u32 %v1542_v16, 16  ;;  %v2003_v8 = vrot.slane %v1542_v16, 5  ;;  %v4423_v33 = vld [vmem:[#allocation2 + $0x60] sm:$0xff]   ;;  %v1598_v49 = vshll.u32 %v1544_v42, 16  ;;  %v1967_v55 = vld [vmem:[#allocation2 + $0x18] sm:$0xe] }
  0x54   : > { %v1079_v35 = vsel %vm4799_vm5, %v1077_v1, %v1078_v4  ;;  %v1594_v59 = vrot.slane %v1592_v48, 5  ;;  %v1608_v61 = vshll.u32 %v1545_v45, 16  ;;  %v1086_v4 = vsel %vm4799_vm5, %v4897_v25, %v1085_v58  ;;  %v4428_v48 = vld [vmem:[%s5498_s2 + $0x1b8] sm:$0xff]  }
  0x55   : > { %v3564_v32 = vcombine.low %v1076_v51, %v1079_v35  ;;  %v1586_v41 = vrot.slane %v1584_v27, 5  ;;  %v1600_v1 = vrot.slane %v1598_v49, 5  ;;  %v1546_v35 = vld [vmem:[#allocation2 + $0x24] sm:$0xf] }
  0x56   : > { %4180 = vmatpush3.bf16.msra.mxu1 %v4409_v22  ;;  %v1574_v22 = vshll.u32 %v1541_v15, 16 }
  0x57   : > { %4181 = vmatprep.subr.bf16.mxu1 %v4413_v36 }
  0x58   : > { %4098 = vmatmul.mubr.bf16.vlgmr.msra.gmra.mxu0 %v3559_v29  ;;  %4134 = vmatmul.mubr.bf16.gmra.mxu1 %v4411_v39  ;;  %v4913_v29 = vsel %vm4799_vm5, %v3541_v14, %v1082_v53  ;;  %v1576_v38 = vrot.slane %v1574_v22, 5  ;;  %v1580_v39 = vrot.slane %v1578_v23, 4  ;;  %v4424_v53 = vld [vmem:[%s5498_s2 + $0x108] sm:$0xff]   ;;  %v1610_v14 = vrot.slane %v1608_v61, 5  ;;  %v4426_v22 = vld [vmem:[%s5498_s2 + $0x100] sm:$0xff]  }
  0x59   : > { %4146 = vmatpush3.bf16.msra.mxu0 %v4406_v47  ;;  %4101 = vmatprep.mubr.bf16.mxu0 %v3560_v44  ;;  %v1540_v47 = vld [vmem:[#allocation2 + $0xc] sm:$0xf]  ;;  %v2001_v44 = vsel %vm4799_vm5, %v3638_v63, %v2000_v28  ;;  %v3565_v25 = vcombine.low %v4913_v29, %v1086_v4  ;;  %v1549_v29 = vld [vmem:[#allocation2 + $0x30] sm:$0xf] }
  0x5a   : > { %4147 = vmatprep.subr.bf16.mxu0 %v4408_v2  ;;  %4182 = vmatpush3.bf16.msra.mxu1 %v4413_v36  ;;  %v1565_v20 = vshrl.u32 %v1540_v47, 16  ;;  %v1568_v60 = vshll.u32 %v1540_v47, 16  ;;  %v1581_v3 = vor.u32 %v1580_v39, %v1576_v38  ;;  %v1547_v47 = vld [vmem:[#allocation2 + $0x28] sm:$0xf]  ;;  %v1640_v49 = vshll.u32 %v1549_v29, 16 }
  0x5b   : > { %4183 = vmatprep.subr.bf16.mxu1 %v4415_v37  ;;  %4137 = vmatprep.mubr.bf16.mxu1 %v4416_v46  ;;  %v1589_v46 = vshrl.u32 %v1543_v30, 16  ;;  %v1622_v24 = vshll.u32 %v1547_v47, 16  ;;  %v1626_v27 = vshrl.u32 %v1547_v47, 16 }
  0x5c   : > { %v1567_v36 = vrot.slane %v1565_v20, 4  ;;  %v1613_v20 = vshrl.u32 %v1546_v35, 16 }
  0x5d   : > { %4148 = vmatpush3.bf16.msra.mxu0 %v4408_v2  ;;  %v1570_v2 = vrot.slane %v1568_v60, 5  ;;  %v1591_v57 = vrot.slane %v1589_v46, 4  ;;  %v1616_v60 = vshll.u32 %v1546_v35, 16  ;;  %v1628_v39 = vrot.slane %v1626_v27, 4  ;;  %v1969_v46 = vld [vmem:[#allocation2 + $0x30] sm:$0xe] }
  0x5e   : > { %4149 = vmatprep.subr.bf16.mxu0 %v4412_v17  ;;  %4184 = vmatpush3.bf16.msra.mxu1 %v4415_v37  ;;  %v2002_v37 = vrot.slane %v2000_v28, 4  ;;  %v1968_v28 = vld [vmem:[#allocation2 + $0x24] sm:$0xe]  ;;  %v1554_v35 = vld [vmem:[#allocation2 + $0x44] sm:$0x1] }
  0x5f   : > { %4185 = vmatprep.subr.bf16.mxu1 %v4419_v0  ;;  %v1571_v13 = vor.u32 %v1570_v2, %v1567_v36  ;;  %v1595_v5 = vor.u32 %v1594_v59, %v1591_v57  ;;  %v4431_v2 = vld [vmem:[%s5498_s2 + $0x1f0] sm:$0xff]   ;;  %v1970_v27 = vld [vmem:[#allocation2 + $0x3c] sm:$0xe] }
  0x60   : > { %4102 = vmatmul.mubr.bf16.gmra.mxu0 %v3561_v7  ;;  %4138 = vmatmul.mubr.bf16.gmra.mxu1 %v4417_v62  ;;  %v2004_v56 = vsel %vm4799_vm5, %v2002_v37, %v2003_v8  ;;  %v2014_v37 = vrot.slane %v1547_v47, 5  ;;  %v4430_v59 = vld [vmem:[%s5498_s2 + $0x1b0] sm:$0xff]  }
  0x61   : > { %4150 = vmatpush3.bf16.msra.mxu0 %v4412_v17  ;;  %4105 = vmatprep.mubr.bf16.mxu0 %v3562_v11  ;;  %v1602_v17 = vshrl.u32 %v1544_v42, 16  ;;  %v1572_v62 = vrot.slane %v1571_v13, 4  ;;  %v3662_v21 = vcombine.low %v2001_v44, %v2004_v56  ;;  %v1596_v58 = vrot.slane %v1595_v5, 4 }
  0x62   : > { %4151 = vmatprep.subr.bf16.mxu0 %v4414_v9  ;;  %4186 = vmatpush3.bf16.msra.mxu1 %v4419_v0  ;;  %v1582_v0 = vrot.slane %v1581_v3, 4  ;;  %v3640_v44 = vrot.slane %v1968_v28, 9  ;;  %v1637_v3 = vshrl.u32 %v1549_v29, 16  ;;  %v2016_v56 = vrot.slane %v2014_v37, 4  ;;  %v1556_v29 = vld [vmem:[#allocation2 + $0x4c] sm:$0xf] }
  0x63   : > { %4187 = vmatprep.subr.bf16.mxu1 %v4421_v12  ;;  %4141 = vmatprep.mubr.bf16.mxu1 %v4422_v34  ;;  %v1604_v7 = vrot.slane %v1602_v17, 4  ;;  %v1577_v19 = vsel %vm4650_vm2, %v1572_v62, %v1576_v38  ;;  %v2010_v34 = vrot.slane %v1545_v45, 5  ;;  %v1601_v15 = vsel %vm4650_vm2, %v1596_v58, %v1600_v1 }
  0x64   : > { %v1587_v11 = vsel %vm4650_vm2, %v1582_v0, %v1586_v41  ;;  %v1624_v38 = vrot.slane %v1622_v24, 5  ;;  %v1639_v62 = vrot.slane %v1637_v3, 4  ;;  %v1642_v0 = vrot.slane %v1640_v49, 5  ;;  %v1971_v3 = vld [vmem:[#allocation2 + $0x48] sm:$0xe]  ;;  %v4439_v49 = vld [vmem:[%s5498_s2 + $0x1d0] sm:$0xff]  }
  0x65   : > { %4152 = vmatpush3.bf16.msra.mxu0 %v4414_v9  ;;  %v3639_v9 = vrot.slane %v1967_v55, 9  ;;  %v1605_v6 = vor.u32 %v1604_v7, %v1600_v1  ;;  %v3622_v26 = vcombine.low %v1577_v19, %v1587_v11  ;;  %v4433_v1 = vld [vmem:[%s5498_s2 + $0x1e8] sm:$0xff]   ;;  %v3641_v11 = vrot.slane %v1969_v46, 9 }
  0x66   : > { %4153 = vmatprep.subr.bf16.mxu0 %v4418_v40  ;;  %4188 = vmatpush3.bf16.msra.mxu1 %v4421_v12  ;;  %v2007_v12 = vrot.slane %v1544_v42, 5  ;;  %v4955_v42 = vld [vmem:[#allocation2 + $0x38] sm:$0x1]  ;;  %v1629_v13 = vor.u32 %v1628_v39, %v1624_v38  ;;  %v1643_v19 = vor.u32 %v1642_v0, %v1639_v62  ;;  %v2031_v46 = vrot.slane %v1554_v35, 5 }
  0x67   : > { %4189 = vmatprep.subr.bf16.mxu1 %v4425_v18  ;;  %v1606_v16 = vrot.slane %v1605_v6, 4  ;;  %v1656_v7 = vshll.u32 %v4955_v42, 16  ;;  %v1698_v62 = vshrl.u32 %v1556_v29, 16 }
  0x68   : > { %4106 = vmatmul.mubr.bf16.gmra.mxu0 %v3563_v31  ;;  %4142 = vmatmul.mubr.bf16.gmra.mxu1 %v4423_v33  ;;  %v2009_v51 = vrot.slane %v2007_v12, 4  ;;  %v1615_v31 = vrot.slane %v1613_v20, 4  ;;  %v1550_v33 = vld [vmem:[#allocation2 + $0x34] sm:$0xf]  ;;  %v1630_v61 = vrot.slane %v1629_v13, 4 }
  0x69   : > { %4154 = vmatpush3.bf16.msra.mxu0 %v4418_v40  ;;  %4109 = vmatprep.mubr.bf16.mxu0 %v3564_v32  ;;  %v2008_v40 = vsel %vm4799_vm5, %v3639_v9, %v2007_v12  ;;  %v1611_v8 = vsel %vm4650_vm2, %v1606_v16, %v1610_v14  ;;  %v1618_v32 = vrot.slane %v1616_v60, 5  ;;  %v1646_v17 = vshll.u32 %v1550_v33, 16  ;;  %v4435_v12 = vld [vmem:[%s5498_s2 + $0x1e0] sm:$0xff]  }
  0x6a   : > { %4155 = vmatprep.subr.bf16.mxu0 %v4420_v43  ;;  %4190 = vmatpush3.bf16.msra.mxu1 %v4425_v18  ;;  %v1548_v18 = vld [vmem:[#allocation2 + $0x2c] sm:$0x1]  ;;  %v2011_v23 = vsel %vm4799_vm5, %v2009_v51, %v2010_v34  ;;  %v3623_v36 = vcombine.low %v1601_v15, %v1611_v8  ;;  %v1650_v57 = vshrl.u32 %v1550_v33, 16  ;;  %v1658_v6 = vrot.slane %v1656_v7, 5  ;;  %v1553_v51 = vld [vmem:[#allocation2 + $0x40] sm:$0xf] }
  0x6b   : > { %4191 = vmatprep.subr.bf16.mxu1 %v4427_v54  ;;  %4193 = vmatprep.mubr.bf16.mxu1 %v3662_v21  ;;  %v1632_v63 = vshll.u32 %v1548_v18, 16  ;;  %v3663_v30 = vcombine.low %v2008_v40, %v2011_v23  ;;  %v2017_v45 = vrot.slane %v1548_v18, 5  ;;  %v1648_v21 = vrot.slane %v1646_v17, 5  ;;  %v4432_v18 = vld [vmem:[%s5498_s2 + $0x1a8] sm:$0xff]  }
  0x6c   : > { %v1652_v5 = vrot.slane %v1650_v57, 4  ;;  %v2021_v14 = vrot.slane %v1550_v33, 5  ;;  %v2024_v40 = vrot.slane %v4955_v42, 5  ;;  %v1670_v23 = vshll.u32 %v1553_v51, 16 }
  0x6d   : > { %4156 = vmatpush3.bf16.msra.mxu0 %v4420_v43  ;;  %v1634_v41 = vrot.slane %v1632_v63, 5  ;;  %v1619_v43 = vor.u32 %v1618_v32, %v1615_v31  ;;  %v1674_v24 = vshrl.u32 %v1553_v51, 16  ;;  %v4437_v63 = vld [vmem:[%s5498_s2 + $0x1d8] sm:$0xff]   ;;  %v1680_v31 = vshll.u32 %v1554_v35, 16  ;;  %v4441_v35 = vld [vmem:[%s5498_s2 + $0x1c8] sm:$0xff]  }
  0x6e   : > { %4157 = vmatprep.subr.bf16.mxu0 %v4424_v53  ;;  %4192 = vmatpush3.bf16.msra.mxu1 %v4427_v54  ;;  %v2015_v54 = vsel %vm4799_vm5, %v3640_v44, %v2014_v37  ;;  %v1653_v58 = vor.u32 %v1652_v5, %v1648_v21  ;;  %v2022_v15 = vsel %vm4799_vm5, %v3641_v11, %v2021_v14  ;;  %v2023_v16 = vrot.slane %v2021_v14, 4  ;;  %v1555_v32 = vld [vmem:[#allocation2 + $0x48] sm:$0xf] }
  0x6f   : > { %4241 = vmatprep.subr.bf16.mxu1 %v4429_v10  ;;  %v1620_v55 = vrot.slane %v1619_v43, 4  ;;  %v1635_v9 = vsel %vm4650_vm2, %v1630_v61, %v1634_v41  ;;  %v1672_v39 = vrot.slane %v1670_v23, 5  ;;  %v4996_v41 = vld [vmem:[#allocation2 + $0x50] sm:$0x1]  ;;  %v1676_v42 = vrot.slane %v1674_v24, 4  ;;  %v4438_v23 = vld [vmem:[%s5498_s2 + $0x190] sm:$0xff]  }
  0x70   : > { %4110 = vmatmul.mubr.bf16.gmra.mxu0 %v3565_v25  ;;  %v1552_v25 = vld [vmem:[#allocation2 + $0x3c] sm:$0xf]  ;;  %v1654_v47 = vrot.slane %v1653_v58, 4  ;;  %v2025_v8 = vsel %vm4799_vm5, %v2023_v16, %v2024_v40  ;;  %v1682_v43 = vrot.slane %v1680_v31, 5  ;;  %v3642_v44 = vrot.slane %v1970_v27, 9 }
  0x71   : > { %4158 = vmatpush3.bf16.msra.mxu0 %v4424_v53  ;;  %4161 = vmatprep.mubr.bf16.mxu0 %v3622_v26  ;;  %v1625_v4 = vsel %vm4650_vm2, %v1620_v55, %v1624_v38  ;;  %v2018_v53 = vsel %vm4799_vm5, %v2016_v56, %v2017_v45  ;;  %v1644_v26 = vrot.slane %v1643_v19, 4  ;;  %v1661_v20 = vshrl.u32 %v1552_v25, 16  ;;  %v1558_v19 = vld [vmem:[#allocation2 + $0x54] sm:$0xf] }
  0x72   : > { %4159 = vmatprep.subr.bf16.mxu0 %v4426_v22  ;;  %4194 = vmatmul.mubr.bf16.vlgmr.msra.gmra.mxu1 %v3663_v30  ;;  %v3624_v34 = vcombine.low %v1625_v4, %v1635_v9  ;;  %v1659_v28 = vsel %vm4650_vm2, %v1654_v47, %v1658_v6  ;;  %v2028_v37 = vrot.slane %v1553_v51, 5  ;;  %v1688_v13 = vshll.u32 %v1555_v32, 16  ;;  %v1559_v6 = vld [vmem:[#allocation2 + $0x58] sm:$0xf]  ;;  %v5014_v51 = vld [vmem:[#allocation2 + $0x5c] sm:$0x1] }
  0x73   : > { %4242 = vmatpush3.bf16.msra.mxu1 %v4429_v10  ;;  %v3664_v10 = vcombine.low %v2015_v54, %v2018_v53  ;;  %v1649_v60 = vsel %vm4650_vm2, %v1644_v26, %v1648_v21  ;;  %v1663_v30 = vrot.slane %v1661_v20, 4  ;;  %v1677_v17 = vor.u32 %v1676_v42, %v1672_v39  ;;  %v371_v20 = vld [vmem:[%s4868_s23 + $0x8] sm:$0x1] }
  0x74   : > { %4243 = vmatprep.subr.bf16.mxu1 %v4431_v2  ;;  %v3625_v33 = vcombine.low %v1649_v60, %v1659_v28  ;;  %v2029_v55 = vsel %vm4799_vm5, %v3642_v44, %v2028_v37  ;;  %v2030_v54 = vrot.slane %v2028_v37, 4  ;;  %v1694_v56 = vshll.u32 %v1556_v29, 16  ;;  %378 = vst [vmem:[#allocation2 + $0x68] sm:$0x1] %v371_v20  ;;  %v1973_v37 = vld [vmem:[#allocation2 + $0x60] sm:$0xe] }
  0x75   : > { %4160 = vmatpush3.bf16.msra.mxu0 %v4426_v22  ;;  %4197 = vmatprep.mubr.bf16.mxu1 %v3664_v10  ;;  %v1664_v22 = vshll.u32 %v1552_v25, 16  ;;  %v1690_v61 = vrot.slane %v1688_v13, 5  ;;  %v1678_v0 = vrot.slane %v1677_v17, 4  ;;  %v1704_v4 = vshll.u32 %v4996_v41, 16  ;;  %v4436_v10 = vld [vmem:[%s5498_s2 + $0x198] sm:$0xff]  }
  0x76   : > { %4209 = vmatprep.subr.bf16.mxu0 %v4428_v48  ;;  %v2032_v21 = vsel %vm4799_vm5, %v2030_v54, %v2031_v46  ;;  %v1700_v9 = vrot.slane %v1698_v62, 4  ;;  %v2035_v58 = vrot.slane %v1556_v29, 5  ;;  %v2038_v40 = vrot.slane %v4996_v41, 5  ;;  %v4443_v29 = vld [vmem:[%s5498_s2 + $0x1c0] sm:$0xff]   ;;  %v5044_v62 = vld [vmem:[%s5498_s2 + $0x238] sm:$0xff]  }
  0x77   : > { %4244 = vmatpush3.bf16.msra.mxu1 %v4431_v2  ;;  %v4434_v2 = vld [vmem:[%s5498_s2 + $0x1a0] sm:$0xff]   ;;  %v1666_v38 = vrot.slane %v1664_v22, 5  ;;  %v3666_v5 = vcombine.low %v2029_v55, %v2032_v21  ;;  %v1683_v11 = vsel %vm4650_vm2, %v1678_v0, %v1682_v43  ;;  %v1709_v16 = vshrl.u32 %v1558_v19, 16 }
  0x78   : > { %4162 = vmatmul.mubr.bf16.vlgmr.msra.gmra.mxu0 %v3623_v36  ;;  %4245 = vmatprep.subr.bf16.mxu1 %v4433_v1  ;;  %v3665_v36 = vcombine.low %v2022_v15, %v2025_v8  ;;  %v2037_v15 = vrot.slane %v2035_v58, 4  ;;  %v1718_v24 = vshll.u32 %v1559_v6, 16  ;;  %v1722_v27 = vshrl.u32 %v1559_v6, 16 }
  0x79   : > { %4210 = vmatpush3.bf16.msra.mxu0 %v4428_v48  ;;  %4165 = vmatprep.mubr.bf16.mxu0 %v3624_v34  ;;  %v1667_v45 = vor.u32 %v1666_v38, %v1663_v30  ;;  %v1685_v48 = vshrl.u32 %v1555_v32, 16  ;;  %v3643_v34 = vrot.slane %v1971_v3, 9  ;;  %v1711_v8 = vrot.slane %v1709_v16, 4  ;;  %v1561_v32 = vld [vmem:[#allocation2 + $0x60] sm:$0xf]  ;;  %v4440_v3 = vld [vmem:[%s5498_s2 + $0x188] sm:$0xff]  }
  0x7a   : > { %4211 = vmatprep.subr.bf16.mxu0 %v4430_v59  ;;  %4198 = vmatmul.mubr.bf16.gmra.mxu1 %v3665_v36  ;;  %v2039_v28 = vsel %vm4799_vm5, %v2037_v15, %v2038_v40  ;;  %v1728_v31 = vshll.u32 %v5014_v51, 16  ;;  %v1724_v38 = vrot.slane %v1722_v27, 4  ;;  %v2042_v46 = vrot.slane %v1559_v6, 5  ;;  %v2507_v6 = vld [vmem:[#allocation2 + $0x18] sm:$0xf] }
  0x7b   : > { %4246 = vmatpush3.bf16.msra.mxu1 %v4433_v1  ;;  %v1668_v57 = vrot.slane %v1667_v45, 4  ;;  %v1696_v1 = vrot.slane %v1694_v56, 5  ;;  %4201 = vmatprep.mubr.bf16.mxu1 %v3666_v5  ;;  %v2036_v47 = vsel %vm4799_vm5, %v3643_v34, %v2035_v58  ;;  %v1733_v13 = vshrl.u32 %v1561_v32, 16  ;;  %v1563_v21 = vld [vmem:[#allocation2 + $0x68] sm:$0x1]  ;;  %v4442_v5 = vld [vmem:[%s5498_s2 + $0x180] sm:$0xff]  }
  0x7c   : > { %4247 = vmatprep.subr.bf16.mxu1 %v4435_v12  ;;  %v3667_v36 = vcombine.low %v2036_v47, %v2039_v28  ;;  %v1730_v43 = vrot.slane %v1728_v31, 5  ;;  %v1736_v17 = vshll.u32 %v1561_v32, 16  ;;  %v5055_v40 = vld [vmem:[#allocation2 + $0x1c] sm:$0xf]  ;;  %v5058_v15 = vld [vmem:[#allocation2 + $0x20] sm:$0x1] }
  0x7d   : > { %4212 = vmatpush3.bf16.msra.mxu0 %v4430_v59  ;;  %v1687_v59 = vrot.slane %v1685_v48, 4  ;;  %v1673_v53 = vsel %vm4650_vm2, %v1668_v57, %v1672_v39  ;;  %v1701_v26 = vor.u32 %v1700_v9, %v1696_v1  ;;  %v1562_v39 = vld [vmem:[#allocation2 + $0x64] sm:$0xf]  ;;  %v2045_v48 = vrot.slane %v5014_v51, 5 }
  0x7e   : > { %4213 = vmatprep.subr.bf16.mxu0 %v4432_v18  ;;  %v3626_v14 = vcombine.low %v1673_v53, %v1683_v11  ;;  %v1742_v55 = vshll.u32 %v1562_v39, 16  ;;  %v1746_v54 = vshrl.u32 %v1562_v39, 16  ;;  %v2532_v51 = vshrl.u32 %v2507_v6, 16 }
  0x7f   : > { %4248 = vmatpush3.bf16.msra.mxu1 %v4435_v12  ;;  %v1691_v7 = vor.u32 %v1690_v61, %v1687_v59  ;;  %v1706_v12 = vrot.slane %v1704_v4, 5  ;;  %v1702_v22 = vrot.slane %v1701_v26, 4  ;;  %v2044_v59 = vrot.slane %v2042_v46, 4 }
  0x80   : > { %4166 = vmatmul.mubr.bf16.gmra.mxu0 %v3625_v33  ;;  %4249 = vmatprep.subr.bf16.mxu1 %v4437_v63  ;;  %v1735_v61 = vrot.slane %v1733_v13, 4  ;;  %v1744_v4 = vrot.slane %v1742_v55, 5  ;;  %v1748_v53 = vrot.slane %v1746_v54, 4  ;;  %v2052_v26 = vrot.slane %v1563_v21, 5 }
  0x81   : > { %4214 = vmatpush3.bf16.msra.mxu0 %v4432_v18  ;;  %v1692_v25 = vrot.slane %v1691_v7, 4  ;;  %v1712_v18 = vshll.u32 %v1558_v19, 16  ;;  %4169 = vmatprep.mubr.bf16.mxu0 %v3626_v14  ;;  %v1707_v33 = vsel %vm4650_vm2, %v1702_v22, %v1706_v12  ;;  %v2046_v9 = vsel %vm4799_vm5, %v2044_v59, %v2045_v48  ;;  %v4444_v22 = vld [vmem:[#allocation2 + $0x18] sm:$0xff]  }
  0x82   : > { %4215 = vmatprep.subr.bf16.mxu0 %v4434_v2  ;;  %4202 = vmatmul.mubr.bf16.gmra.mxu1 %v3667_v36  ;;  %v3645_v19 = vrot.slane %v1973_v37, 9  ;;  %v1749_v58 = vor.u32 %v1748_v53, %v1744_v4  ;;  %v2535_v16 = vshll.u32 %v2507_v6, 16  ;;  %v5071_v36 = vld [vmem:[#allocation2 + $0x28] sm:$0xf]  ;;  %v5088_v53 = vld [vmem:[#allocation2 + $0x34] sm:$0xf] }
  0x83   : > { %4250 = vmatpush3.bf16.msra.mxu1 %v4437_v63  ;;  %v1697_v60 = vsel %vm4650_vm2, %v1692_v25, %v1696_v1  ;;  %v1972_v63 = vld [vmem:[#allocation2 + $0x54] sm:$0xe]  ;;  %v1714_v30 = vrot.slane %v1712_v18, 5  ;;  %v1738_v1 = vrot.slane %v1736_v17, 5  ;;  %v2049_v25 = vrot.slane %v1562_v39, 5  ;;  %v4445_v17 = vld [vmem:[#allocation2 + $0x24] sm:$0xff]  }
  0x84   : > { %4251 = vmatprep.subr.bf16.mxu1 %v4439_v49  ;;  %v3627_v41 = vcombine.low %v1697_v60, %v1707_v33  ;;  %v3644_v44 = vrot.slane %v1972_v63, 9  ;;  %v1750_v47 = vrot.slane %v1749_v58, 4  ;;  %v2541_v18 = vshll.u32 %v5055_v40, 16 }
  0x85   : > { %4216 = vmatpush3.bf16.msra.mxu0 %v4434_v2  ;;  %v1720_v2 = vrot.slane %v1718_v24, 5  ;;  %v1715_v42 = vor.u32 %v1714_v30, %v1711_v8  ;;  %v1739_v34 = vor.u32 %v1738_v1, %v1735_v61  ;;  %v2050_v20 = vsel %vm4799_vm5, %v3645_v19, %v2049_v25  ;;  %v2510_v30 = vld [vmem:[#allocation2 + $0x24] sm:$0xf]  ;;  %v4448_v61 = vld [vmem:[#allocation2 + $0x30] sm:$0xff]  }
  0x86   : > { %4217 = vmatprep.subr.bf16.mxu0 %v4436_v10  ;;  %v2043_v57 = vsel %vm4799_vm5, %v3644_v44, %v2042_v46  ;;  %v2051_v60 = vrot.slane %v2049_v25, 4  ;;  %v2545_v24 = vshrl.u32 %v5055_v40, 16  ;;  %v2537_v28 = vrot.slane %v2535_v16, 5  ;;  %v5098_v16 = vld [vmem:[#allocation2 + $0x40] sm:$0xf] }
  0x87   : > { %4252 = vmatpush3.bf16.msra.mxu1 %v4439_v49  ;;  %v1725_v45 = vor.u32 %v1724_v38, %v1720_v2  ;;  %v1716_v49 = vrot.slane %v1715_v42, 4  ;;  %v3668_v12 = vcombine.low %v2043_v57, %v2046_v9  ;;  %v2543_v8 = vrot.slane %v2541_v18, 5 }
  0x88   : > { %4253 = vmatprep.subr.bf16.mxu1 %v4441_v35  ;;  %4170 = vmatmul.mubr.bf16.gmra.mxu0 %v3627_v41  ;;  %v2053_v32 = vsel %vm4799_vm5, %v2051_v60, %v2052_v26  ;;  %v2551_v33 = vshll.u32 %v5058_v15, 16  ;;  %v2556_v41 = vshrl.u32 %v2510_v30, 16  ;;  %v2559_v42 = vshll.u32 %v2510_v30, 16 }
  0x89   : > { %4218 = vmatpush3.bf16.msra.mxu0 %v4436_v10  ;;  %v1726_v56 = vrot.slane %v1725_v45, 4  ;;  %v1721_v0 = vsel %vm4650_vm2, %v1716_v49, %v1720_v2  ;;  %v1752_v10 = vshll.u32 %v1563_v21, 16  ;;  %4205 = vmatprep.mubr.bf16.mxu1 %v3668_v12  ;;  %v5073_v2 = vld [vmem:[#allocation2 + $0x2c] sm:$0x1]  ;;  %v3669_v38 = vcombine.low %v2050_v20, %v2053_v32 }
  0x8a   : > { %4219 = vmatprep.subr.bf16.mxu0 %v4438_v23  ;;  %v2553_v44 = vrot.slane %v2551_v33, 5  ;;  %v2565_v37 = vshll.u32 %v5071_v36, 16  ;;  %v2569_v45 = vshrl.u32 %v5071_v36, 16  ;;  %v2558_v48 = vrot.slane %v2556_v41, 4 }
  0x8b   : > { %4254 = vmatpush3.bf16.msra.mxu1 %v4441_v35  ;;  %v1731_v7 = vsel %vm4650_vm2, %v1726_v56, %v1730_v43  ;;  %v1754_v14 = vrot.slane %v1752_v10, 5  ;;  %v1740_v35 = vrot.slane %v1739_v34, 4  ;;  %v2561_v13 = vrot.slane %v2559_v42, 5  ;;  %v372_v34 = vld [vmem:[%s4868_s23 + $0xc] sm:$0xff]  }
  0x8c   : > { %4255 = vmatprep.subr.bf16.mxu1 %v4443_v29  ;;  %v3628_v11 = vcombine.low %v1721_v0, %v1731_v7  ;;  %4206 = vmatmul.mubr.bf16.gmra.mxu1 %v3669_v38  ;;  %v2567_v55 = vrot.slane %v2565_v37, 5  ;;  %v2571_v54 = vrot.slane %v2569_v45, 4  ;;  %v2513_v0 = vld [vmem:[#allocation2 + $0x30] sm:$0xf]  ;;  %v2593_v12 = vshrl.u32 %v5088_v53, 16  ;;  %379 = vst [vmem:[#allocation2 + $0x6c] sm:$0xff] %v372_v34  }
  0x8d   : > { %4220 = vmatpush3.bf16.msra.mxu0 %v4438_v23  ;;  %v2534_v23 = vrot.slane %v2532_v51, 4  ;;  %v1745_v27 = vsel %vm4650_vm2, %v1740_v35, %v1744_v4  ;;  %v1755_v63 = vsel %vm4650_vm2, %v1750_v47, %v1754_v14  ;;  %v2562_v57 = vor.u32 %v2561_v13, %v2558_v48  ;;  %v5086_v4 = vld [vmem:[%s5498_s2 + $0x230] sm:$0xff]   ;;  %v2516_v47 = vld [vmem:[#allocation2 + $0x3c] sm:$0xf]  ;;  %v4452_v37 = vld [vmem:[#allocation2 + $0x48] sm:$0xff]  }
  0x8e   : > { %4221 = vmatprep.subr.bf16.mxu0 %v4440_v3  ;;  %4173 = vmatprep.mubr.bf16.mxu0 %v3628_v11  ;;  %v3629_v31 = vcombine.low %v1745_v27, %v1755_v63  ;;  %v2572_v1 = vor.u32 %v2571_v54, %v2567_v55  ;;  %v2580_v7 = vshrl.u32 %v2513_v0, 16  ;;  %v2583_v9 = vshll.u32 %v2513_v0, 16  ;;  %v4449_v38 = vld [vmem:[#allocation2 + $0x3c] sm:$0xff]   ;;  %v2519_v45 = vld [vmem:[#allocation2 + $0x48] sm:$0xf]  ;;  %v5124_v13 = vld [vmem:[%s5498_s2 + $0x220] sm:$0xff]  }
  0x8f   : > { %4256 = vmatpush3.bf16.msra.mxu1 %v4443_v29  ;;  %v2547_v29 = vrot.slane %v2545_v24, 4  ;;  %v2538_v39 = vor.u32 %v2537_v28, %v2534_v23  ;;  %v2563_v19 = vrot.slane %v2562_v57, 4  ;;  %v2589_v11 = vshll.u32 %v5088_v53, 16  ;;  %v5107_v24 = vld [vmem:[%s5498_s2 + $0x228] sm:$0xff]  }
  0x90   : > { %4305 = vmatprep.subr.bf16.mxu1 %v5044_v62  ;;  %4174 = vmatmul.mubr.bf16.gmra.mxu0 %v3629_v31  ;;  %v2573_v58 = vrot.slane %v2572_v1, 4  ;;  %v2582_v6 = vrot.slane %v2580_v7, 4  ;;  %v2585_v14 = vrot.slane %v2583_v9, 5  ;;  %v2595_v35 = vrot.slane %v2593_v12, 4  ;;  %v2522_v1 = vld [vmem:[#allocation2 + $0x54] sm:$0xf] }
  0x91   : > { %4222 = vmatpush3.bf16.msra.mxu0 %v4440_v3  ;;  %v2548_v43 = vor.u32 %v2547_v29, %v2543_v8  ;;  %v2539_v46 = vrot.slane %v2538_v39, 4  ;;  %v2575_v3 = vshll.u32 %v5073_v2, 16  ;;  %4225 = vmatprep.mubr.bf16.mxu0 %v4444_v22  ;;  %v2568_v26 = vsel %vm4650_vm2, %v2563_v19, %v2567_v55  ;;  %v5102_v22 = vld [vmem:[#allocation2 + $0x44] sm:$0x1]  ;;  %v5135_v19 = vld [vmem:[#allocation2 + $0x58] sm:$0xf] }
  0x92   : > { %4223 = vmatprep.subr.bf16.mxu0 %v4442_v5  ;;  %v2591_v51 = vrot.slane %v2589_v11, 5  ;;  %v2586_v20 = vor.u32 %v2585_v14, %v2582_v6  ;;  %v2604_v23 = vshrl.u32 %v2516_v47, 16  ;;  %v2607_v28 = vshll.u32 %v2516_v47, 16  ;;  %v5140_v6 = vld [vmem:[#allocation2 + $0x5c] sm:$0x1] }
  0x93   : > { %v2549_v49 = vrot.slane %v2548_v43, 4  ;;  %v2544_v56 = vsel %vm4650_vm2, %v2539_v46, %v2543_v8  ;;  %v2577_v59 = vrot.slane %v2575_v3, 5  ;;  %v2613_v8 = vshll.u32 %v5098_v16, 16  ;;  %v5128_v3 = vld [vmem:[#allocation2 + $0x50] sm:$0x1] }
  0x94   : > { %v2596_v63 = vor.u32 %v2595_v35, %v2591_v51  ;;  %v2587_v30 = vrot.slane %v2586_v20, 4  ;;  %v2606_v31 = vrot.slane %v2604_v23, 4  ;;  %v2617_v32 = vshrl.u32 %v5098_v16, 16  ;;  %v4454_v23 = vld [vmem:[%s5498_s2 + $0x218] sm:$0xff]  }
  0x95   : > { %4224 = vmatpush3.bf16.msra.mxu0 %v4442_v5  ;;  %v2554_v21 = vsel %vm4650_vm2, %v2549_v49, %v2553_v44  ;;  %v5090_v5 = vld [vmem:[#allocation2 + $0x38] sm:$0x1]  ;;  %v2578_v18 = vsel %vm4650_vm2, %v2573_v58, %v2577_v59  ;;  %v2623_v29 = vshll.u32 %v5102_v22, 16  ;;  %v2609_v39 = vrot.slane %v2607_v28, 5 }
  0x96   : > { %4273 = vmatprep.subr.bf16.mxu0 %v5044_v62  ;;  %v3726_v10 = vcombine.low %v2544_v56, %v2554_v21  ;;  %v2599_v25 = vshll.u32 %v5090_v5, 16  ;;  %v3727_v27 = vcombine.low %v2568_v26, %v2578_v18  ;;  %v2597_v33 = vrot.slane %v2596_v63, 4  ;;  %v4453_v18 = vld [vmem:[#allocation2 + $0x54] sm:$0xff]  }
  0x97   : > { %v2615_v41 = vrot.slane %v2613_v8, 5  ;;  %v2592_v42 = vsel %vm4650_vm2, %v2587_v30, %v2591_v51  ;;  %v2619_v43 = vrot.slane %v2617_v32, 4  ;;  %v2625_v44 = vrot.slane %v2623_v29, 5 }
  0x98   : > { %4257 = vmatprep.mubr.bf16.mxu1 %v3726_v10  ;;  %4226 = vmatmul.mubr.bf16.vlgmr.msra.gmra.mxu0 %v4445_v17  ;;  %v2601_v60 = vrot.slane %v2599_v25, 5  ;;  %v2610_v48 = vor.u32 %v2609_v39, %v2606_v31  ;;  %v2628_v49 = vshrl.u32 %v2519_v45, 16  ;;  %v2631_v17 = vshll.u32 %v2519_v45, 16 }
  0x99   : > { %4274 = vmatpush3.bf16.msra.mxu0 %v5044_v62  ;;  %4229 = vmatprep.mubr.bf16.mxu0 %v4448_v61  ;;  %v2620_v54 = vor.u32 %v2619_v43, %v2615_v41  ;;  %v2647_v21 = vshll.u32 %v5128_v3, 16  ;;  %v2652_v11 = vshrl.u32 %v2522_v1, 16  ;;  %v2655_v14 = vshll.u32 %v2522_v1, 16  ;;  %v5170_v43 = vld [vmem:[#allocation2 + $0x64] sm:$0xf] }
  0x9a   : > { %4275 = vmatprep.subr.bf16.mxu0 %v5086_v4  ;;  %4258 = vmatmul.mubr.bf16.vlgmr.msra.gmra.mxu1 %v3727_v27  ;;  %v2602_v46 = vsel %vm4650_vm2, %v2597_v33, %v2601_v60  ;;  %v2611_v59 = vrot.slane %v2610_v48, 4  ;;  %v2630_v61 = vrot.slane %v2628_v49, 4  ;;  %v2633_v0 = vrot.slane %v2631_v17, 5  ;;  %v4456_v33 = vld [vmem:[#allocation2 + $0x60] sm:$0xff]  }
  0x9b   : > { %4313 = vmatpush3.bf16.msra.mxu1 %v5044_v62  ;;  %v5126_v62 = vld [vmem:[#allocation2 + $0x4c] sm:$0xf]  ;;  %v3728_v55 = vcombine.low %v2592_v42, %v2602_v46  ;;  %v2621_v7 = vrot.slane %v2620_v54, 4  ;;  %v2649_v58 = vrot.slane %v2647_v21, 5  ;;  %v2654_v26 = vrot.slane %v2652_v11, 4 }
  0x9c   : > { %4306 = vmatprep.subr.bf16.mxu1 %v5086_v4  ;;  %v2637_v56 = vshll.u32 %v5126_v62, 16  ;;  %v2641_v57 = vshrl.u32 %v5126_v62, 16  ;;  %v2616_v12 = vsel %vm4650_vm2, %v2611_v59, %v2615_v41  ;;  %v2634_v34 = vor.u32 %v2633_v0, %v2630_v61  ;;  %v2528_v0 = vld [vmem:[#allocation2 + $0x6c] sm:$0xf]  ;;  %v5181_v21 = vld [vmem:[#allocation2 + $0x70] sm:$0xf] }
  0x9d   : > { %4276 = vmatpush3.bf16.msra.mxu0 %v5086_v4  ;;  %4261 = vmatprep.mubr.bf16.mxu1 %v3728_v55  ;;  %v2661_v51 = vshll.u32 %v5135_v19, 16  ;;  %v2657_v20 = vrot.slane %v2655_v14, 5  ;;  %v2665_v60 = vshrl.u32 %v5135_v19, 16  ;;  %v2671_v28 = vshll.u32 %v5140_v6, 16 }
  0x9e   : > { %4277 = vmatprep.subr.bf16.mxu0 %v5107_v24  ;;  %v2639_v9 = vrot.slane %v2637_v56, 5  ;;  %v2643_v10 = vrot.slane %v2641_v57, 4  ;;  %v2635_v47 = vrot.slane %v2634_v34, 4  ;;  %v3002_v8 = vrot.slane %v5135_v19, 5  ;;  %v374_v56 = vld [vmem:[%s4868_s23 + $0x14] sm:$0x1] }
  0x9f   : > { %4314 = vmatpush3.bf16.msra.mxu1 %v5086_v4  ;;  %v2626_v4 = vsel %vm4650_vm2, %v2621_v7, %v2625_v44  ;;  %v2663_v63 = vrot.slane %v2661_v51, 5  ;;  %v2658_v31 = vor.u32 %v2657_v20, %v2654_v26  ;;  %v2667_v32 = vrot.slane %v2665_v60, 4  ;;  %v5172_v44 = vld [vmem:[#allocation2 + $0x68] sm:$0x1]  ;;  %381 = vst [vmem:[#allocation2 + $0x74] sm:$0x1] %v374_v56 }
  0xa0   : > { %4230 = vmatmul.mubr.bf16.gmra.mxu0 %v4449_v38  ;;  %4307 = vmatprep.subr.bf16.mxu1 %v5107_v24  ;;  %v2644_v25 = vor.u32 %v2643_v10, %v2639_v9  ;;  %v3729_v35 = vcombine.low %v2616_v12, %v2626_v4  ;;  %v2640_v30 = vsel %vm4650_vm2, %v2635_v47, %v2639_v9  ;;  %v3005_v29 = vrot.slane %v5140_v6, 5  ;;  %v2525_v38 = vld [vmem:[#allocation2 + $0x60] sm:$0xf]  ;;  %v4457_v26 = vld [vmem:[#allocation2 + $0x6c] sm:$0xff]   ;;  %v2933_v20 = vld [vmem:[#allocation2 + $0x18] sm:$0xe] }
  0xa1   : > { %4278 = vmatpush3.bf16.msra.mxu0 %v5107_v24  ;;  %4233 = vmatprep.mubr.bf16.mxu0 %v4452_v37  ;;  %v2673_v41 = vrot.slane %v2671_v28, 5  ;;  %v5168_v42 = vrot.slane %v3002_v8, 4  ;;  %v2659_v45 = vrot.slane %v2658_v31, 4  ;;  %v2668_v46 = vor.u32 %v2667_v32, %v2663_v63  ;;  %v4459_v32 = vld [vmem:[%s5498_s2 + $0x200] sm:$0xff]  }
  0xa2   : > { %4279 = vmatprep.subr.bf16.mxu0 %v5124_v13  ;;  %v2645_v27 = vrot.slane %v2644_v25, 4  ;;  %4262 = vmatmul.mubr.bf16.gmra.mxu1 %v3729_v35  ;;  %v2676_v48 = vshrl.u32 %v2525_v38, 16  ;;  %v2679_v49 = vshll.u32 %v2525_v38, 16  ;;  %v2685_v17 = vshll.u32 %v5170_v43, 16 }
  0xa3   : > { %4315 = vmatpush3.bf16.msra.mxu1 %v5107_v24  ;;  %v5161_v24 = vld [vmem:[%s5498_s2 + $0x210] sm:$0xff]   ;;  %v2689_v55 = vshrl.u32 %v5170_v43, 16  ;;  %v2695_v54 = vshll.u32 %v5172_v44, 16  ;;  %v2664_v57 = vsel %vm4650_vm2, %v2659_v45, %v2663_v63  ;;  %v2669_v59 = vrot.slane %v2668_v46, 4 }
  0xa4   : > { %4308 = vmatprep.subr.bf16.mxu1 %v5124_v13  ;;  %v2650_v39 = vsel %vm4650_vm2, %v2645_v27, %v2649_v58  ;;  %v2678_v61 = vrot.slane %v2676_v48, 4  ;;  %v2687_v1 = vrot.slane %v2685_v17, 5  ;;  %v2700_v11 = vshrl.u32 %v2528_v0, 16  ;;  %v4458_v58 = vld [vmem:[%s5498_s2 + $0x208] sm:$0xff]   ;;  %v2934_v48 = vld [vmem:[#allocation2 + $0x24] sm:$0xe] }
  0xa5   : > { %4280 = vmatpush3.bf16.msra.mxu0 %v5124_v13  ;;  %v3730_v37 = vcombine.low %v2640_v30, %v2650_v39  ;;  %v2691_v7 = vrot.slane %v2689_v55, 4  ;;  %v2697_v9 = vrot.slane %v2695_v54, 5  ;;  %v2674_v10 = vsel %vm4650_vm2, %v2669_v59, %v2673_v41  ;;  %v2937_v30 = vld [vmem:[#allocation2 + $0x48] sm:$0xe]  ;;  %v2938_v55 = vld [vmem:[#allocation2 + $0x54] sm:$0xe] }
  0xa6   : > { %4281 = vmatprep.subr.bf16.mxu0 %v4454_v23  ;;  %v2703_v12 = vshll.u32 %v2528_v0, 16  ;;  %v2709_v34 = vshll.u32 %v5181_v21, 16  ;;  %v3731_v14 = vcombine.low %v2664_v57, %v2674_v10  ;;  %v2713_v51 = vshrl.u32 %v5181_v21, 16 }
  0xa7   : > { %4316 = vmatpush3.bf16.msra.mxu1 %v5124_v13  ;;  %4265 = vmatprep.mubr.bf16.mxu1 %v3730_v37  ;;  %v2681_v13 = vrot.slane %v2679_v49, 5  ;;  %v2692_v25 = vor.u32 %v2691_v7, %v2687_v1  ;;  %v2702_v35 = vrot.slane %v2700_v11, 4  ;;  %v2967_v60 = vrot.slane %v5055_v40, 5  ;;  %v5203_v37 = vld [vmem:[#allocation2 + $0x74] sm:$0x1] }
  0xa8   : > { %4234 = vmatmul.mubr.bf16.gmra.mxu0 %v4453_v18  ;;  %4309 = vmatprep.subr.bf16.mxu1 %v4454_v23  ;;  %v2705_v47 = vrot.slane %v2703_v12, 5  ;;  %v2711_v18 = vrot.slane %v2709_v34, 5  ;;  %v2715_v28 = vrot.slane %v2713_v51, 4  ;;  %v2970_v38 = vrot.slane %v5058_v15, 5 }
  0xa9   : > { %4282 = vmatpush3.bf16.msra.mxu0 %v4454_v23  ;;  %4237 = vmatprep.mubr.bf16.mxu0 %v4456_v33  ;;  %v2682_v4 = vor.u32 %v2681_v13, %v2678_v61  ;;  %v2693_v63 = vrot.slane %v2692_v25, 4  ;;  %v2969_v33 = vrot.slane %v2967_v60, 4  ;;  %v3746_v39 = vrot.slane %v2937_v30, 9  ;;  %v2935_v61 = vld [vmem:[#allocation2 + $0x30] sm:$0xe] }
  0xaa   : > { %4283 = vmatprep.subr.bf16.mxu0 %v5161_v24  ;;  %4266 = vmatmul.mubr.bf16.gmra.mxu1 %v3731_v14  ;;  %v2706_v31 = vor.u32 %v2705_v47, %v2702_v35  ;;  %v2716_v45 = vor.u32 %v2715_v28, %v2711_v18  ;;  %v2719_v15 = vshll.u32 %v5203_v37, 16  ;;  %v2995_v57 = vrot.slane %v5126_v62, 5  ;;  %v2936_v25 = vld [vmem:[#allocation2 + $0x3c] sm:$0xe] }
  0xab   : > { %4317 = vmatpush3.bf16.msra.mxu1 %v4454_v23  ;;  %v2683_v27 = vrot.slane %v2682_v4, 4  ;;  %v3742_v23 = vrot.slane %v2933_v20, 9  ;;  %v2698_v41 = vsel %vm4650_vm2, %v2693_v63, %v2697_v9  ;;  %v2998_v59 = vrot.slane %v5128_v3, 5  ;;  %v2939_v4 = vld [vmem:[#allocation2 + $0x60] sm:$0xe] }
  0xac   : > { %4310 = vmatprep.subr.bf16.mxu1 %v5161_v24  ;;  %v2707_v17 = vrot.slane %v2706_v31, 4  ;;  %v2717_v54 = vrot.slane %v2716_v45, 4  ;;  %v2721_v13 = vrot.slane %v2719_v15, 5  ;;  %v2974_v7 = vrot.slane %v5071_v36, 5 }
  0xad   : > { %4284 = vmatpush3.bf16.msra.mxu0 %v5161_v24  ;;  %v2688_v40 = vsel %vm4650_vm2, %v2683_v27, %v2687_v1  ;;  %v2968_v46 = vsel %vm4799_vm5, %v3742_v23, %v2967_v60  ;;  %v3743_v1 = vrot.slane %v2934_v48, 9  ;;  %v2996_v9 = vsel %vm4799_vm5, %v3746_v39, %v2995_v57  ;;  %v2940_v27 = vld [vmem:[#allocation2 + $0x6c] sm:$0xe] }
  0xae   : > { %4285 = vmatprep.subr.bf16.mxu0 %v4458_v58  ;;  %v3732_v49 = vcombine.low %v2688_v40, %v2698_v41  ;;  %v2712_v0 = vsel %vm4650_vm2, %v2707_v17, %v2711_v18  ;;  %v2997_v10 = vrot.slane %v2995_v57, 4  ;;  %v2977_v62 = vrot.slane %v5073_v2, 5 }
  0xaf   : > { %4318 = vmatpush3.bf16.msra.mxu1 %v5161_v24  ;;  %v2971_v24 = vsel %vm4799_vm5, %v2969_v33, %v2970_v38  ;;  %v3747_v11 = vrot.slane %v2938_v55, 9  ;;  %v2722_v3 = vsel %vm4650_vm2, %v2717_v54, %v2721_v13  ;;  %v2975_v12 = vsel %vm4799_vm5, %v3743_v1, %v2974_v7 }
  0xb0   : > { %4238 = vmatmul.mubr.bf16.gmra.mxu0 %v4457_v26  ;;  %4311 = vmatprep.subr.bf16.mxu1 %v4458_v58  ;;  %v3766_v56 = vcombine.low %v2968_v46, %v2971_v24  ;;  %v2976_v34 = vrot.slane %v2974_v7, 4  ;;  %v3744_v14 = vrot.slane %v2935_v61, 9  ;;  %v3733_v36 = vcombine.low %v2712_v0, %v2722_v3 }
  0xb1   : > { %4286 = vmatpush3.bf16.msra.mxu0 %v4458_v58  ;;  %4269 = vmatprep.mubr.bf16.mxu1 %v3732_v49  ;;  %v3006_v2 = vsel %vm4799_vm5, %v5168_v42, %v3005_v29  ;;  %v2981_v50 = vrot.slane %v5088_v53, 5  ;;  %v3003_v35 = vsel %vm4799_vm5, %v3747_v11, %v3002_v8  ;;  %v2984_v47 = vrot.slane %v5090_v5, 5 }
  0xb2   : > { %4287 = vmatprep.subr.bf16.mxu0 %v4459_v32  ;;  %4289 = vmatprep.mubr.bf16.mxu0 %v3766_v56  ;;  %v2978_v51 = vsel %vm4799_vm5, %v2976_v34, %v2977_v62  ;;  %v3748_v42 = vrot.slane %v2939_v4, 9  ;;  %v3009_v53 = vrot.slane %v5170_v43, 5  ;;  %v3012_v20 = vrot.slane %v5172_v44, 5 }
  0xb3   : > { %4319 = vmatpush3.bf16.msra.mxu1 %v4458_v58  ;;  %v2999_v58 = vsel %vm4799_vm5, %v2997_v10, %v2998_v59  ;;  %v3767_v6 = vcombine.low %v2975_v12, %v2978_v51  ;;  %v2982_v18 = vsel %vm4799_vm5, %v3744_v14, %v2981_v50  ;;  %v2983_v29 = vrot.slane %v2981_v50, 4 }
  0xb4   : > { %4312 = vmatprep.subr.bf16.mxu1 %v4459_v32  ;;  %v3770_v26 = vcombine.low %v2996_v9, %v2999_v58  ;;  %4270 = vmatmul.mubr.bf16.gmra.mxu1 %v3733_v36  ;;  %v3745_v60 = vrot.slane %v2936_v25, 9  ;;  %v2988_v19 = vrot.slane %v5098_v16, 5  ;;  %v2991_v8 = vrot.slane %v5102_v22, 5 }
  0xb5   : > { %4288 = vmatpush3.bf16.msra.mxu0 %v4459_v32  ;;  %v2985_v5 = vsel %vm4799_vm5, %v2983_v29, %v2984_v47  ;;  %v3016_v63 = vrot.slane %v5181_v21, 5  ;;  %v3010_v23 = vsel %vm4799_vm5, %v3748_v42, %v3009_v53  ;;  %v3011_v30 = vrot.slane %v3009_v53, 4 }
  0xb6   : > { %4297 = vmatprep.mubr.bf16.mxu1 %v3770_v26  ;;  %v3768_v28 = vcombine.low %v2982_v18, %v2985_v5  ;;  %v3771_v43 = vcombine.low %v3003_v35, %v3006_v2  ;;  %v2989_v44 = vsel %vm4799_vm5, %v3745_v60, %v2988_v19  ;;  %v2990_v31 = vrot.slane %v2988_v19, 4 }
  0xb7   : > { %4320 = vmatpush3.bf16.msra.mxu1 %v4459_v32  ;;  %v3013_v16 = vsel %vm4799_vm5, %v3011_v30, %v3012_v20  ;;  %v3749_v32 = vrot.slane %v2940_v27, 9  ;;  %v3018_v33 = vrot.slane %v3016_v63, 4  ;;  %v3019_v22 = vrot.slane %v5203_v37, 5 }
  0xb8   : > { %4290 = vmatmul.mubr.bf16.vlgmr.msra.gmra.mxu0 %v3767_v6  ;;  %v3772_v38 = vcombine.low %v3010_v23, %v3013_v16  ;;  %v2992_v21 = vsel %vm4799_vm5, %v2990_v31, %v2991_v8 }
  0xb9   : > { %4293 = vmatprep.mubr.bf16.mxu0 %v3768_v28  ;;  %v3769_v39 = vcombine.low %v2989_v44, %v2992_v21  ;;  %v3017_v40 = vsel %vm4799_vm5, %v3749_v32, %v3016_v63  ;;  %v3020_v41 = vsel %vm4799_vm5, %v3018_v33, %v3019_v22 }
  0xba   : > { %v3773_v45 = vcombine.low %v3017_v40, %v3020_v41 }
  0xbc   : > { %4298 = vmatmul.mubr.bf16.vlgmr.msra.gmra.mxu1 %v3771_v43 }
  0xbd   : > { %4301 = vmatprep.mubr.bf16.mxu1 %v3772_v38 }
  0xc0   : > { %4294 = vmatmul.mubr.bf16.gmra.mxu0 %v3769_v39 }
  0xc4   : > { %4302 = vmatmul.mubr.bf16.gmra.mxu1 %v3773_v45 }
  0xf0   : > { %v4067_v46 = vpop.f32.mrf.mxu1  ;;  %v4035_v37 = vpop.f32.mrf.mxu0 }
  0xf1   : > { %v950_v17 = vadd.f32 %v4067_v46, %v4035_v37 }
  0xf2   : > { %v941_v48 = vpop.f32.mrf.mxu1  ;;  %v748_v24 = vpop.f32.mrf.mxu0 }
  0xf3   : > { %v942_v55 = vadd.f32 %v941_v48, %v748_v24 }
  0xf4   : > { %v4068_v49 = vpop.f32.mrf.mxu1  ;;  %v4036_v56 = vpop.f32.mrf.mxu0 }
  0xf5   : > { %v953_v57 = vadd.f32 %v4068_v49, %v4036_v56 }
  0xf6   : > { %v944_v15 = vpop.f32.mrf.mxu1  ;;  %v751_v61 = vpop.f32.mrf.mxu0 }
  0xf7   : > { %v945_v0 = vadd.f32 %v944_v15, %v751_v61 }
  0xf8   : > { %v4071_v54 = vpop.f32.mrf.mxu1 }
  0xfa   : > { %v957_v59 = vpop.f32.mrf.mxu1 }
  0xfc   : > { %v4072_v13 = vpop.f32.mrf.mxu1  ;;  %v4039_v1 = vpop.f32.mrf.mxu0 }
  0xfd   : > { %v966_v7 = vadd.f32 %v4071_v54, %v4039_v1 }
  0xfe   : > { %v960_v52 = vpop.f32.mrf.mxu1  ;;  %v764_v9 = vpop.f32.mrf.mxu0 }
  0xff   : > { %v958_v62 = vadd.f32 %v957_v59, %v764_v9 }
 0x100   : > { %v4075_v10 = vpop.f32.mrf.mxu1  ;;  %v4040_v11 = vpop.f32.mrf.mxu0 }
 0x101   : > { %v969_v12 = vadd.f32 %v4072_v13, %v4040_v11 }
 0x102   : > { %v973_v3 = vpop.f32.mrf.mxu1  ;;  %v767_v34 = vpop.f32.mrf.mxu0 }
 0x103   : > { %v961_v4 = vadd.f32 %v960_v52, %v767_v34 }
 0x104   : > { %v4076_v14 = vpop.f32.mrf.mxu1  ;;  %v4043_v58 = vpop.f32.mrf.mxu0 }
 0x105   : > { %v982_v2 = vadd.f32 %v4075_v10, %v4043_v58 }
 0x106   : > { %v976_v36 = vpop.f32.mrf.mxu1  ;;  %v780_v50 = vpop.f32.mrf.mxu0 }
 0x107   : > { %v974_v26 = vadd.f32 %v973_v3, %v780_v50 }
 0x108   : > { %v4079_v25 = vpop.f32.mrf.mxu1  ;;  %v4044_v51 = vpop.f32.mrf.mxu0 }
 0x109   : > { %v985_v47 = vadd.f32 %v4076_v14, %v4044_v51 }
 0x10a   : > { %v989_v35 = vpop.f32.mrf.mxu1  ;;  %v783_v6 = vpop.f32.mrf.mxu0 }
 0x10b   : > { %v977_v29 = vadd.f32 %v976_v36, %v783_v6 }
 0x10c   : > { %v4080_v18 = vpop.f32.mrf.mxu1 }
 0x10e   : > { %v992_v42 = vpop.f32.mrf.mxu1 }
 0x110   : > { %v4047_v53 = vpop.f32.mrf.mxu0  ;;  %v4131_v20 = vpop.f32.mrf.mxu1 }
 0x111   : > { %v998_v60 = vadd.f32 %v4079_v25, %v4047_v53 }
 0x112   : > { %v796_v19 = vpop.f32.mrf.mxu0  ;;  %v1461_v5 = vpop.f32.mrf.mxu1 }
 0x113   : > { %v990_v8 = vadd.f32 %v989_v35, %v796_v19 }
 0x114   : > { %v4048_v27 = vpop.f32.mrf.mxu0  ;;  %v4132_v63 = vpop.f32.mrf.mxu1 }
 0x115   : > { %v1001_v28 = vadd.f32 %v4080_v18, %v4048_v27 }
 0x116   : > { %v799_v23 = vpop.f32.mrf.mxu0  ;;  %v1464_v30 = vpop.f32.mrf.mxu1 }
 0x117   : > { %v993_v43 = vadd.f32 %v992_v42, %v799_v23 }
 0x118   : > { %v4099_v44 = vpop.f32.mrf.mxu0  ;;  %v4135_v31 = vpop.f32.mrf.mxu1 }
 0x119   : > { %v1283_v16 = vadd.f32 %v4099_v44, %v950_v17 }
 0x11a   : > { %v1218_v32 = vpop.f32.mrf.mxu0  ;;  %v1477_v33 = vpop.f32.mrf.mxu1 }
 0x11b   : > { %v5259_v22 = vadd.f32 %v4131_v20, %v1283_v16  ;;  %v1281_v38 = vadd.f32 %v1218_v32, %v942_v55 }
 0x11c   : > { %v4100_v21 = vpop.f32.mrf.mxu0  ;;  %v4136_v39 = vpop.f32.mrf.mxu1 }
 0x11d   : > { %v5261_v40 = vadd.f32 %v1461_v5, %v1281_v38  ;;  %v1284_v41 = vadd.f32 %v4100_v21, %v953_v57 }
 0x11e   : > { %v1221_v45 = vpop.f32.mrf.mxu0  ;;  %v1480_v46 = vpop.f32.mrf.mxu1 }
 0x11f   : > { %v5263_v48 = vadd.f32 %v4132_v63, %v1284_v41  ;;  %v1282_v49 = vadd.f32 %v1221_v45, %v945_v0 }
 0x120   : > { %v4103_v37 = vpop.f32.mrf.mxu0  ;;  %v4139_v15 = vpop.f32.mrf.mxu1 }
 0x121   : > { %v5265_v24 = vadd.f32 %v1464_v30, %v1282_v49  ;;  %v1287_v17 = vadd.f32 %v4103_v37, %v966_v7 }
 0x122   : > { %v1234_v54 = vpop.f32.mrf.mxu0  ;;  %v1493_v56 = vpop.f32.mrf.mxu1 }
 0x123   : > { %v5267_v59 = vadd.f32 %v4135_v31, %v1287_v17  ;;  %v1285_v55 = vadd.f32 %v1234_v54, %v958_v62 }
 0x124   : > { %v4104_v61 = vpop.f32.mrf.mxu0  ;;  %v4140_v13 = vpop.f32.mrf.mxu1 }
 0x125   : > { %v5269_v52 = vadd.f32 %v1477_v33, %v1285_v55  ;;  %v1288_v57 = vadd.f32 %v4104_v61, %v969_v12 }
 0x126   : > { %v1237_v1 = vpop.f32.mrf.mxu0  ;;  %v1496_v9 = vpop.f32.mrf.mxu1 }
 0x127   : > { %v5271_v10 = vadd.f32 %v4136_v39, %v1288_v57  ;;  %v1286_v0 = vadd.f32 %v1237_v1, %v961_v4 }
 0x128   : > { %v4107_v11 = vpop.f32.mrf.mxu0  ;;  %v4143_v3 = vpop.f32.mrf.mxu1 }
 0x129   : > { %v5273_v34 = vadd.f32 %v1480_v46, %v1286_v0  ;;  %v1291_v7 = vadd.f32 %v4107_v11, %v982_v2 }
 0x12a   : > { %v1250_v14 = vpop.f32.mrf.mxu0  ;;  %v1509_v36 = vpop.f32.mrf.mxu1 }
 0x12b   : > { %v5275_v58 = vadd.f32 %v4139_v15, %v1291_v7  ;;  %v1289_v62 = vadd.f32 %v1250_v14, %v974_v26 }
 0x12c   : > { %v4108_v50 = vpop.f32.mrf.mxu0  ;;  %v4144_v25 = vpop.f32.mrf.mxu1 }
 0x12d   : > { %v5277_v51 = vadd.f32 %v1493_v56, %v1289_v62  ;;  %v1292_v12 = vadd.f32 %v4108_v50, %v985_v47 }
 0x12e   : > { %v1253_v35 = vpop.f32.mrf.mxu0  ;;  %v1512_v6 = vpop.f32.mrf.mxu1 }
 0x12f   : > { %v5279_v18 = vadd.f32 %v4140_v13, %v1292_v12  ;;  %v1290_v4 = vadd.f32 %v1253_v35, %v977_v29 }
 0x130   : > { %v4111_v42 = vpop.f32.mrf.mxu0 }
 0x131   : > { %v5281_v53 = vadd.f32 %v1496_v9, %v1290_v4  ;;  %v1295_v20 = vadd.f32 %v4111_v42, %v998_v60 }
 0x132   : > { %v1266_v2 = vpop.f32.mrf.mxu0  ;;  %v5283_v19 = vpop.f32.mrf.mxu1 }
 0x133   : > { %v5285_v5 = vadd.f32 %v4143_v3, %v1295_v20  ;;  %v1293_v26 = vadd.f32 %v1266_v2, %v990_v8 }
 0x134   : > { %v4112_v27 = vpop.f32.mrf.mxu0  ;;  %v5287_v63 = vpop.f32.mrf.mxu1 }
 0x135   : > { %v5289_v23 = vadd.f32 %v1509_v36, %v1293_v26  ;;  %v1296_v47 = vadd.f32 %v4112_v27, %v1001_v28 }
 0x136   : > { %v1269_v30 = vpop.f32.mrf.mxu0  ;;  %v5291_v44 = vpop.f32.mrf.mxu1 }
 0x137   : > { %v5293_v29 = vadd.f32 %v4144_v25, %v1296_v47  ;;  %v1294_v31 = vadd.f32 %v1269_v30, %v993_v43 }
 0x138   : > { %v4163_v16 = vpop.f32.mrf.mxu0  ;;  %v5297_v33 = vpop.f32.mrf.mxu1 }
 0x139   : > { %v5295_v60 = vadd.f32 %v1512_v6, %v1294_v31 }
 0x13a   : > { %v1887_v32 = vpop.f32.mrf.mxu0  ;;  %v5299_v21 = vpop.f32.mrf.mxu1 }
 0x13c   : > { %v4164_v38 = vpop.f32.mrf.mxu0  ;;  %v5301_v41 = vpop.f32.mrf.mxu1 }
 0x13e   : > { %v1890_v8 = vpop.f32.mrf.mxu0  ;;  %v5303_v45 = vpop.f32.mrf.mxu1 }
 0x140   : > { %v4167_v39 = vpop.f32.mrf.mxu0  ;;  %v5305_v49 = vpop.f32.mrf.mxu1 }
 0x142   : > { %v1903_v28 = vpop.f32.mrf.mxu0  ;;  %v5307_v37 = vpop.f32.mrf.mxu1 }
 0x144   : > { %v4168_v46 = vpop.f32.mrf.mxu0  ;;  %v5309_v17 = vpop.f32.mrf.mxu1 }
 0x146   : > { %v1906_v43 = vpop.f32.mrf.mxu0  ;;  %v5311_v55 = vpop.f32.mrf.mxu1 }
 0x148   : > { %v4171_v15 = vpop.f32.mrf.mxu0  ;;  %v5313_v13 = vpop.f32.mrf.mxu1 }
 0x14a   : > { %v1919_v54 = vpop.f32.mrf.mxu0 }
 0x14c   : > { %v4172_v56 = vpop.f32.mrf.mxu0  ;;  %v5315_v1 = vpop.f32.mrf.mxu1 }
 0x14e   : > { %v1922_v61 = vpop.f32.mrf.mxu0  ;;  %v5317_v0 = vpop.f32.mrf.mxu1 }
 0x14f   : > { %5506 = vst [vmem:[#allocation3_spill] sm:$0xff] %v5317_v0 }
 0x150   : > { %v4175_v57 = vpop.f32.mrf.mxu0  ;;  %v5319_v3 = vpop.f32.mrf.mxu1 }
 0x151   : > { %5507 = vst [vmem:[#allocation4_spill] sm:$0xff] %v5319_v3 }
 0x152   : > { %v1935_v9 = vpop.f32.mrf.mxu0  ;;  %v5323_v14 = vpop.f32.mrf.mxu1 }
 0x153   : > { %5508 = vst [vmem:[#allocation5_spill] sm:$0xff] %v5323_v14 }
 0x154   : > { %v4176_v11 = vpop.f32.mrf.mxu0 }
 0x156   : > { %v5321_v7 = vpop.f32.mrf.mxu0 }
 0x158   : > { %v4227_v36 = vpop.f32.mrf.mxu0 }
 0x15a   : > { %v2428_v62 = vpop.f32.mrf.mxu0  ;;  %v4259_v50 = vpop.f32.mrf.mxu1 }
 0x15c   : > { %v4228_v25 = vpop.f32.mrf.mxu0  ;;  %v5325_v12 = vpop.f32.mrf.mxu1 }
 0x15e   : > { %v2431_v35 = vpop.f32.mrf.mxu0  ;;  %v5327_v6 = vpop.f32.mrf.mxu1 }
 0x15f   : > { %5509 = vst [vmem:[#allocation6_spill] sm:$0xff] %v5327_v6 }
 0x160   : > { %v5329_v4 = vpop.f32.mrf.mxu1  ;;  %v5331_v42 = vpop.f32.mrf.mxu0 }
 0x161   : > { %5510 = vst [vmem:[#allocation7_spill] sm:$0xff] %v5329_v4 }
 0x162   : > { %v5333_v20 = vpop.f32.mrf.mxu0  ;;  %v5335_v2 = vpop.f32.mrf.mxu1 }
 0x163   : > { %5511 = vst [vmem:[#allocation8_spill] sm:$0xff] %v5335_v2  ;;  %v1952_v2 = vadd.f32 %v4163_v16, %v5259_v22  ;;  %v1954_v22 = vadd.f32 %v1903_v28, %v5269_v52  ;;  %v1958_v52 = vadd.f32 %v1919_v54, %v5277_v51  ;;  %v1964_v28 = vadd.f32 %v4175_v57, %v5285_v5 }
 0x164   : > { %v5337_v26 = vpop.f32.mrf.mxu0  ;;  %v5339_v27 = vpop.f32.mrf.mxu1  ;;  %v1965_v5 = vadd.f32 %v4176_v11, %v5293_v29 }
 0x165   : > { %5512 = vst [vmem:[#allocation9_spill] sm:$0xff] %v5337_v26  ;;  %5513 = vst [vmem:[#allocation10_spill] sm:$0xff] %v5339_v27  ;;  %v1950_v27 = vadd.f32 %v1887_v32, %v5261_v40  ;;  %v1955_v40 = vadd.f32 %v1906_v43, %v5273_v34  ;;  %v2256_v43 = vadd.f32 %v5309_v17, %v1958_v52 }
 0x166   : > { %v5341_v47 = vpop.f32.mrf.mxu0  ;;  %v5343_v30 = vpop.f32.mrf.mxu1 }
 0x167   : > { %5514 = vst [vmem:[#allocation11_spill] sm:$0xff] %v5341_v47  ;;  %5515 = vst [vmem:[#allocation12_spill] sm:$0xff] %v5343_v30  ;;  %v1953_v30 = vadd.f32 %v4164_v38, %v5263_v48  ;;  %v1960_v48 = vadd.f32 %v4171_v15, %v5275_v58  ;;  %v2252_v58 = vadd.f32 %v5301_v41, %v1954_v22 }
 0x168   : > { %v4235_v31 = vpop.f32.mrf.mxu0  ;;  %v5345_v14 = vpop.f32.mrf.mxu1  ;;  %v2253_v51 = vadd.f32 %v5305_v49, %v1955_v40  ;;  %v1963_v49 = vadd.f32 %v5321_v7, %v5295_v60  ;;  %v5420_v60 = vld [vmem:[%s5499_s3] ss:$0 sm:$0xff]  ;;  %v5529_v22 = vld [vmem:[#allocation7_spill] sm:$0xff] }
 0x169   : > { %5516 = vst [vmem:[#allocation13_spill] sm:$0xff] %v5345_v14 }
 0x16a   : > { %v5347_v6 = vpop.f32.mrf.mxu0  ;;  %v5351_v3 = vpop.f32.mrf.mxu1  ;;  %v5531_v52 = vld [vmem:[#allocation8_spill] sm:$0xff] }
 0x16b   : > { %5517 = vst [vmem:[#allocation14_spill] sm:$0xff] %v5347_v6  ;;  %5519 = vst [vmem:[#allocation16_spill] sm:$0xff] %v5351_v3  ;;  %v2250_v6 = vadd.f32 %v5283_v19, %v1952_v2  ;;  %v1956_v3 = vadd.f32 %v4167_v39, %v5267_v59  ;;  %v2248_v19 = vadd.f32 %v5287_v63, %v1950_v27 }
 0x16c   : > { %v5349_v4 = vpop.f32.mrf.mxu0  ;;  %v5356_v26 = vpop.f32.mrf.mxu1  ;;  %v2251_v59 = vadd.f32 %v5291_v44, %v1953_v30 }
 0x16d   : > { %5518 = vst [vmem:[#allocation15_spill] sm:$0xff] %v5349_v4  ;;  %5520 = vst [vmem:[#allocation17_spill] sm:$0xff] %v5356_v26  ;;  %v1951_v4 = vadd.f32 %v1890_v8, %v5265_v24  ;;  %v1957_v26 = vadd.f32 %v4168_v46, %v5271_v10  ;;  %v2493_v24 = vadd.f32 %v4227_v36, %v2250_v6  ;;  %v5523_v36 = vld [vmem:[#allocation4_spill] sm:$0xff]  ;;  %v5526_v6 = vld [vmem:[#allocation5_spill] sm:$0xff] }
 0x16e   : > { %v5354_v0 = vpop.f32.mrf.mxu0  ;;  %v5362_v14 = vpop.f32.mrf.mxu1  ;;  %v1961_v8 = vadd.f32 %v4172_v56, %v5279_v18  ;;  %v1959_v10 = vadd.f32 %v1922_v61, %v5281_v53  ;;  %v2254_v34 = vadd.f32 %v5299_v21, %v1956_v3  ;;  %v2258_v18 = vadd.f32 %v5307_v37, %v1960_v48  ;;  %v5522_v3 = vld [vmem:[#allocation3_spill] sm:$0xff] }
 0x16f   : > { %v2249_v39 = vadd.f32 %v5297_v33, %v1951_v4  ;;  %v2255_v44 = vadd.f32 %v5303_v45, %v1957_v26  ;;  %v2491_v53 = vadd.f32 %v2428_v62, %v2248_v19  ;;  %v1962_v21 = vadd.f32 %v1935_v9, %v5289_v23 }
 0x170   : > { %v5359_v47 = vpop.f32.mrf.mxu0  ;;  %v5374_v32 = vpop.f32.mrf.mxu1  ;;  %v2919_v41 = vadd.f32 %v4259_v50, %v2493_v24  ;;  %v2494_v46 = vadd.f32 %v4228_v25, %v2251_v59  ;;  %v2259_v15 = vadd.f32 %v5311_v55, %v1961_v8  ;;  %v2257_v45 = vadd.f32 %v5313_v13, %v1959_v10  ;;  %v5521_v13 = vld [vmem:[#allocation9_spill] sm:$0xff]  ;;  %v5524_v50 = vld [vmem:[#allocation6_spill] sm:$0xff] }
 0x171   : > { %v2262_v56 = vadd.f32 %v5315_v1, %v1964_v28  ;;  %v2492_v61 = vadd.f32 %v2431_v35, %v2249_v39  ;;  %v2501_v23 = vadd.f32 %v4235_v31, %v2258_v18  ;;  %v2917_v29 = vadd.f32 %v5325_v12, %v2491_v53  ;;  %v5532_v10 = vld [vmem:[#allocation10_spill] sm:$0xff] }
 0x172   : > { %v5368_v16 = vpop.f32.mrf.mxu0  ;;  %v2497_v17 = vadd.f32 %v5331_v42, %v2254_v34  ;;  %v2495_v55 = vadd.f32 %v5333_v20, %v2252_v58  ;;  %v2498_v9 = vadd.f32 %v5521_v13, %v2255_v44  ;;  %v2260_v7 = vadd.f32 %v5522_v3, %v1962_v21  ;;  %v5525_v12 = vld [vmem:[#allocation14_spill] sm:$0xff]  ;;  %v5527_v42 = vld [vmem:[#allocation11_spill] sm:$0xff]  ;;  %v5530_v48 = vld [vmem:[#allocation16_spill] sm:$0xff] }
 0x173   : > { %v2263_v62 = vadd.f32 %v5523_v36, %v1965_v5  ;;  %v2920_v25 = vadd.f32 %v5524_v50, %v2494_v46  ;;  %v2499_v35 = vadd.f32 %v5525_v12, %v2256_v43  ;;  %v2261_v4 = vadd.f32 %v5526_v6, %v1963_v49  ;;  %v5533_v34 = vld [vmem:[#allocation12_spill] sm:$0xff]  ;;  %v5535_v46 = vld [vmem:[#allocation13_spill] sm:$0xff] }
 0x174   : > { %v5377_v38 = vpop.f32.mrf.mxu0  ;;  %v5397_v33 = vpop.f32.mrf.mxu1  ;;  %v2496_v20 = vadd.f32 %v5527_v42, %v2253_v51  ;;  %v5528_v2 = vld [vmem:[#allocation15_spill] sm:$0xff]  ;;  %v2918_v40 = vadd.f32 %v5529_v22, %v2492_v61  ;;  %v2927_v19 = vadd.f32 %v5530_v48, %v2501_v23  ;;  %v2923_v8 = vadd.f32 %v5531_v52, %v2497_v17  ;;  %v5534_v18 = vld [vmem:[#allocation17_spill] sm:$0xff] }
 0x175   : > { %v2502_v26 = vadd.f32 %v5528_v2, %v2259_v15  ;;  %v2921_v39 = vadd.f32 %v5532_v10, %v2495_v55  ;;  %v2924_v58 = vadd.f32 %v5533_v34, %v2498_v9  ;;  %v2500_v28 = vadd.f32 %v5354_v0, %v2257_v45 }
 0x176   : > { %v5387_v63 = vpop.f32.mrf.mxu0  ;;  %v5406_v37 = vpop.f32.mrf.mxu1  ;;  %v2925_v53 = vadd.f32 %v5534_v18, %v2499_v35  ;;  %v2922_v43 = vadd.f32 %v5535_v46, %v2496_v20  ;;  %v2505_v49 = vadd.f32 %v5359_v47, %v2262_v56  ;;  %v2503_v55 = vadd.f32 %v5368_v16, %v2260_v7 }
 0x177   : > { %v2928_v15 = vadd.f32 %v5362_v14, %v2502_v26  ;;  %v2926_v17 = vadd.f32 %v5374_v32, %v2500_v28  ;;  %v2506_v9 = vadd.f32 %v5377_v38, %v2263_v62 }
 0x178   : > { %v4291_v54 = vpop.f32.mrf.mxu0  ;;  %v5415_v11 = vpop.f32.mrf.mxu1  ;;  %v2931_v32 = vadd.f32 %v5397_v33, %v2505_v49  ;;  %v2929_v38 = vadd.f32 %v5406_v37, %v2503_v55 }
 0x179   : > { %v3217_v57 = vadd.f32 %v4291_v54, %v2919_v41 }
 0x17a   : > { %v3152_v1 = vpop.f32.mrf.mxu0  ;;  %v5429_v27 = vpop.f32.mrf.mxu1 }
 0x17b   : > { %v3215_v30 = vadd.f32 %v3152_v1, %v2917_v29  ;;  %v3240_v24 = vadd.f32 %v5420_v60, %v3217_v57  ;;  %v2504_v1 = vadd.f32 %v5387_v63, %v2261_v4 }
 0x17c   : > { %v4292_v31 = vpop.f32.mrf.mxu0  ;;  %v4299_v44 = vpop.f32.mrf.mxu1 }
 0x17d   : > { %v3218_v59 = vadd.f32 %v4292_v31, %v2920_v25  ;;  %v3225_v21 = vadd.f32 %v4299_v44, %v2927_v19  ;;  %v3238_v54 = vadd.f32 %v5420_v60, %v3215_v30  ;;  %v3256_v0 = vmax.f32 %v3240_v24, 0.0 }
 0x17e   : > { %v3155_v51 = vpop.f32.mrf.mxu0  ;;  %v3184_v61 = vpop.f32.mrf.mxu1  ;;  %v2930_v28 = vadd.f32 %v5429_v27, %v2504_v1 }
 0x17f   : > { %v3241_v5 = vadd.f32 %v5420_v60, %v3218_v59  ;;  %v3216_v41 = vadd.f32 %v3155_v51, %v2918_v40  ;;  %v3223_v45 = vadd.f32 %v3184_v61, %v2925_v53  ;;  %v3248_v13 = vadd.f32 %v5420_v60, %v3225_v21 }
 0x180   : > { %v4295_v23 = vpop.f32.mrf.mxu0  ;;  %v4300_v14 = vpop.f32.mrf.mxu1  ;;  %v3254_v16 = vmax.f32 %v3238_v54, 0.0  ;;  %v2932_v40 = vadd.f32 %v5415_v11, %v2506_v9 }
 0x181   : > { %v3257_v57 = vmax.f32 %v3241_v5, 0.0  ;;  %v3239_v29 = vadd.f32 %v5420_v60, %v3216_v41  ;;  %v3221_v47 = vadd.f32 %v4295_v23, %v2923_v8  ;;  %v3226_v36 = vadd.f32 %v4300_v14, %v2928_v15 }
 0x182   : > { %v3168_v56 = vpop.f32.mrf.mxu0  ;;  %v3187_v50 = vpop.f32.mrf.mxu1  ;;  %v3246_v35 = vadd.f32 %v5420_v60, %v3223_v45  ;;  %v3264_v63 = vmax.f32 %v3248_v13, 0.0 }
 0x183   : > { %v3832_v3 = vpack.c.bf16 %v3257_v57, %v3256_v0  ;;  %v3255_v7 = vmax.f32 %v3239_v29, 0.0  ;;  %v3219_v25 = vadd.f32 %v3168_v56, %v2921_v39  ;;  %v3249_v6 = vadd.f32 %v5420_v60, %v3226_v36 }
 0x184   : > { %v4296_v12 = vpop.f32.mrf.mxu0  ;;  %v3224_v42 = vadd.f32 %v3187_v50, %v2926_v17  ;;  %v3244_v4 = vadd.f32 %v5420_v60, %v3221_v47  ;;  %v4303_v33 = vpop.f32.mrf.mxu1  ;;  %v3262_v24 = vmax.f32 %v3246_v35, 0.0 }
 0x185   : > { %3866 = vst [vmem:[%s5454_s26 + $0x8] sm:$0xff] %v3832_v3   ;;  %v3222_v20 = vadd.f32 %v4296_v12, %v2924_v58  ;;  %v3827_v62 = vpack.c.bf16 %v3255_v7, %v3254_v16  ;;  %v3265_v26 = vmax.f32 %v3249_v6, 0.0  ;;  %v3229_v31 = vadd.f32 %v4303_v33, %v2931_v32 }
 0x186   : > { %v3171_v2 = vpop.f32.mrf.mxu0  ;;  %v3247_v30 = vadd.f32 %v5420_v60, %v3224_v42  ;;  %v3242_v48 = vadd.f32 %v5420_v60, %v3219_v25  ;;  %v3200_v19 = vpop.f32.mrf.mxu1  ;;  %v3260_v10 = vmax.f32 %v3244_v4, 0.0 }
 0x187   : > { %v3245_v22 = vadd.f32 %v5420_v60, %v3222_v20  ;;  %3828 = vst [vmem:[%s5454_s26] sm:$0xff] %v3827_v62   ;;  %v3220_v37 = vadd.f32 %v3171_v2, %v2922_v43  ;;  %v3852_v59 = vpack.c.bf16 %v3265_v26, %v3264_v63  ;;  %v3227_v8 = vadd.f32 %v3200_v19, %v2929_v38 }
 0x188   : > { %v3263_v52 = vmax.f32 %v3247_v30, 0.0  ;;  %v4304_v34 = vpop.f32.mrf.mxu1  ;;  %v3252_v44 = vadd.f32 %v5420_v60, %v3229_v31  ;;  %v3258_v18 = vmax.f32 %v3242_v48, 0.0 }
 0x189   : > { %v3261_v39 = vmax.f32 %v3245_v22, 0.0  ;;  %v3243_v58 = vadd.f32 %v5420_v60, %v3220_v37  ;;  %3870 = vst [vmem:[%s5454_s26 + $0x28] sm:$0xff] %v3852_v59   ;;  %v3230_v51 = vadd.f32 %v4304_v34, %v2932_v40  ;;  %v3250_v41 = vadd.f32 %v5420_v60, %v3227_v8 }
 0x18a   : > { %v3847_v11 = vpack.c.bf16 %v3263_v52, %v3262_v24  ;;  %v3203_v5 = vpop.f32.mrf.mxu1  ;;  %v3268_v15 = vmax.f32 %v3252_v44, 0.0 }
 0x18b   : > { %v3842_v53 = vpack.c.bf16 %v3261_v39, %v3260_v10  ;;  %v3259_v21 = vmax.f32 %v3243_v58, 0.0  ;;  %v3253_v46 = vadd.f32 %v5420_v60, %v3230_v51  ;;  %v3228_v43 = vadd.f32 %v3203_v5, %v2930_v28 }
 0x18c   : > { %3869 = vst [vmem:[%s5454_s26 + $0x20] sm:$0xff] %v3847_v11   ;;  %v3266_v61 = vmax.f32 %v3250_v41, 0.0 }
 0x18d   : > { %3868 = vst [vmem:[%s5454_s26 + $0x18] sm:$0xff] %v3842_v53   ;;  %v3837_v27 = vpack.c.bf16 %v3259_v21, %v3258_v18  ;;  %v3269_v49 = vmax.f32 %v3253_v46, 0.0  ;;  %v3251_v54 = vadd.f32 %v5420_v60, %v3228_v43 }
 0x18f   : > { %3867 = vst [vmem:[%s5454_s26 + $0x10] sm:$0xff] %v3837_v27   ;;  %v3862_v23 = vpack.c.bf16 %v3269_v49, %v3268_v15  ;;  %v3267_v0 = vmax.f32 %v3251_v54, 0.0 }
 0x191   : > { %3872 = vst [vmem:[%s5454_s26 + $0x38] sm:$0xff] %v3862_v23   ;;  %v3857_v45 = vpack.c.bf16 %v3267_v0, %v3266_v61 }
 0x193   : > { %3871 = vst [vmem:[%s5454_s26 + $0x30] sm:$0xff] %v3857_v45  }
 0x194 PF: > { %s14_s19 = sadd.s32 1, %s4498_s19   ;;  %s5536_s15 = smov %s4490_s17 }
 0x195   : > { %p11_p9 = scmp.ge.s32.totalorder %s14_s19, 6   ;;  %s5537_s16 = smov %s4494_s18 }
 0x196   : > { %s5538_s17 = smov %s5541_s20  ;;  %s5539_s18 = smov %s5545_s21 }
 0x197   :  { %13 = sbr.rel (!%p11_p9) target bundleno = 3 (0x3), region = 80 }

</bundles_post_ra>
